<compile_context>
chip_gen: v7x
topology: tpu7x:2x2x1
jax: 0.10.0
libtpu: 0.0.40
codegen_flags: <defaults>
</compile_context>

<pallas_src>
import functools
import math

import jax
import jax.numpy as jnp
from jax.experimental import pallas as pl
from jax.experimental.pallas import tpu as pltpu


MATMUL_DTYPE = jnp.bfloat16   # MXU input dtype for weight matmuls; accumulation stays f32
_EPS = 1e-6


# ----------------------------- in-kernel helpers -----------------------------

def _layernorm(x, a, b):
    # Annotated-Transformer LayerNorm: a*(x-mean)/(std+eps)+b, std is *unbiased* (ddof=1).
    d = x.shape[-1]
    mean = jnp.mean(x, axis=-1, keepdims=True)
    var = jnp.sum((x - mean) ** 2, axis=-1, keepdims=True) * (1.0 / (d - 1))
    inv = pl.reciprocal(jnp.sqrt(var) + _EPS, approx=True)   # EUP slot; VPU stays free
    return a * (x - mean) * inv + b


def _mha(q_in_bf, kv_in_bf, mask, wq_ref, bq_ref, wk_ref, bk_ref, wv_ref, bv_ref,
         wo_ref, num_heads):
    # q_in_bf: (Tq, D) bf16, kv_in_bf: (Tk, D) bf16, mask: (Mq, Tk) f32 (0.0 = masked).
    # Weights are head-split: wq/wk/wv (H, D, dk), wo (H, dk, D).  All heads run inside
    # this single kernel invocation; the per-head output-projection contributions are
    # accumulated so the result is written as one lane-dense (Tq, D) slab.
    dk = wq_ref.shape[-1]
    scale = 1.0 / math.sqrt(dk)          # folded into q (no per-score divide)
    out = None
    for h in range(num_heads):           # static unroll; all heads share one launch
        q_h = (jnp.dot(q_in_bf, wq_ref[h], preferred_element_type=jnp.float32)
               + bq_ref[h]) * scale                                   # (Tq, dk) f32
        k_h = jnp.dot(kv_in_bf, wk_ref[h],
                      preferred_element_type=jnp.float32) + bk_ref[h]  # (Tk, dk) f32
        v_h = jnp.dot(kv_in_bf, wv_ref[h],
                      preferred_element_type=jnp.float32) + bv_ref[h]  # (Tk, dk) f32

        s = jnp.dot(q_h, k_h.T, preferred_element_type=jnp.float32)    # (Tq, Tk) f32
        s = jnp.where(mask == 0.0, jnp.float32(-1e9), s)               # masked_fill
        s = s - jnp.max(s, axis=-1, keepdims=True)
        p = jnp.exp(s)
        p = p * pl.reciprocal(jnp.sum(p, axis=-1, keepdims=True), approx=True)

        ctx = jnp.dot(p, v_h, preferred_element_type=jnp.float32)      # (Tq, dk) f32
        o_h = jnp.dot(ctx.astype(MATMUL_DTYPE), wo_ref[h],
                      preferred_element_type=jnp.float32)              # (Tq, D)  f32
        out = o_h if out is None else out + o_h
    return out


# ----------------------------- fused kernels -----------------------------

def _self_attn_block_kernel(x_ref, ln_a_ref, ln_b_ref, wq_ref, bq_ref, wk_ref, bk_ref,
                            wv_ref, bv_ref, wo_ref, bo_ref, mask_ref, o_ref, *,
                            num_heads):
    # Fused: LayerNorm -> QKV projections -> MHA (tgt mask) -> out-proj -> residual add.
    x = x_ref[...].astype(jnp.float32)                     # (Tq, D)
    xn = _layernorm(x, ln_a_ref[...], ln_b_ref[...])
    xn_bf = xn.astype(MATMUL_DTYPE)
    attn = _mha(xn_bf, xn_bf, mask_ref[...], wq_ref, bq_ref, wk_ref, bk_ref,
                wv_ref, bv_ref, wo_ref, num_heads)
    o_ref[...] = (x + attn + bo_ref[...]).astype(o_ref.dtype)


def _src_attn_block_kernel(x_ref, mem_ref, ln_a_ref, ln_b_ref, wq_ref, bq_ref, wk_ref,
                           bk_ref, wv_ref, bv_ref, wo_ref, bo_ref, mask_ref, o_ref, *,
                           num_heads):
    # Fused: LayerNorm(x) -> Q proj; K/V proj from encoder memory -> MHA (src mask)
    #        -> out-proj -> residual add.
    x = x_ref[...].astype(jnp.float32)                     # (Tq, D)
    mem_bf = mem_ref[...].astype(MATMUL_DTYPE)             # (Tk, D)
    xn = _layernorm(x, ln_a_ref[...], ln_b_ref[...])
    attn = _mha(xn.astype(MATMUL_DTYPE), mem_bf, mask_ref[...], wq_ref, bq_ref, wk_ref,
                bk_ref, wv_ref, bv_ref, wo_ref, num_heads)
    o_ref[...] = (x + attn + bo_ref[...]).astype(o_ref.dtype)


def _ffn_block_kernel(x_ref, ln_a_ref, ln_b_ref, w1_ref, b1_ref, w2_ref, b2_ref, o_ref):
    # Fused: LayerNorm -> Linear(D, Dff) -> ReLU -> Linear(Dff, D) -> residual add.
    x = x_ref[...].astype(jnp.float32)                     # (T, D)
    xn = _layernorm(x, ln_a_ref[...], ln_b_ref[...])
    h = jnp.dot(xn.astype(MATMUL_DTYPE), w1_ref[...],
                preferred_element_type=jnp.float32) + b1_ref[...]
    h = jnp.maximum(h, 0.0)
    out = jnp.dot(h.astype(MATMUL_DTYPE), w2_ref[...],
                  preferred_element_type=jnp.float32) + b2_ref[...]
    o_ref[...] = (x + out).astype(o_ref.dtype)


def _final_norm_kernel(x_ref, ln_a_ref, ln_b_ref, o_ref):
    o_ref[...] = _layernorm(x_ref[...].astype(jnp.float32),
                            ln_a_ref[...], ln_b_ref[...]).astype(o_ref.dtype)


# ----------------------------- pallas_call wrappers -----------------------------

def pallas_attn_block(x, kv, mask, ln, ap, num_heads):
    """One fused kernel per attention sublayer.  grid=(B,), each step writes a lane-dense
    (T, D) output block.  kv=None -> self-attention (K/V from LayerNorm(x))."""
    B, Tq, D = x.shape
    H = num_heads
    dk = D // H
    mask = mask.astype(jnp.float32)
    Mb, Mq, Mk = mask.shape
    # Broadcast mask via the index_map (single small block), never materialized in HBM.
    mask_idx = (lambda b: (b, 0, 0)) if (Mb == B and B > 1) else (lambda b: (0, 0, 0))

    param_specs = [
        pl.BlockSpec((1, D), lambda b: (0, 0)),          # ln a
        pl.BlockSpec((1, D), lambda b: (0, 0)),          # ln b
        pl.BlockSpec((H, D, dk), lambda b: (0, 0, 0)),   # wq (head-split, pre-transposed)
        pl.BlockSpec((H, 1, dk), lambda b: (0, 0, 0)),   # bq
        pl.BlockSpec((H, D, dk), lambda b: (0, 0, 0)),   # wk
        pl.BlockSpec((H, 1, dk), lambda b: (0, 0, 0)),   # bk
        pl.BlockSpec((H, D, dk), lambda b: (0, 0, 0)),   # wv
        pl.BlockSpec((H, 1, dk), lambda b: (0, 0, 0)),   # bv
        pl.BlockSpec((H, dk, D), lambda b: (0, 0, 0)),   # wo (head-split, pre-transposed)
        pl.BlockSpec((1, D), lambda b: (0, 0)),          # bo
        pl.BlockSpec((None, Mq, Mk), mask_idx),          # mask
    ]
    param_args = [ln["a"], ln["b"], ap["wq"], ap["bq"], ap["wk"], ap["bk"],
                  ap["wv"], ap["bv"], ap["wo"], ap["bo"], mask]

    if kv is None:
        kernel = functools.partial(_self_attn_block_kernel, num_heads=H)
        in_specs = [pl.BlockSpec((None, Tq, D), lambda b: (b, 0, 0))] + param_specs
        args = [x] + param_args
    else:
        Tk = kv.shape[1]
        kernel = functools.partial(_src_attn_block_kernel, num_heads=H)
        in_specs = [pl.BlockSpec((None, Tq, D), lambda b: (b, 0, 0)),
                    pl.BlockSpec((None, Tk, D), lambda b: (b, 0, 0))] + param_specs
        args = [x, kv] + param_args

    return pl.pallas_call(
        kernel,
        grid=(B,),
        in_specs=in_specs,
        out_specs=pl.BlockSpec((None, Tq, D), lambda b: (b, 0, 0)),
        out_shape=jax.ShapeDtypeStruct((B, Tq, D), jnp.float32),
        compiler_params=pltpu.CompilerParams(dimension_semantics=("parallel",)),
    )(*args)


def pallas_ffn_block(x, ln, fp):
    B, T, D = x.shape
    Dff = fp["w1"].shape[1]
    return pl.pallas_call(
        _ffn_block_kernel,
        grid=(B,),
        in_specs=[
            pl.BlockSpec((None, T, D), lambda b: (b, 0, 0)),
            pl.BlockSpec((1, D), lambda b: (0, 0)),
            pl.BlockSpec((1, D), lambda b: (0, 0)),
            pl.BlockSpec((D, Dff), lambda b: (0, 0)),
            pl.BlockSpec((1, Dff), lambda b: (0, 0)),
            pl.BlockSpec((Dff, D), lambda b: (0, 0)),
            pl.BlockSpec((1, D), lambda b: (0, 0)),
        ],
        out_specs=pl.BlockSpec((None, T, D), lambda b: (b, 0, 0)),
        out_shape=jax.ShapeDtypeStruct((B, T, D), jnp.float32),
        compiler_params=pltpu.CompilerParams(dimension_semantics=("parallel",)),
    )(x, ln["a"], ln["b"], fp["w1"], fp["b1"], fp["w2"], fp["b2"])


def pallas_final_norm(x, ln):
    B, T, D = x.shape
    return pl.pallas_call(
        _final_norm_kernel,
        grid=(B,),
        in_specs=[
            pl.BlockSpec((None, T, D), lambda b: (b, 0, 0)),
            pl.BlockSpec((1, D), lambda b: (0, 0)),
            pl.BlockSpec((1, D), lambda b: (0, 0)),
        ],
        out_specs=pl.BlockSpec((None, T, D), lambda b: (b, 0, 0)),
        out_shape=jax.ShapeDtypeStruct((B, T, D), jnp.float32),
        compiler_params=pltpu.CompilerParams(dimension_semantics=("parallel",)),
    )(x, ln["a"], ln["b"])


# ----------------------------- Decoder forward -----------------------------

def decoder_forward(params, x, memory, src_mask, tgt_mask, num_heads):
    # 3 fused kernels per DecoderLayer (pre-norm + residual included in each), then final norm.
    for lp in params["layers"]:
        x = pallas_attn_block(x, None, tgt_mask, lp["ln0"], lp["self_attn"], num_heads)
        x = pallas_attn_block(x, memory, src_mask, lp["ln1"], lp["src_attn"], num_heads)
        x = pallas_ffn_block(x, lp["ln2"], lp["ffn"])
    return pallas_final_norm(x, params["norm"])


# ----------------------------- parameter init -----------------------------
# Weights are generated in PyTorch (Dout, Din) orientation, then pre-transposed / head-split
# ONCE here so no per-call transposes or reshapes are needed in the forward pass.

def _init_ln(d):
    return {"a": jnp.ones((1, d), jnp.float32), "b": jnp.zeros((1, d), jnp.float32)}


def _init_attn(key, d_model, num_heads, scale=0.1):
    dk = d_model // num_heads
    ks = jax.random.split(key, 8)

    def w_heads(k):   # (Dout, Din) -> per-head (H, Din, dk), i.e. W[h*dk:(h+1)*dk, :].T
        w = jax.random.normal(k, (d_model, d_model), jnp.float32) * scale
        return jnp.transpose(w.reshape(num_heads, dk, d_model), (0, 2, 1)).astype(MATMUL_DTYPE)

    def b_heads(k):
        b = jax.random.normal(k, (d_model,), jnp.float32) * scale
        return b.reshape(num_heads, 1, dk)

    wo = jax.random.normal(ks[6], (d_model, d_model), jnp.float32) * scale  # (Dout, Din)
    return {
        "wq": w_heads(ks[0]), "bq": b_heads(ks[1]),
        "wk": w_heads(ks[2]), "bk": b_heads(ks[3]),
        "wv": w_heads(ks[4]), "bv": b_heads(ks[5]),
        # Wo.T split along its input (head) axis: (H, dk, D)
        "wo": wo.T.reshape(num_heads, dk, d_model).astype(MATMUL_DTYPE),
        "bo": (jax.random.normal(ks[7], (d_model,), jnp.float32) * scale).reshape(1, d_model),
    }


def _init_ffn(key, d_model, d_ff, scale=0.1):
    k1w, k1b, k2w, k2b = jax.random.split(key, 4)
    return {
        "w1": (jax.random.normal(k1w, (d_ff, d_model), jnp.float32) * scale).T.astype(MATMUL_DTYPE),
        "b1": (jax.random.normal(k1b, (d_ff,), jnp.float32) * scale).reshape(1, d_ff),
        "w2": (jax.random.normal(k2w, (d_model, d_ff), jnp.float32) * scale).T.astype(MATMUL_DTYPE),
        "b2": (jax.random.normal(k2b, (d_model,), jnp.float32) * scale).reshape(1, d_model),
    }


def init_decoder_params(key, n_layers, d_model, n_heads, d_ff):
    k_self, k_src, k_ffn = jax.random.split(key, 3)
    layer = {
        "self_attn": _init_attn(k_self, d_model, n_heads),
        "src_attn": _init_attn(k_src, d_model, n_heads),
        "ffn": _init_ffn(k_ffn, d_model, d_ff),
        "ln0": _init_ln(d_model),
        "ln1": _init_ln(d_model),
        "ln2": _init_ln(d_model),
    }
    # clones() deep-copies one initialized layer -> every layer starts with identical params.
    return {"layers": [layer for _ in range(n_layers)], "norm": _init_ln(d_model)}


# ----------------------------- main -----------------------------

if __name__ == "__main__":
    B, T_tgt, T_src = 2, 8, 8
    d_model, n_heads, d_ff, n_layers = 32, 4, 64, 2

    root = jax.random.PRNGKey(0)
    k_params, k_x, k_mem = jax.random.split(root, 3)

    params = init_decoder_params(k_params, n_layers, d_model, n_heads, d_ff)

    x = jax.random.normal(k_x, (B, T_tgt, d_model), jnp.float32)
    memory = jax.random.normal(k_mem, (B, T_src, d_model), jnp.float32)

    # tgt_mask: causal (subsequent) mask, src_mask: all-ones (shapes as in the reference model).
    tgt_mask = jnp.tril(jnp.ones((T_tgt, T_tgt), jnp.float32))[None, :, :]   # (1, Tq, Tq)
    src_mask = jnp.ones((B, 1, T_src), jnp.float32)                          # (B, 1, Ts)

    fwd = jax.jit(functools.partial(decoder_forward, num_heads=n_heads))
    out = jax.block_until_ready(fwd(params, x, memory, src_mask, tgt_mask))

    assert out.shape == (B, T_tgt, d_model)
    assert bool(jnp.all(jnp.isfinite(out)))
    print("KERNEL_OK")
</pallas_src>

<mosaic_0001>
module attributes {stable_mosaic.version = 11 : i64} {
  func.func @_src_attn_block_kernel(%arg0: i32, %arg1: memref<1x8x32xf32, #tpu.memory_space<vmem>>, %arg2: memref<1x8x32xf32, #tpu.memory_space<vmem>>, %arg3: memref<1x32xf32, #tpu.memory_space<vmem>>, %arg4: memref<1x32xf32, #tpu.memory_space<vmem>>, %arg5: memref<4x32x8xbf16, #tpu.memory_space<vmem>>, %arg6: memref<4x1x8xf32, #tpu.memory_space<vmem>>, %arg7: memref<4x32x8xbf16, #tpu.memory_space<vmem>>, %arg8: memref<4x1x8xf32, #tpu.memory_space<vmem>>, %arg9: memref<4x32x8xbf16, #tpu.memory_space<vmem>>, %arg10: memref<4x1x8xf32, #tpu.memory_space<vmem>>, %arg11: memref<4x8x32xbf16, #tpu.memory_space<vmem>>, %arg12: memref<1x32xf32, #tpu.memory_space<vmem>>, %arg13: memref<1x1x8xf32, #tpu.memory_space<vmem>>, %arg14: memref<1x8x32xf32, #tpu.memory_space<vmem>>) attributes {dimension_semantics = [#tpu.dimension_semantics<parallel>], iteration_bounds = array<i64: 2>, scalar_prefetch = 0 : i64, scratch_operands = 0 : i64, tpu.core_type = #tpu.core_type<tc>, window_params = [{transform_indices = @transform_0, window_bounds = array<i64: 1, 8, 32>}, {transform_indices = @transform_1, window_bounds = array<i64: 1, 8, 32>}, {pipeline_mode = #tpu.pipeline_mode<synchronous>, transform_indices = @transform_2, window_bounds = array<i64: 1, 32>}, {pipeline_mode = #tpu.pipeline_mode<synchronous>, transform_indices = @transform_3, window_bounds = array<i64: 1, 32>}, {pipeline_mode = #tpu.pipeline_mode<synchronous>, transform_indices = @transform_4, window_bounds = array<i64: 4, 32, 8>}, {pipeline_mode = #tpu.pipeline_mode<synchronous>, transform_indices = @transform_5, window_bounds = array<i64: 4, 1, 8>}, {pipeline_mode = #tpu.pipeline_mode<synchronous>, transform_indices = @transform_6, window_bounds = array<i64: 4, 32, 8>}, {pipeline_mode = #tpu.pipeline_mode<synchronous>, transform_indices = @transform_7, window_bounds = array<i64: 4, 1, 8>}, {pipeline_mode = #tpu.pipeline_mode<synchronous>, transform_indices = @transform_8, window_bounds = array<i64: 4, 32, 8>}, {pipeline_mode = #tpu.pipeline_mode<synchronous>, transform_indices = @transform_9, window_bounds = array<i64: 4, 1, 8>}, {pipeline_mode = #tpu.pipeline_mode<synchronous>, transform_indices = @transform_10, window_bounds = array<i64: 4, 8, 32>}, {pipeline_mode = #tpu.pipeline_mode<synchronous>, transform_indices = @transform_11, window_bounds = array<i64: 1, 32>}, {transform_indices = @transform_12, window_bounds = array<i64: 1, 1, 8>}, {transform_indices = @transform_13, window_bounds = array<i64: 1, 8, 32>}]} {
    %c0 = arith.constant 0 : index
    %c0_0 = arith.constant 0 : index
    %c0_1 = arith.constant 0 : index
    %0 = vector.load %arg1[%c0, %c0_0, %c0_1] : memref<1x8x32xf32, #tpu.memory_space<vmem>>, vector<1x8x32xf32>
    %1 = vector.shape_cast %0 : vector<1x8x32xf32> to vector<8x32xf32>
    %c0_2 = arith.constant 0 : index
    %c0_3 = arith.constant 0 : index
    %c0_4 = arith.constant 0 : index
    %2 = vector.load %arg2[%c0_2, %c0_3, %c0_4] : memref<1x8x32xf32, #tpu.memory_space<vmem>>, vector<1x8x32xf32>
    %3 = vector.shape_cast %2 : vector<1x8x32xf32> to vector<8x32xf32>
    %4 = arith.truncf %3 : vector<8x32xf32> to vector<8x32xbf16>
    %c0_5 = arith.constant 0 : index
    %c0_6 = arith.constant 0 : index
    %5 = vector.load %arg3[%c0_5, %c0_6] : memref<1x32xf32, #tpu.memory_space<vmem>>, vector<1x32xf32>
    %c0_7 = arith.constant 0 : index
    %c0_8 = arith.constant 0 : index
    %6 = vector.load %arg4[%c0_7, %c0_8] : memref<1x32xf32, #tpu.memory_space<vmem>>, vector<1x32xf32>
    %cst = arith.constant dense<0.000000e+00> : vector<8xf32>
    %7 = vector.multi_reduction <add>, %1, %cst [1] : vector<8x32xf32> to vector<8xf32>
    %8 = vector.shape_cast %7 : vector<8xf32> to vector<8x1xf32>
    %cst_9 = arith.constant 3.200000e+01 : f32
    %9 = vector.broadcast %cst_9 : f32 to vector<8x1xf32>
    %10 = arith.divf %8, %9 : vector<8x1xf32>
    %11 = vector.broadcast %10 : vector<8x1xf32> to vector<8x32xf32>
    %12 = arith.subf %1, %11 : vector<8x32xf32>
    %13 = arith.mulf %12, %12 : vector<8x32xf32>
    %cst_10 = arith.constant dense<0.000000e+00> : vector<8xf32>
    %14 = vector.multi_reduction <add>, %13, %cst_10 [1] : vector<8x32xf32> to vector<8xf32>
    %15 = vector.shape_cast %14 : vector<8xf32> to vector<8x1xf32>
    %cst_11 = arith.constant 0.0322580636 : f32
    %16 = vector.broadcast %cst_11 : f32 to vector<8x1xf32>
    %17 = arith.mulf %15, %16 : vector<8x1xf32>
    %18 = math.sqrt %17 : vector<8x1xf32>
    %cst_12 = arith.constant 9.99999997E-7 : f32
    %19 = vector.broadcast %cst_12 : f32 to vector<8x1xf32>
    %20 = arith.addf %18, %19 : vector<8x1xf32>
    %21 = tpu.reciprocal %20 {approx = true} : vector<8x1xf32> -> vector<8x1xf32>
    %22 = vector.broadcast %10 : vector<8x1xf32> to vector<8x32xf32>
    %23 = arith.subf %1, %22 : vector<8x32xf32>
    %24 = vector.broadcast %5 : vector<1x32xf32> to vector<8x32xf32>
    %25 = arith.mulf %24, %23 : vector<8x32xf32>
    %26 = vector.broadcast %21 : vector<8x1xf32> to vector<8x32xf32>
    %27 = arith.mulf %25, %26 : vector<8x32xf32>
    %28 = vector.broadcast %6 : vector<1x32xf32> to vector<8x32xf32>
    %29 = arith.addf %27, %28 : vector<8x32xf32>
    %30 = arith.truncf %29 : vector<8x32xf32> to vector<8x32xbf16>
    %c0_13 = arith.constant 0 : index
    %c0_14 = arith.constant 0 : index
    %c0_15 = arith.constant 0 : index
    %31 = vector.load %arg13[%c0_13, %c0_14, %c0_15] : memref<1x1x8xf32, #tpu.memory_space<vmem>>, vector<1x1x8xf32>
    %32 = vector.shape_cast %31 : vector<1x1x8xf32> to vector<1x8xf32>
    %c0_16 = arith.constant 0 : index
    %c0_17 = arith.constant 0 : index
    %c0_18 = arith.constant 0 : index
    %33 = vector.load %arg5[%c0_16, %c0_17, %c0_18] : memref<4x32x8xbf16, #tpu.memory_space<vmem>>, vector<1x32x8xbf16>
    %34 = vector.shape_cast %33 : vector<1x32x8xbf16> to vector<32x8xbf16>
    %cst_19 = arith.constant dense<0.000000e+00> : vector<8x8xf32>
    %35 = tpu.matmul %30, %34, %cst_19 {dimension_numbers = #tpu.dot_dimension_numbers<[1], [0], [0], [1], [0, 0, 1, 1], [], []>} : vector<8x32xbf16>, vector<32x8xbf16>, vector<8x8xf32> -> vector<8x8xf32>
    %c0_20 = arith.constant 0 : index
    %c0_21 = arith.constant 0 : index
    %c0_22 = arith.constant 0 : index
    %36 = vector.load %arg6[%c0_20, %c0_21, %c0_22] : memref<4x1x8xf32, #tpu.memory_space<vmem>>, vector<1x1x8xf32>
    %37 = vector.shape_cast %36 : vector<1x1x8xf32> to vector<1x8xf32>
    %38 = vector.broadcast %37 : vector<1x8xf32> to vector<8x8xf32>
    %39 = arith.addf %35, %38 : vector<8x8xf32>
    %cst_23 = arith.constant 0.353553385 : f32
    %40 = vector.broadcast %cst_23 : f32 to vector<8x8xf32>
    %41 = arith.mulf %39, %40 : vector<8x8xf32>
    %c0_24 = arith.constant 0 : index
    %c0_25 = arith.constant 0 : index
    %c0_26 = arith.constant 0 : index
    %42 = vector.load %arg7[%c0_24, %c0_25, %c0_26] : memref<4x32x8xbf16, #tpu.memory_space<vmem>>, vector<1x32x8xbf16>
    %43 = vector.shape_cast %42 : vector<1x32x8xbf16> to vector<32x8xbf16>
    %cst_27 = arith.constant dense<0.000000e+00> : vector<8x8xf32>
    %44 = tpu.matmul %4, %43, %cst_27 {dimension_numbers = #tpu.dot_dimension_numbers<[1], [0], [0], [1], [0, 0, 1, 1], [], []>} : vector<8x32xbf16>, vector<32x8xbf16>, vector<8x8xf32> -> vector<8x8xf32>
    %c0_28 = arith.constant 0 : index
    %c0_29 = arith.constant 0 : index
    %c0_30 = arith.constant 0 : index
    %45 = vector.load %arg8[%c0_28, %c0_29, %c0_30] : memref<4x1x8xf32, #tpu.memory_space<vmem>>, vector<1x1x8xf32>
    %46 = vector.shape_cast %45 : vector<1x1x8xf32> to vector<1x8xf32>
    %47 = vector.broadcast %46 : vector<1x8xf32> to vector<8x8xf32>
    %48 = arith.addf %44, %47 : vector<8x8xf32>
    %c0_31 = arith.constant 0 : index
    %c0_32 = arith.constant 0 : index
    %c0_33 = arith.constant 0 : index
    %49 = vector.load %arg9[%c0_31, %c0_32, %c0_33] : memref<4x32x8xbf16, #tpu.memory_space<vmem>>, vector<1x32x8xbf16>
    %50 = vector.shape_cast %49 : vector<1x32x8xbf16> to vector<32x8xbf16>
    %cst_34 = arith.constant dense<0.000000e+00> : vector<8x8xf32>
    %51 = tpu.matmul %4, %50, %cst_34 {dimension_numbers = #tpu.dot_dimension_numbers<[1], [0], [0], [1], [0, 0, 1, 1], [], []>} : vector<8x32xbf16>, vector<32x8xbf16>, vector<8x8xf32> -> vector<8x8xf32>
    %c0_35 = arith.constant 0 : index
    %c0_36 = arith.constant 0 : index
    %c0_37 = arith.constant 0 : index
    %52 = vector.load %arg10[%c0_35, %c0_36, %c0_37] : memref<4x1x8xf32, #tpu.memory_space<vmem>>, vector<1x1x8xf32>
    %53 = vector.shape_cast %52 : vector<1x1x8xf32> to vector<1x8xf32>
    %54 = vector.broadcast %53 : vector<1x8xf32> to vector<8x8xf32>
    %55 = arith.addf %51, %54 : vector<8x8xf32>
    %56 = tpu.transpose %48, [1, 0] : vector<8x8xf32> -> vector<8x8xf32>
    %cst_38 = arith.constant dense<0.000000e+00> : vector<8x8xf32>
    %57 = tpu.matmul %41, %56, %cst_38 {dimension_numbers = #tpu.dot_dimension_numbers<[1], [0], [0], [1], [0, 0, 1, 1], [], []>} : vector<8x8xf32>, vector<8x8xf32>, vector<8x8xf32> -> vector<8x8xf32>
    %cst_39 = arith.constant 0.000000e+00 : f32
    %58 = vector.broadcast %cst_39 : f32 to vector<1x8xf32>
    %59 = arith.cmpf oeq, %32, %58 : vector<1x8xf32>
    %cst_40 = arith.constant -1.000000e+09 : f32
    %60 = vector.shape_cast %59 : vector<1x8xi1> to vector<1x8xi1>
    %61 = vector.broadcast %60 : vector<1x8xi1> to vector<8x8xi1>
    %62 = vector.broadcast %cst_40 : f32 to vector<8x8xf32>
    %63 = arith.select %61, %62, %57 : vector<8x8xi1>, vector<8x8xf32>
    %cst_41 = arith.constant dense<0xFF800000> : vector<8xf32>
    %64 = vector.multi_reduction <maximumf>, %63, %cst_41 [1] : vector<8x8xf32> to vector<8xf32>
    %65 = vector.shape_cast %64 : vector<8xf32> to vector<8x1xf32>
    %66 = vector.broadcast %65 : vector<8x1xf32> to vector<8x8xf32>
    %67 = arith.subf %63, %66 : vector<8x8xf32>
    %68 = math.exp %67 : vector<8x8xf32>
    %cst_42 = arith.constant dense<0.000000e+00> : vector<8xf32>
    %69 = vector.multi_reduction <add>, %68, %cst_42 [1] : vector<8x8xf32> to vector<8xf32>
    %70 = vector.shape_cast %69 : vector<8xf32> to vector<8x1xf32>
    %71 = tpu.reciprocal %70 {approx = true} : vector<8x1xf32> -> vector<8x1xf32>
    %72 = vector.broadcast %71 : vector<8x1xf32> to vector<8x8xf32>
    %73 = arith.mulf %68, %72 : vector<8x8xf32>
    %cst_43 = arith.constant dense<0.000000e+00> : vector<8x8xf32>
    %74 = tpu.matmul %73, %55, %cst_43 {dimension_numbers = #tpu.dot_dimension_numbers<[1], [0], [0], [1], [0, 0, 1, 1], [], []>} : vector<8x8xf32>, vector<8x8xf32>, vector<8x8xf32> -> vector<8x8xf32>
    %75 = arith.truncf %74 : vector<8x8xf32> to vector<8x8xbf16>
    %c0_44 = arith.constant 0 : index
    %c0_45 = arith.constant 0 : index
    %c0_46 = arith.constant 0 : index
    %76 = vector.load %arg11[%c0_44, %c0_45, %c0_46] : memref<4x8x32xbf16, #tpu.memory_space<vmem>>, vector<1x8x32xbf16>
    %77 = vector.shape_cast %76 : vector<1x8x32xbf16> to vector<8x32xbf16>
    %cst_47 = arith.constant dense<0.000000e+00> : vector<8x32xf32>
    %78 = tpu.matmul %75, %77, %cst_47 {dimension_numbers = #tpu.dot_dimension_numbers<[1], [0], [0], [1], [0, 0, 1, 1], [], []>} : vector<8x8xbf16>, vector<8x32xbf16>, vector<8x32xf32> -> vector<8x32xf32>
    %c1 = arith.constant 1 : index
    %c0_48 = arith.constant 0 : index
    %c0_49 = arith.constant 0 : index
    %79 = vector.load %arg5[%c1, %c0_48, %c0_49] : memref<4x32x8xbf16, #tpu.memory_space<vmem>>, vector<1x32x8xbf16>
    %80 = vector.shape_cast %79 : vector<1x32x8xbf16> to vector<32x8xbf16>
    %cst_50 = arith.constant dense<0.000000e+00> : vector<8x8xf32>
    %81 = tpu.matmul %30, %80, %cst_50 {dimension_numbers = #tpu.dot_dimension_numbers<[1], [0], [0], [1], [0, 0, 1, 1], [], []>} : vector<8x32xbf16>, vector<32x8xbf16>, vector<8x8xf32> -> vector<8x8xf32>
    %c1_51 = arith.constant 1 : index
    %c0_52 = arith.constant 0 : index
    %c0_53 = arith.constant 0 : index
    %82 = vector.load %arg6[%c1_51, %c0_52, %c0_53] : memref<4x1x8xf32, #tpu.memory_space<vmem>>, vector<1x1x8xf32>
    %83 = vector.shape_cast %82 : vector<1x1x8xf32> to vector<1x8xf32>
    %84 = vector.broadcast %83 : vector<1x8xf32> to vector<8x8xf32>
    %85 = arith.addf %81, %84 : vector<8x8xf32>
    %cst_54 = arith.constant 0.353553385 : f32
    %86 = vector.broadcast %cst_54 : f32 to vector<8x8xf32>
    %87 = arith.mulf %85, %86 : vector<8x8xf32>
    %c1_55 = arith.constant 1 : index
    %c0_56 = arith.constant 0 : index
    %c0_57 = arith.constant 0 : index
    %88 = vector.load %arg7[%c1_55, %c0_56, %c0_57] : memref<4x32x8xbf16, #tpu.memory_space<vmem>>, vector<1x32x8xbf16>
    %89 = vector.shape_cast %88 : vector<1x32x8xbf16> to vector<32x8xbf16>
    %cst_58 = arith.constant dense<0.000000e+00> : vector<8x8xf32>
    %90 = tpu.matmul %4, %89, %cst_58 {dimension_numbers = #tpu.dot_dimension_numbers<[1], [0], [0], [1], [0, 0, 1, 1], [], []>} : vector<8x32xbf16>, vector<32x8xbf16>, vector<8x8xf32> -> vector<8x8xf32>
    %c1_59 = arith.constant 1 : index
    %c0_60 = arith.constant 0 : index
    %c0_61 = arith.constant 0 : index
    %91 = vector.load %arg8[%c1_59, %c0_60, %c0_61] : memref<4x1x8xf32, #tpu.memory_space<vmem>>, vector<1x1x8xf32>
    %92 = vector.shape_cast %91 : vector<1x1x8xf32> to vector<1x8xf32>
    %93 = vector.broadcast %92 : vector<1x8xf32> to vector<8x8xf32>
    %94 = arith.addf %90, %93 : vector<8x8xf32>
    %c1_62 = arith.constant 1 : index
    %c0_63 = arith.constant 0 : index
    %c0_64 = arith.constant 0 : index
    %95 = vector.load %arg9[%c1_62, %c0_63, %c0_64] : memref<4x32x8xbf16, #tpu.memory_space<vmem>>, vector<1x32x8xbf16>
    %96 = vector.shape_cast %95 : vector<1x32x8xbf16> to vector<32x8xbf16>
    %cst_65 = arith.constant dense<0.000000e+00> : vector<8x8xf32>
    %97 = tpu.matmul %4, %96, %cst_65 {dimension_numbers = #tpu.dot_dimension_numbers<[1], [0], [0], [1], [0, 0, 1, 1], [], []>} : vector<8x32xbf16>, vector<32x8xbf16>, vector<8x8xf32> -> vector<8x8xf32>
    %c1_66 = arith.constant 1 : index
    %c0_67 = arith.constant 0 : index
    %c0_68 = arith.constant 0 : index
    %98 = vector.load %arg10[%c1_66, %c0_67, %c0_68] : memref<4x1x8xf32, #tpu.memory_space<vmem>>, vector<1x1x8xf32>
    %99 = vector.shape_cast %98 : vector<1x1x8xf32> to vector<1x8xf32>
    %100 = vector.broadcast %99 : vector<1x8xf32> to vector<8x8xf32>
    %101 = arith.addf %97, %100 : vector<8x8xf32>
    %102 = tpu.transpose %94, [1, 0] : vector<8x8xf32> -> vector<8x8xf32>
    %cst_69 = arith.constant dense<0.000000e+00> : vector<8x8xf32>
    %103 = tpu.matmul %87, %102, %cst_69 {dimension_numbers = #tpu.dot_dimension_numbers<[1], [0], [0], [1], [0, 0, 1, 1], [], []>} : vector<8x8xf32>, vector<8x8xf32>, vector<8x8xf32> -> vector<8x8xf32>
    %cst_70 = arith.constant 0.000000e+00 : f32
    %104 = vector.broadcast %cst_70 : f32 to vector<1x8xf32>
    %105 = arith.cmpf oeq, %32, %104 : vector<1x8xf32>
    %cst_71 = arith.constant -1.000000e+09 : f32
    %106 = vector.shape_cast %105 : vector<1x8xi1> to vector<1x8xi1>
    %107 = vector.broadcast %106 : vector<1x8xi1> to vector<8x8xi1>
    %108 = vector.broadcast %cst_71 : f32 to vector<8x8xf32>
    %109 = arith.select %107, %108, %103 : vector<8x8xi1>, vector<8x8xf32>
    %cst_72 = arith.constant dense<0xFF800000> : vector<8xf32>
    %110 = vector.multi_reduction <maximumf>, %109, %cst_72 [1] : vector<8x8xf32> to vector<8xf32>
    %111 = vector.shape_cast %110 : vector<8xf32> to vector<8x1xf32>
    %112 = vector.broadcast %111 : vector<8x1xf32> to vector<8x8xf32>
    %113 = arith.subf %109, %112 : vector<8x8xf32>
    %114 = math.exp %113 : vector<8x8xf32>
    %cst_73 = arith.constant dense<0.000000e+00> : vector<8xf32>
    %115 = vector.multi_reduction <add>, %114, %cst_73 [1] : vector<8x8xf32> to vector<8xf32>
    %116 = vector.shape_cast %115 : vector<8xf32> to vector<8x1xf32>
    %117 = tpu.reciprocal %116 {approx = true} : vector<8x1xf32> -> vector<8x1xf32>
    %118 = vector.broadcast %117 : vector<8x1xf32> to vector<8x8xf32>
    %119 = arith.mulf %114, %118 : vector<8x8xf32>
    %cst_74 = arith.constant dense<0.000000e+00> : vector<8x8xf32>
    %120 = tpu.matmul %119, %101, %cst_74 {dimension_numbers = #tpu.dot_dimension_numbers<[1], [0], [0], [1], [0, 0, 1, 1], [], []>} : vector<8x8xf32>, vector<8x8xf32>, vector<8x8xf32> -> vector<8x8xf32>
    %121 = arith.truncf %120 : vector<8x8xf32> to vector<8x8xbf16>
    %c1_75 = arith.constant 1 : index
    %c0_76 = arith.constant 0 : index
    %c0_77 = arith.constant 0 : index
    %122 = vector.load %arg11[%c1_75, %c0_76, %c0_77] : memref<4x8x32xbf16, #tpu.memory_space<vmem>>, vector<1x8x32xbf16>
    %123 = vector.shape_cast %122 : vector<1x8x32xbf16> to vector<8x32xbf16>
    %cst_78 = arith.constant dense<0.000000e+00> : vector<8x32xf32>
    %124 = tpu.matmul %121, %123, %cst_78 {dimension_numbers = #tpu.dot_dimension_numbers<[1], [0], [0], [1], [0, 0, 1, 1], [], []>} : vector<8x8xbf16>, vector<8x32xbf16>, vector<8x32xf32> -> vector<8x32xf32>
    %125 = arith.addf %78, %124 : vector<8x32xf32>
    %c2 = arith.constant 2 : index
    %c0_79 = arith.constant 0 : index
    %c0_80 = arith.constant 0 : index
    %126 = vector.load %arg5[%c2, %c0_79, %c0_80] : memref<4x32x8xbf16, #tpu.memory_space<vmem>>, vector<1x32x8xbf16>
    %127 = vector.shape_cast %126 : vector<1x32x8xbf16> to vector<32x8xbf16>
    %cst_81 = arith.constant dense<0.000000e+00> : vector<8x8xf32>
    %128 = tpu.matmul %30, %127, %cst_81 {dimension_numbers = #tpu.dot_dimension_numbers<[1], [0], [0], [1], [0, 0, 1, 1], [], []>} : vector<8x32xbf16>, vector<32x8xbf16>, vector<8x8xf32> -> vector<8x8xf32>
    %c2_82 = arith.constant 2 : index
    %c0_83 = arith.constant 0 : index
    %c0_84 = arith.constant 0 : index
    %129 = vector.load %arg6[%c2_82, %c0_83, %c0_84] : memref<4x1x8xf32, #tpu.memory_space<vmem>>, vector<1x1x8xf32>
    %130 = vector.shape_cast %129 : vector<1x1x8xf32> to vector<1x8xf32>
    %131 = vector.broadcast %130 : vector<1x8xf32> to vector<8x8xf32>
    %132 = arith.addf %128, %131 : vector<8x8xf32>
    %cst_85 = arith.constant 0.353553385 : f32
    %133 = vector.broadcast %cst_85 : f32 to vector<8x8xf32>
    %134 = arith.mulf %132, %133 : vector<8x8xf32>
    %c2_86 = arith.constant 2 : index
    %c0_87 = arith.constant 0 : index
    %c0_88 = arith.constant 0 : index
    %135 = vector.load %arg7[%c2_86, %c0_87, %c0_88] : memref<4x32x8xbf16, #tpu.memory_space<vmem>>, vector<1x32x8xbf16>
    %136 = vector.shape_cast %135 : vector<1x32x8xbf16> to vector<32x8xbf16>
    %cst_89 = arith.constant dense<0.000000e+00> : vector<8x8xf32>
    %137 = tpu.matmul %4, %136, %cst_89 {dimension_numbers = #tpu.dot_dimension_numbers<[1], [0], [0], [1], [0, 0, 1, 1], [], []>} : vector<8x32xbf16>, vector<32x8xbf16>, vector<8x8xf32> -> vector<8x8xf32>
    %c2_90 = arith.constant 2 : index
    %c0_91 = arith.constant 0 : index
    %c0_92 = arith.constant 0 : index
    %138 = vector.load %arg8[%c2_90, %c0_91, %c0_92] : memref<4x1x8xf32, #tpu.memory_space<vmem>>, vector<1x1x8xf32>
    %139 = vector.shape_cast %138 : vector<1x1x8xf32> to vector<1x8xf32>
    %140 = vector.broadcast %139 : vector<1x8xf32> to vector<8x8xf32>
    %141 = arith.addf %137, %140 : vector<8x8xf32>
    %c2_93 = arith.constant 2 : index
    %c0_94 = arith.constant 0 : index
    %c0_95 = arith.constant 0 : index
    %142 = vector.load %arg9[%c2_93, %c0_94, %c0_95] : memref<4x32x8xbf16, #tpu.memory_space<vmem>>, vector<1x32x8xbf16>
    %143 = vector.shape_cast %142 : vector<1x32x8xbf16> to vector<32x8xbf16>
    %cst_96 = arith.constant dense<0.000000e+00> : vector<8x8xf32>
    %144 = tpu.matmul %4, %143, %cst_96 {dimension_numbers = #tpu.dot_dimension_numbers<[1], [0], [0], [1], [0, 0, 1, 1], [], []>} : vector<8x32xbf16>, vector<32x8xbf16>, vector<8x8xf32> -> vector<8x8xf32>
    %c2_97 = arith.constant 2 : index
    %c0_98 = arith.constant 0 : index
    %c0_99 = arith.constant 0 : index
    %145 = vector.load %arg10[%c2_97, %c0_98, %c0_99] : memref<4x1x8xf32, #tpu.memory_space<vmem>>, vector<1x1x8xf32>
    %146 = vector.shape_cast %145 : vector<1x1x8xf32> to vector<1x8xf32>
    %147 = vector.broadcast %146 : vector<1x8xf32> to vector<8x8xf32>
    %148 = arith.addf %144, %147 : vector<8x8xf32>
    %149 = tpu.transpose %141, [1, 0] : vector<8x8xf32> -> vector<8x8xf32>
    %cst_100 = arith.constant dense<0.000000e+00> : vector<8x8xf32>
    %150 = tpu.matmul %134, %149, %cst_100 {dimension_numbers = #tpu.dot_dimension_numbers<[1], [0], [0], [1], [0, 0, 1, 1], [], []>} : vector<8x8xf32>, vector<8x8xf32>, vector<8x8xf32> -> vector<8x8xf32>
    %cst_101 = arith.constant 0.000000e+00 : f32
    %151 = vector.broadcast %cst_101 : f32 to vector<1x8xf32>
    %152 = arith.cmpf oeq, %32, %151 : vector<1x8xf32>
    %cst_102 = arith.constant -1.000000e+09 : f32
    %153 = vector.shape_cast %152 : vector<1x8xi1> to vector<1x8xi1>
    %154 = vector.broadcast %153 : vector<1x8xi1> to vector<8x8xi1>
    %155 = vector.broadcast %cst_102 : f32 to vector<8x8xf32>
    %156 = arith.select %154, %155, %150 : vector<8x8xi1>, vector<8x8xf32>
    %cst_103 = arith.constant dense<0xFF800000> : vector<8xf32>
    %157 = vector.multi_reduction <maximumf>, %156, %cst_103 [1] : vector<8x8xf32> to vector<8xf32>
    %158 = vector.shape_cast %157 : vector<8xf32> to vector<8x1xf32>
    %159 = vector.broadcast %158 : vector<8x1xf32> to vector<8x8xf32>
    %160 = arith.subf %156, %159 : vector<8x8xf32>
    %161 = math.exp %160 : vector<8x8xf32>
    %cst_104 = arith.constant dense<0.000000e+00> : vector<8xf32>
    %162 = vector.multi_reduction <add>, %161, %cst_104 [1] : vector<8x8xf32> to vector<8xf32>
    %163 = vector.shape_cast %162 : vector<8xf32> to vector<8x1xf32>
    %164 = tpu.reciprocal %163 {approx = true} : vector<8x1xf32> -> vector<8x1xf32>
    %165 = vector.broadcast %164 : vector<8x1xf32> to vector<8x8xf32>
    %166 = arith.mulf %161, %165 : vector<8x8xf32>
    %cst_105 = arith.constant dense<0.000000e+00> : vector<8x8xf32>
    %167 = tpu.matmul %166, %148, %cst_105 {dimension_numbers = #tpu.dot_dimension_numbers<[1], [0], [0], [1], [0, 0, 1, 1], [], []>} : vector<8x8xf32>, vector<8x8xf32>, vector<8x8xf32> -> vector<8x8xf32>
    %168 = arith.truncf %167 : vector<8x8xf32> to vector<8x8xbf16>
    %c2_106 = arith.constant 2 : index
    %c0_107 = arith.constant 0 : index
    %c0_108 = arith.constant 0 : index
    %169 = vector.load %arg11[%c2_106, %c0_107, %c0_108] : memref<4x8x32xbf16, #tpu.memory_space<vmem>>, vector<1x8x32xbf16>
    %170 = vector.shape_cast %169 : vector<1x8x32xbf16> to vector<8x32xbf16>
    %cst_109 = arith.constant dense<0.000000e+00> : vector<8x32xf32>
    %171 = tpu.matmul %168, %170, %cst_109 {dimension_numbers = #tpu.dot_dimension_numbers<[1], [0], [0], [1], [0, 0, 1, 1], [], []>} : vector<8x8xbf16>, vector<8x32xbf16>, vector<8x32xf32> -> vector<8x32xf32>
    %172 = arith.addf %125, %171 : vector<8x32xf32>
    %c3 = arith.constant 3 : index
    %c0_110 = arith.constant 0 : index
    %c0_111 = arith.constant 0 : index
    %173 = vector.load %arg5[%c3, %c0_110, %c0_111] : memref<4x32x8xbf16, #tpu.memory_space<vmem>>, vector<1x32x8xbf16>
    %174 = vector.shape_cast %173 : vector<1x32x8xbf16> to vector<32x8xbf16>
    %cst_112 = arith.constant dense<0.000000e+00> : vector<8x8xf32>
    %175 = tpu.matmul %30, %174, %cst_112 {dimension_numbers = #tpu.dot_dimension_numbers<[1], [0], [0], [1], [0, 0, 1, 1], [], []>} : vector<8x32xbf16>, vector<32x8xbf16>, vector<8x8xf32> -> vector<8x8xf32>
    %c3_113 = arith.constant 3 : index
    %c0_114 = arith.constant 0 : index
    %c0_115 = arith.constant 0 : index
    %176 = vector.load %arg6[%c3_113, %c0_114, %c0_115] : memref<4x1x8xf32, #tpu.memory_space<vmem>>, vector<1x1x8xf32>
    %177 = vector.shape_cast %176 : vector<1x1x8xf32> to vector<1x8xf32>
    %178 = vector.broadcast %177 : vector<1x8xf32> to vector<8x8xf32>
    %179 = arith.addf %175, %178 : vector<8x8xf32>
    %cst_116 = arith.constant 0.353553385 : f32
    %180 = vector.broadcast %cst_116 : f32 to vector<8x8xf32>
    %181 = arith.mulf %179, %180 : vector<8x8xf32>
    %c3_117 = arith.constant 3 : index
    %c0_118 = arith.constant 0 : index
    %c0_119 = arith.constant 0 : index
    %182 = vector.load %arg7[%c3_117, %c0_118, %c0_119] : memref<4x32x8xbf16, #tpu.memory_space<vmem>>, vector<1x32x8xbf16>
    %183 = vector.shape_cast %182 : vector<1x32x8xbf16> to vector<32x8xbf16>
    %cst_120 = arith.constant dense<0.000000e+00> : vector<8x8xf32>
    %184 = tpu.matmul %4, %183, %cst_120 {dimension_numbers = #tpu.dot_dimension_numbers<[1], [0], [0], [1], [0, 0, 1, 1], [], []>} : vector<8x32xbf16>, vector<32x8xbf16>, vector<8x8xf32> -> vector<8x8xf32>
    %c3_121 = arith.constant 3 : index
    %c0_122 = arith.constant 0 : index
    %c0_123 = arith.constant 0 : index
    %185 = vector.load %arg8[%c3_121, %c0_122, %c0_123] : memref<4x1x8xf32, #tpu.memory_space<vmem>>, vector<1x1x8xf32>
    %186 = vector.shape_cast %185 : vector<1x1x8xf32> to vector<1x8xf32>
    %187 = vector.broadcast %186 : vector<1x8xf32> to vector<8x8xf32>
    %188 = arith.addf %184, %187 : vector<8x8xf32>
    %c3_124 = arith.constant 3 : index
    %c0_125 = arith.constant 0 : index
    %c0_126 = arith.constant 0 : index
    %189 = vector.load %arg9[%c3_124, %c0_125, %c0_126] : memref<4x32x8xbf16, #tpu.memory_space<vmem>>, vector<1x32x8xbf16>
    %190 = vector.shape_cast %189 : vector<1x32x8xbf16> to vector<32x8xbf16>
    %cst_127 = arith.constant dense<0.000000e+00> : vector<8x8xf32>
    %191 = tpu.matmul %4, %190, %cst_127 {dimension_numbers = #tpu.dot_dimension_numbers<[1], [0], [0], [1], [0, 0, 1, 1], [], []>} : vector<8x32xbf16>, vector<32x8xbf16>, vector<8x8xf32> -> vector<8x8xf32>
    %c3_128 = arith.constant 3 : index
    %c0_129 = arith.constant 0 : index
    %c0_130 = arith.constant 0 : index
    %192 = vector.load %arg10[%c3_128, %c0_129, %c0_130] : memref<4x1x8xf32, #tpu.memory_space<vmem>>, vector<1x1x8xf32>
    %193 = vector.shape_cast %192 : vector<1x1x8xf32> to vector<1x8xf32>
    %194 = vector.broadcast %193 : vector<1x8xf32> to vector<8x8xf32>
    %195 = arith.addf %191, %194 : vector<8x8xf32>
    %196 = tpu.transpose %188, [1, 0] : vector<8x8xf32> -> vector<8x8xf32>
    %cst_131 = arith.constant dense<0.000000e+00> : vector<8x8xf32>
    %197 = tpu.matmul %181, %196, %cst_131 {dimension_numbers = #tpu.dot_dimension_numbers<[1], [0], [0], [1], [0, 0, 1, 1], [], []>} : vector<8x8xf32>, vector<8x8xf32>, vector<8x8xf32> -> vector<8x8xf32>
    %cst_132 = arith.constant 0.000000e+00 : f32
    %198 = vector.broadcast %cst_132 : f32 to vector<1x8xf32>
    %199 = arith.cmpf oeq, %32, %198 : vector<1x8xf32>
    %cst_133 = arith.constant -1.000000e+09 : f32
    %200 = vector.shape_cast %199 : vector<1x8xi1> to vector<1x8xi1>
    %201 = vector.broadcast %200 : vector<1x8xi1> to vector<8x8xi1>
    %202 = vector.broadcast %cst_133 : f32 to vector<8x8xf32>
    %203 = arith.select %201, %202, %197 : vector<8x8xi1>, vector<8x8xf32>
    %cst_134 = arith.constant dense<0xFF800000> : vector<8xf32>
    %204 = vector.multi_reduction <maximumf>, %203, %cst_134 [1] : vector<8x8xf32> to vector<8xf32>
    %205 = vector.shape_cast %204 : vector<8xf32> to vector<8x1xf32>
    %206 = vector.broadcast %205 : vector<8x1xf32> to vector<8x8xf32>
    %207 = arith.subf %203, %206 : vector<8x8xf32>
    %208 = math.exp %207 : vector<8x8xf32>
    %cst_135 = arith.constant dense<0.000000e+00> : vector<8xf32>
    %209 = vector.multi_reduction <add>, %208, %cst_135 [1] : vector<8x8xf32> to vector<8xf32>
    %210 = vector.shape_cast %209 : vector<8xf32> to vector<8x1xf32>
    %211 = tpu.reciprocal %210 {approx = true} : vector<8x1xf32> -> vector<8x1xf32>
    %212 = vector.broadcast %211 : vector<8x1xf32> to vector<8x8xf32>
    %213 = arith.mulf %208, %212 : vector<8x8xf32>
    %cst_136 = arith.constant dense<0.000000e+00> : vector<8x8xf32>
    %214 = tpu.matmul %213, %195, %cst_136 {dimension_numbers = #tpu.dot_dimension_numbers<[1], [0], [0], [1], [0, 0, 1, 1], [], []>} : vector<8x8xf32>, vector<8x8xf32>, vector<8x8xf32> -> vector<8x8xf32>
    %215 = arith.truncf %214 : vector<8x8xf32> to vector<8x8xbf16>
    %c3_137 = arith.constant 3 : index
    %c0_138 = arith.constant 0 : index
    %c0_139 = arith.constant 0 : index
    %216 = vector.load %arg11[%c3_137, %c0_138, %c0_139] : memref<4x8x32xbf16, #tpu.memory_space<vmem>>, vector<1x8x32xbf16>
    %217 = vector.shape_cast %216 : vector<1x8x32xbf16> to vector<8x32xbf16>
    %cst_140 = arith.constant dense<0.000000e+00> : vector<8x32xf32>
    %218 = tpu.matmul %215, %217, %cst_140 {dimension_numbers = #tpu.dot_dimension_numbers<[1], [0], [0], [1], [0, 0, 1, 1], [], []>} : vector<8x8xbf16>, vector<8x32xbf16>, vector<8x32xf32> -> vector<8x32xf32>
    %219 = arith.addf %172, %218 : vector<8x32xf32>
    %220 = arith.addf %1, %219 : vector<8x32xf32>
    %c0_141 = arith.constant 0 : index
    %c0_142 = arith.constant 0 : index
    %221 = vector.load %arg12[%c0_141, %c0_142] : memref<1x32xf32, #tpu.memory_space<vmem>>, vector<1x32xf32>
    %222 = vector.broadcast %221 : vector<1x32xf32> to vector<8x32xf32>
    %223 = arith.addf %220, %222 : vector<8x32xf32>
    %c0_143 = arith.constant 0 : index
    %c0_144 = arith.constant 0 : index
    %c0_145 = arith.constant 0 : index
    %224 = vector.load %arg14[%c0_143, %c0_144, %c0_145] : memref<1x8x32xf32, #tpu.memory_space<vmem>>, vector<1x8x32xf32>
    %225 = vector.shape_cast %224 : vector<1x8x32xf32> to vector<8x32xf32>
    %226 = vector.shape_cast %223 : vector<8x32xf32> to vector<1x8x32xf32>
    tpu.vector_store %arg14[%c0_143, %c0_144, %c0_145], %226 {strides = array<i32>} : memref<1x8x32xf32, #tpu.memory_space<vmem>>, vector<1x8x32xf32>,
    return
  }
  func.func @transform_0(%arg0: i32) -> (i32, i32, i32) {
    %c0_i32 = arith.constant 0 : i32
    %c0_i32_0 = arith.constant 0 : i32
    %c0_i32_1 = arith.constant 0 : i32
    return %arg0, %c0_i32, %c0_i32_0 : i32, i32, i32
  }
  func.func @transform_1(%arg0: i32) -> (i32, i32, i32) {
    %c0_i32 = arith.constant 0 : i32
    %c0_i32_0 = arith.constant 0 : i32
    %c0_i32_1 = arith.constant 0 : i32
    return %arg0, %c0_i32, %c0_i32_0 : i32, i32, i32
  }
  func.func @transform_2(%arg0: i32) -> (i32, i32) {
    %c0_i32 = arith.constant 0 : i32
    %c0_i32_0 = arith.constant 0 : i32
    %c0_i32_1 = arith.constant 0 : i32
    return %c0_i32, %c0_i32_0 : i32, i32
  }
  func.func @transform_3(%arg0: i32) -> (i32, i32) {
    %c0_i32 = arith.constant 0 : i32
    %c0_i32_0 = arith.constant 0 : i32
    %c0_i32_1 = arith.constant 0 : i32
    return %c0_i32, %c0_i32_0 : i32, i32
  }
  func.func @transform_4(%arg0: i32) -> (i32, i32, i32) {
    %c0_i32 = arith.constant 0 : i32
    %c0_i32_0 = arith.constant 0 : i32
    %c0_i32_1 = arith.constant 0 : i32
    %c0_i32_2 = arith.constant 0 : i32
    return %c0_i32, %c0_i32_0, %c0_i32_1 : i32, i32, i32
  }
  func.func @transform_5(%arg0: i32) -> (i32, i32, i32) {
    %c0_i32 = arith.constant 0 : i32
    %c0_i32_0 = arith.constant 0 : i32
    %c0_i32_1 = arith.constant 0 : i32
    %c0_i32_2 = arith.constant 0 : i32
    return %c0_i32, %c0_i32_0, %c0_i32_1 : i32, i32, i32
  }
  func.func @transform_6(%arg0: i32) -> (i32, i32, i32) {
    %c0_i32 = arith.constant 0 : i32
    %c0_i32_0 = arith.constant 0 : i32
    %c0_i32_1 = arith.constant 0 : i32
    %c0_i32_2 = arith.constant 0 : i32
    return %c0_i32, %c0_i32_0, %c0_i32_1 : i32, i32, i32
  }
  func.func @transform_7(%arg0: i32) -> (i32, i32, i32) {
    %c0_i32 = arith.constant 0 : i32
    %c0_i32_0 = arith.constant 0 : i32
    %c0_i32_1 = arith.constant 0 : i32
    %c0_i32_2 = arith.constant 0 : i32
    return %c0_i32, %c0_i32_0, %c0_i32_1 : i32, i32, i32
  }
  func.func @transform_8(%arg0: i32) -> (i32, i32, i32) {
    %c0_i32 = arith.constant 0 : i32
    %c0_i32_0 = arith.constant 0 : i32
    %c0_i32_1 = arith.constant 0 : i32
    %c0_i32_2 = arith.constant 0 : i32
    return %c0_i32, %c0_i32_0, %c0_i32_1 : i32, i32, i32
  }
  func.func @transform_9(%arg0: i32) -> (i32, i32, i32) {
    %c0_i32 = arith.constant 0 : i32
    %c0_i32_0 = arith.constant 0 : i32
    %c0_i32_1 = arith.constant 0 : i32
    %c0_i32_2 = arith.constant 0 : i32
    return %c0_i32, %c0_i32_0, %c0_i32_1 : i32, i32, i32
  }
  func.func @transform_10(%arg0: i32) -> (i32, i32, i32) {
    %c0_i32 = arith.constant 0 : i32
    %c0_i32_0 = arith.constant 0 : i32
    %c0_i32_1 = arith.constant 0 : i32
    %c0_i32_2 = arith.constant 0 : i32
    return %c0_i32, %c0_i32_0, %c0_i32_1 : i32, i32, i32
  }
  func.func @transform_11(%arg0: i32) -> (i32, i32) {
    %c0_i32 = arith.constant 0 : i32
    %c0_i32_0 = arith.constant 0 : i32
    %c0_i32_1 = arith.constant 0 : i32
    return %c0_i32, %c0_i32_0 : i32, i32
  }
  func.func @transform_12(%arg0: i32) -> (i32, i32, i32) {
    %c0_i32 = arith.constant 0 : i32
    %c0_i32_0 = arith.constant 0 : i32
    %c0_i32_1 = arith.constant 0 : i32
    return %arg0, %c0_i32, %c0_i32_0 : i32, i32, i32
  }
  func.func @transform_13(%arg0: i32) -> (i32, i32, i32) {
    %c0_i32 = arith.constant 0 : i32
    %c0_i32_0 = arith.constant 0 : i32
    %c0_i32_1 = arith.constant 0 : i32
    return %arg0, %c0_i32, %c0_i32_0 : i32, i32, i32
  }
}

module attributes {stable_mosaic.version = 11 : i64} {
  func.func @_self_attn_block_kernel(%arg0: i32, %arg1: memref<1x8x32xf32, #tpu.memory_space<vmem>>, %arg2: memref<1x32xf32, #tpu.memory_space<vmem>>, %arg3: memref<1x32xf32, #tpu.memory_space<vmem>>, %arg4: memref<4x32x8xbf16, #tpu.memory_space<vmem>>, %arg5: memref<4x1x8xf32, #tpu.memory_space<vmem>>, %arg6: memref<4x32x8xbf16, #tpu.memory_space<vmem>>, %arg7: memref<4x1x8xf32, #tpu.memory_space<vmem>>, %arg8: memref<4x32x8xbf16, #tpu.memory_space<vmem>>, %arg9: memref<4x1x8xf32, #tpu.memory_space<vmem>>, %arg10: memref<4x8x32xbf16, #tpu.memory_space<vmem>>, %arg11: memref<1x32xf32, #tpu.memory_space<vmem>>, %arg12: memref<1x8x8xf32, #tpu.memory_space<vmem>>, %arg13: memref<1x8x32xf32, #tpu.memory_space<vmem>>) attributes {dimension_semantics = [#tpu.dimension_semantics<parallel>], iteration_bounds = array<i64: 2>, scalar_prefetch = 0 : i64, scratch_operands = 0 : i64, tpu.core_type = #tpu.core_type<tc>, window_params = [{transform_indices = @transform_0, window_bounds = array<i64: 1, 8, 32>}, {pipeline_mode = #tpu.pipeline_mode<synchronous>, transform_indices = @transform_1, window_bounds = array<i64: 1, 32>}, {pipeline_mode = #tpu.pipeline_mode<synchronous>, transform_indices = @transform_2, window_bounds = array<i64: 1, 32>}, {pipeline_mode = #tpu.pipeline_mode<synchronous>, transform_indices = @transform_3, window_bounds = array<i64: 4, 32, 8>}, {pipeline_mode = #tpu.pipeline_mode<synchronous>, transform_indices = @transform_4, window_bounds = array<i64: 4, 1, 8>}, {pipeline_mode = #tpu.pipeline_mode<synchronous>, transform_indices = @transform_5, window_bounds = array<i64: 4, 32, 8>}, {pipeline_mode = #tpu.pipeline_mode<synchronous>, transform_indices = @transform_6, window_bounds = array<i64: 4, 1, 8>}, {pipeline_mode = #tpu.pipeline_mode<synchronous>, transform_indices = @transform_7, window_bounds = array<i64: 4, 32, 8>}, {pipeline_mode = #tpu.pipeline_mode<synchronous>, transform_indices = @transform_8, window_bounds = array<i64: 4, 1, 8>}, {pipeline_mode = #tpu.pipeline_mode<synchronous>, transform_indices = @transform_9, window_bounds = array<i64: 4, 8, 32>}, {pipeline_mode = #tpu.pipeline_mode<synchronous>, transform_indices = @transform_10, window_bounds = array<i64: 1, 32>}, {pipeline_mode = #tpu.pipeline_mode<synchronous>, transform_indices = @transform_11, window_bounds = array<i64: 1, 8, 8>}, {transform_indices = @transform_12, window_bounds = array<i64: 1, 8, 32>}]} {
    %c0 = arith.constant 0 : index
    %c0_0 = arith.constant 0 : index
    %c0_1 = arith.constant 0 : index
    %0 = vector.load %arg1[%c0, %c0_0, %c0_1] : memref<1x8x32xf32, #tpu.memory_space<vmem>>, vector<1x8x32xf32>
    %1 = vector.shape_cast %0 : vector<1x8x32xf32> to vector<8x32xf32>
    %c0_2 = arith.constant 0 : index
    %c0_3 = arith.constant 0 : index
    %2 = vector.load %arg2[%c0_2, %c0_3] : memref<1x32xf32, #tpu.memory_space<vmem>>, vector<1x32xf32>
    %c0_4 = arith.constant 0 : index
    %c0_5 = arith.constant 0 : index
    %3 = vector.load %arg3[%c0_4, %c0_5] : memref<1x32xf32, #tpu.memory_space<vmem>>, vector<1x32xf32>
    %cst = arith.constant dense<0.000000e+00> : vector<8xf32>
    %4 = vector.multi_reduction <add>, %1, %cst [1] : vector<8x32xf32> to vector<8xf32>
    %5 = vector.shape_cast %4 : vector<8xf32> to vector<8x1xf32>
    %cst_6 = arith.constant 3.200000e+01 : f32
    %6 = vector.broadcast %cst_6 : f32 to vector<8x1xf32>
    %7 = arith.divf %5, %6 : vector<8x1xf32>
    %8 = vector.broadcast %7 : vector<8x1xf32> to vector<8x32xf32>
    %9 = arith.subf %1, %8 : vector<8x32xf32>
    %10 = arith.mulf %9, %9 : vector<8x32xf32>
    %cst_7 = arith.constant dense<0.000000e+00> : vector<8xf32>
    %11 = vector.multi_reduction <add>, %10, %cst_7 [1] : vector<8x32xf32> to vector<8xf32>
    %12 = vector.shape_cast %11 : vector<8xf32> to vector<8x1xf32>
    %cst_8 = arith.constant 0.0322580636 : f32
    %13 = vector.broadcast %cst_8 : f32 to vector<8x1xf32>
    %14 = arith.mulf %12, %13 : vector<8x1xf32>
    %15 = math.sqrt %14 : vector<8x1xf32>
    %cst_9 = arith.constant 9.99999997E-7 : f32
    %16 = vector.broadcast %cst_9 : f32 to vector<8x1xf32>
    %17 = arith.addf %15, %16 : vector<8x1xf32>
    %18 = tpu.reciprocal %17 {approx = true} : vector<8x1xf32> -> vector<8x1xf32>
    %19 = vector.broadcast %7 : vector<8x1xf32> to vector<8x32xf32>
    %20 = arith.subf %1, %19 : vector<8x32xf32>
    %21 = vector.broadcast %2 : vector<1x32xf32> to vector<8x32xf32>
    %22 = arith.mulf %21, %20 : vector<8x32xf32>
    %23 = vector.broadcast %18 : vector<8x1xf32> to vector<8x32xf32>
    %24 = arith.mulf %22, %23 : vector<8x32xf32>
    %25 = vector.broadcast %3 : vector<1x32xf32> to vector<8x32xf32>
    %26 = arith.addf %24, %25 : vector<8x32xf32>
    %27 = arith.truncf %26 : vector<8x32xf32> to vector<8x32xbf16>
    %c0_10 = arith.constant 0 : index
    %c0_11 = arith.constant 0 : index
    %c0_12 = arith.constant 0 : index
    %28 = vector.load %arg12[%c0_10, %c0_11, %c0_12] : memref<1x8x8xf32, #tpu.memory_space<vmem>>, vector<1x8x8xf32>
    %29 = vector.shape_cast %28 : vector<1x8x8xf32> to vector<8x8xf32>
    %c0_13 = arith.constant 0 : index
    %c0_14 = arith.constant 0 : index
    %c0_15 = arith.constant 0 : index
    %30 = vector.load %arg4[%c0_13, %c0_14, %c0_15] : memref<4x32x8xbf16, #tpu.memory_space<vmem>>, vector<1x32x8xbf16>
    %31 = vector.shape_cast %30 : vector<1x32x8xbf16> to vector<32x8xbf16>
    %cst_16 = arith.constant dense<0.000000e+00> : vector<8x8xf32>
    %32 = tpu.matmul %27, %31, %cst_16 {dimension_numbers = #tpu.dot_dimension_numbers<[1], [0], [0], [1], [0, 0, 1, 1], [], []>} : vector<8x32xbf16>, vector<32x8xbf16>, vector<8x8xf32> -> vector<8x8xf32>
    %c0_17 = arith.constant 0 : index
    %c0_18 = arith.constant 0 : index
    %c0_19 = arith.constant 0 : index
    %33 = vector.load %arg5[%c0_17, %c0_18, %c0_19] : memref<4x1x8xf32, #tpu.memory_space<vmem>>, vector<1x1x8xf32>
    %34 = vector.shape_cast %33 : vector<1x1x8xf32> to vector<1x8xf32>
    %35 = vector.broadcast %34 : vector<1x8xf32> to vector<8x8xf32>
    %36 = arith.addf %32, %35 : vector<8x8xf32>
    %cst_20 = arith.constant 0.353553385 : f32
    %37 = vector.broadcast %cst_20 : f32 to vector<8x8xf32>
    %38 = arith.mulf %36, %37 : vector<8x8xf32>
    %c0_21 = arith.constant 0 : index
    %c0_22 = arith.constant 0 : index
    %c0_23 = arith.constant 0 : index
    %39 = vector.load %arg6[%c0_21, %c0_22, %c0_23] : memref<4x32x8xbf16, #tpu.memory_space<vmem>>, vector<1x32x8xbf16>
    %40 = vector.shape_cast %39 : vector<1x32x8xbf16> to vector<32x8xbf16>
    %cst_24 = arith.constant dense<0.000000e+00> : vector<8x8xf32>
    %41 = tpu.matmul %27, %40, %cst_24 {dimension_numbers = #tpu.dot_dimension_numbers<[1], [0], [0], [1], [0, 0, 1, 1], [], []>} : vector<8x32xbf16>, vector<32x8xbf16>, vector<8x8xf32> -> vector<8x8xf32>
    %c0_25 = arith.constant 0 : index
    %c0_26 = arith.constant 0 : index
    %c0_27 = arith.constant 0 : index
    %42 = vector.load %arg7[%c0_25, %c0_26, %c0_27] : memref<4x1x8xf32, #tpu.memory_space<vmem>>, vector<1x1x8xf32>
    %43 = vector.shape_cast %42 : vector<1x1x8xf32> to vector<1x8xf32>
    %44 = vector.broadcast %43 : vector<1x8xf32> to vector<8x8xf32>
    %45 = arith.addf %41, %44 : vector<8x8xf32>
    %c0_28 = arith.constant 0 : index
    %c0_29 = arith.constant 0 : index
    %c0_30 = arith.constant 0 : index
    %46 = vector.load %arg8[%c0_28, %c0_29, %c0_30] : memref<4x32x8xbf16, #tpu.memory_space<vmem>>, vector<1x32x8xbf16>
    %47 = vector.shape_cast %46 : vector<1x32x8xbf16> to vector<32x8xbf16>
    %cst_31 = arith.constant dense<0.000000e+00> : vector<8x8xf32>
    %48 = tpu.matmul %27, %47, %cst_31 {dimension_numbers = #tpu.dot_dimension_numbers<[1], [0], [0], [1], [0, 0, 1, 1], [], []>} : vector<8x32xbf16>, vector<32x8xbf16>, vector<8x8xf32> -> vector<8x8xf32>
    %c0_32 = arith.constant 0 : index
    %c0_33 = arith.constant 0 : index
    %c0_34 = arith.constant 0 : index
    %49 = vector.load %arg9[%c0_32, %c0_33, %c0_34] : memref<4x1x8xf32, #tpu.memory_space<vmem>>, vector<1x1x8xf32>
    %50 = vector.shape_cast %49 : vector<1x1x8xf32> to vector<1x8xf32>
    %51 = vector.broadcast %50 : vector<1x8xf32> to vector<8x8xf32>
    %52 = arith.addf %48, %51 : vector<8x8xf32>
    %53 = tpu.transpose %45, [1, 0] : vector<8x8xf32> -> vector<8x8xf32>
    %cst_35 = arith.constant dense<0.000000e+00> : vector<8x8xf32>
    %54 = tpu.matmul %38, %53, %cst_35 {dimension_numbers = #tpu.dot_dimension_numbers<[1], [0], [0], [1], [0, 0, 1, 1], [], []>} : vector<8x8xf32>, vector<8x8xf32>, vector<8x8xf32> -> vector<8x8xf32>
    %cst_36 = arith.constant 0.000000e+00 : f32
    %55 = vector.broadcast %cst_36 : f32 to vector<8x8xf32>
    %56 = arith.cmpf oeq, %29, %55 : vector<8x8xf32>
    %cst_37 = arith.constant -1.000000e+09 : f32
    %57 = vector.broadcast %cst_37 : f32 to vector<8x8xf32>
    %58 = arith.select %56, %57, %54 : vector<8x8xi1>, vector<8x8xf32>
    %cst_38 = arith.constant dense<0xFF800000> : vector<8xf32>
    %59 = vector.multi_reduction <maximumf>, %58, %cst_38 [1] : vector<8x8xf32> to vector<8xf32>
    %60 = vector.shape_cast %59 : vector<8xf32> to vector<8x1xf32>
    %61 = vector.broadcast %60 : vector<8x1xf32> to vector<8x8xf32>
    %62 = arith.subf %58, %61 : vector<8x8xf32>
    %63 = math.exp %62 : vector<8x8xf32>
    %cst_39 = arith.constant dense<0.000000e+00> : vector<8xf32>
    %64 = vector.multi_reduction <add>, %63, %cst_39 [1] : vector<8x8xf32> to vector<8xf32>
    %65 = vector.shape_cast %64 : vector<8xf32> to vector<8x1xf32>
    %66 = tpu.reciprocal %65 {approx = true} : vector<8x1xf32> -> vector<8x1xf32>
    %67 = vector.broadcast %66 : vector<8x1xf32> to vector<8x8xf32>
    %68 = arith.mulf %63, %67 : vector<8x8xf32>
    %cst_40 = arith.constant dense<0.000000e+00> : vector<8x8xf32>
    %69 = tpu.matmul %68, %52, %cst_40 {dimension_numbers = #tpu.dot_dimension_numbers<[1], [0], [0], [1], [0, 0, 1, 1], [], []>} : vector<8x8xf32>, vector<8x8xf32>, vector<8x8xf32> -> vector<8x8xf32>
    %70 = arith.truncf %69 : vector<8x8xf32> to vector<8x8xbf16>
    %c0_41 = arith.constant 0 : index
    %c0_42 = arith.constant 0 : index
    %c0_43 = arith.constant 0 : index
    %71 = vector.load %arg10[%c0_41, %c0_42, %c0_43] : memref<4x8x32xbf16, #tpu.memory_space<vmem>>, vector<1x8x32xbf16>
    %72 = vector.shape_cast %71 : vector<1x8x32xbf16> to vector<8x32xbf16>
    %cst_44 = arith.constant dense<0.000000e+00> : vector<8x32xf32>
    %73 = tpu.matmul %70, %72, %cst_44 {dimension_numbers = #tpu.dot_dimension_numbers<[1], [0], [0], [1], [0, 0, 1, 1], [], []>} : vector<8x8xbf16>, vector<8x32xbf16>, vector<8x32xf32> -> vector<8x32xf32>
    %c1 = arith.constant 1 : index
    %c0_45 = arith.constant 0 : index
    %c0_46 = arith.constant 0 : index
    %74 = vector.load %arg4[%c1, %c0_45, %c0_46] : memref<4x32x8xbf16, #tpu.memory_space<vmem>>, vector<1x32x8xbf16>
    %75 = vector.shape_cast %74 : vector<1x32x8xbf16> to vector<32x8xbf16>
    %cst_47 = arith.constant dense<0.000000e+00> : vector<8x8xf32>
    %76 = tpu.matmul %27, %75, %cst_47 {dimension_numbers = #tpu.dot_dimension_numbers<[1], [0], [0], [1], [0, 0, 1, 1], [], []>} : vector<8x32xbf16>, vector<32x8xbf16>, vector<8x8xf32> -> vector<8x8xf32>
    %c1_48 = arith.constant 1 : index
    %c0_49 = arith.constant 0 : index
    %c0_50 = arith.constant 0 : index
    %77 = vector.load %arg5[%c1_48, %c0_49, %c0_50] : memref<4x1x8xf32, #tpu.memory_space<vmem>>, vector<1x1x8xf32>
    %78 = vector.shape_cast %77 : vector<1x1x8xf32> to vector<1x8xf32>
    %79 = vector.broadcast %78 : vector<1x8xf32> to vector<8x8xf32>
    %80 = arith.addf %76, %79 : vector<8x8xf32>
    %cst_51 = arith.constant 0.353553385 : f32
    %81 = vector.broadcast %cst_51 : f32 to vector<8x8xf32>
    %82 = arith.mulf %80, %81 : vector<8x8xf32>
    %c1_52 = arith.constant 1 : index
    %c0_53 = arith.constant 0 : index
    %c0_54 = arith.constant 0 : index
    %83 = vector.load %arg6[%c1_52, %c0_53, %c0_54] : memref<4x32x8xbf16, #tpu.memory_space<vmem>>, vector<1x32x8xbf16>
    %84 = vector.shape_cast %83 : vector<1x32x8xbf16> to vector<32x8xbf16>
    %cst_55 = arith.constant dense<0.000000e+00> : vector<8x8xf32>
    %85 = tpu.matmul %27, %84, %cst_55 {dimension_numbers = #tpu.dot_dimension_numbers<[1], [0], [0], [1], [0, 0, 1, 1], [], []>} : vector<8x32xbf16>, vector<32x8xbf16>, vector<8x8xf32> -> vector<8x8xf32>
    %c1_56 = arith.constant 1 : index
    %c0_57 = arith.constant 0 : index
    %c0_58 = arith.constant 0 : index
    %86 = vector.load %arg7[%c1_56, %c0_57, %c0_58] : memref<4x1x8xf32, #tpu.memory_space<vmem>>, vector<1x1x8xf32>
    %87 = vector.shape_cast %86 : vector<1x1x8xf32> to vector<1x8xf32>
    %88 = vector.broadcast %87 : vector<1x8xf32> to vector<8x8xf32>
    %89 = arith.addf %85, %88 : vector<8x8xf32>
    %c1_59 = arith.constant 1 : index
    %c0_60 = arith.constant 0 : index
    %c0_61 = arith.constant 0 : index
    %90 = vector.load %arg8[%c1_59, %c0_60, %c0_61] : memref<4x32x8xbf16, #tpu.memory_space<vmem>>, vector<1x32x8xbf16>
    %91 = vector.shape_cast %90 : vector<1x32x8xbf16> to vector<32x8xbf16>
    %cst_62 = arith.constant dense<0.000000e+00> : vector<8x8xf32>
    %92 = tpu.matmul %27, %91, %cst_62 {dimension_numbers = #tpu.dot_dimension_numbers<[1], [0], [0], [1], [0, 0, 1, 1], [], []>} : vector<8x32xbf16>, vector<32x8xbf16>, vector<8x8xf32> -> vector<8x8xf32>
    %c1_63 = arith.constant 1 : index
    %c0_64 = arith.constant 0 : index
    %c0_65 = arith.constant 0 : index
    %93 = vector.load %arg9[%c1_63, %c0_64, %c0_65] : memref<4x1x8xf32, #tpu.memory_space<vmem>>, vector<1x1x8xf32>
    %94 = vector.shape_cast %93 : vector<1x1x8xf32> to vector<1x8xf32>
    %95 = vector.broadcast %94 : vector<1x8xf32> to vector<8x8xf32>
    %96 = arith.addf %92, %95 : vector<8x8xf32>
    %97 = tpu.transpose %89, [1, 0] : vector<8x8xf32> -> vector<8x8xf32>
    %cst_66 = arith.constant dense<0.000000e+00> : vector<8x8xf32>
    %98 = tpu.matmul %82, %97, %cst_66 {dimension_numbers = #tpu.dot_dimension_numbers<[1], [0], [0], [1], [0, 0, 1, 1], [], []>} : vector<8x8xf32>, vector<8x8xf32>, vector<8x8xf32> -> vector<8x8xf32>
    %cst_67 = arith.constant 0.000000e+00 : f32
    %99 = vector.broadcast %cst_67 : f32 to vector<8x8xf32>
    %100 = arith.cmpf oeq, %29, %99 : vector<8x8xf32>
    %cst_68 = arith.constant -1.000000e+09 : f32
    %101 = vector.broadcast %cst_68 : f32 to vector<8x8xf32>
    %102 = arith.select %100, %101, %98 : vector<8x8xi1>, vector<8x8xf32>
    %cst_69 = arith.constant dense<0xFF800000> : vector<8xf32>
    %103 = vector.multi_reduction <maximumf>, %102, %cst_69 [1] : vector<8x8xf32> to vector<8xf32>
    %104 = vector.shape_cast %103 : vector<8xf32> to vector<8x1xf32>
    %105 = vector.broadcast %104 : vector<8x1xf32> to vector<8x8xf32>
    %106 = arith.subf %102, %105 : vector<8x8xf32>
    %107 = math.exp %106 : vector<8x8xf32>
    %cst_70 = arith.constant dense<0.000000e+00> : vector<8xf32>
    %108 = vector.multi_reduction <add>, %107, %cst_70 [1] : vector<8x8xf32> to vector<8xf32>
    %109 = vector.shape_cast %108 : vector<8xf32> to vector<8x1xf32>
    %110 = tpu.reciprocal %109 {approx = true} : vector<8x1xf32> -> vector<8x1xf32>
    %111 = vector.broadcast %110 : vector<8x1xf32> to vector<8x8xf32>
    %112 = arith.mulf %107, %111 : vector<8x8xf32>
    %cst_71 = arith.constant dense<0.000000e+00> : vector<8x8xf32>
    %113 = tpu.matmul %112, %96, %cst_71 {dimension_numbers = #tpu.dot_dimension_numbers<[1], [0], [0], [1], [0, 0, 1, 1], [], []>} : vector<8x8xf32>, vector<8x8xf32>, vector<8x8xf32> -> vector<8x8xf32>
    %114 = arith.truncf %113 : vector<8x8xf32> to vector<8x8xbf16>
    %c1_72 = arith.constant 1 : index
    %c0_73 = arith.constant 0 : index
    %c0_74 = arith.constant 0 : index
    %115 = vector.load %arg10[%c1_72, %c0_73, %c0_74] : memref<4x8x32xbf16, #tpu.memory_space<vmem>>, vector<1x8x32xbf16>
    %116 = vector.shape_cast %115 : vector<1x8x32xbf16> to vector<8x32xbf16>
    %cst_75 = arith.constant dense<0.000000e+00> : vector<8x32xf32>
    %117 = tpu.matmul %114, %116, %cst_75 {dimension_numbers = #tpu.dot_dimension_numbers<[1], [0], [0], [1], [0, 0, 1, 1], [], []>} : vector<8x8xbf16>, vector<8x32xbf16>, vector<8x32xf32> -> vector<8x32xf32>
    %118 = arith.addf %73, %117 : vector<8x32xf32>
    %c2 = arith.constant 2 : index
    %c0_76 = arith.constant 0 : index
    %c0_77 = arith.constant 0 : index
    %119 = vector.load %arg4[%c2, %c0_76, %c0_77] : memref<4x32x8xbf16, #tpu.memory_space<vmem>>, vector<1x32x8xbf16>
    %120 = vector.shape_cast %119 : vector<1x32x8xbf16> to vector<32x8xbf16>
    %cst_78 = arith.constant dense<0.000000e+00> : vector<8x8xf32>
    %121 = tpu.matmul %27, %120, %cst_78 {dimension_numbers = #tpu.dot_dimension_numbers<[1], [0], [0], [1], [0, 0, 1, 1], [], []>} : vector<8x32xbf16>, vector<32x8xbf16>, vector<8x8xf32> -> vector<8x8xf32>
    %c2_79 = arith.constant 2 : index
    %c0_80 = arith.constant 0 : index
    %c0_81 = arith.constant 0 : index
    %122 = vector.load %arg5[%c2_79, %c0_80, %c0_81] : memref<4x1x8xf32, #tpu.memory_space<vmem>>, vector<1x1x8xf32>
    %123 = vector.shape_cast %122 : vector<1x1x8xf32> to vector<1x8xf32>
    %124 = vector.broadcast %123 : vector<1x8xf32> to vector<8x8xf32>
    %125 = arith.addf %121, %124 : vector<8x8xf32>
    %cst_82 = arith.constant 0.353553385 : f32
    %126 = vector.broadcast %cst_82 : f32 to vector<8x8xf32>
    %127 = arith.mulf %125, %126 : vector<8x8xf32>
    %c2_83 = arith.constant 2 : index
    %c0_84 = arith.constant 0 : index
    %c0_85 = arith.constant 0 : index
    %128 = vector.load %arg6[%c2_83, %c0_84, %c0_85] : memref<4x32x8xbf16, #tpu.memory_space<vmem>>, vector<1x32x8xbf16>
    %129 = vector.shape_cast %128 : vector<1x32x8xbf16> to vector<32x8xbf16>
    %cst_86 = arith.constant dense<0.000000e+00> : vector<8x8xf32>
    %130 = tpu.matmul %27, %129, %cst_86 {dimension_numbers = #tpu.dot_dimension_numbers<[1], [0], [0], [1], [0, 0, 1, 1], [], []>} : vector<8x32xbf16>, vector<32x8xbf16>, vector<8x8xf32> -> vector<8x8xf32>
    %c2_87 = arith.constant 2 : index
    %c0_88 = arith.constant 0 : index
    %c0_89 = arith.constant 0 : index
    %131 = vector.load %arg7[%c2_87, %c0_88, %c0_89] : memref<4x1x8xf32, #tpu.memory_space<vmem>>, vector<1x1x8xf32>
    %132 = vector.shape_cast %131 : vector<1x1x8xf32> to vector<1x8xf32>
    %133 = vector.broadcast %132 : vector<1x8xf32> to vector<8x8xf32>
    %134 = arith.addf %130, %133 : vector<8x8xf32>
    %c2_90 = arith.constant 2 : index
    %c0_91 = arith.constant 0 : index
    %c0_92 = arith.constant 0 : index
    %135 = vector.load %arg8[%c2_90, %c0_91, %c0_92] : memref<4x32x8xbf16, #tpu.memory_space<vmem>>, vector<1x32x8xbf16>
    %136 = vector.shape_cast %135 : vector<1x32x8xbf16> to vector<32x8xbf16>
    %cst_93 = arith.constant dense<0.000000e+00> : vector<8x8xf32>
    %137 = tpu.matmul %27, %136, %cst_93 {dimension_numbers = #tpu.dot_dimension_numbers<[1], [0], [0], [1], [0, 0, 1, 1], [], []>} : vector<8x32xbf16>, vector<32x8xbf16>, vector<8x8xf32> -> vector<8x8xf32>
    %c2_94 = arith.constant 2 : index
    %c0_95 = arith.constant 0 : index
    %c0_96 = arith.constant 0 : index
    %138 = vector.load %arg9[%c2_94, %c0_95, %c0_96] : memref<4x1x8xf32, #tpu.memory_space<vmem>>, vector<1x1x8xf32>
    %139 = vector.shape_cast %138 : vector<1x1x8xf32> to vector<1x8xf32>
    %140 = vector.broadcast %139 : vector<1x8xf32> to vector<8x8xf32>
    %141 = arith.addf %137, %140 : vector<8x8xf32>
    %142 = tpu.transpose %134, [1, 0] : vector<8x8xf32> -> vector<8x8xf32>
    %cst_97 = arith.constant dense<0.000000e+00> : vector<8x8xf32>
    %143 = tpu.matmul %127, %142, %cst_97 {dimension_numbers = #tpu.dot_dimension_numbers<[1], [0], [0], [1], [0, 0, 1, 1], [], []>} : vector<8x8xf32>, vector<8x8xf32>, vector<8x8xf32> -> vector<8x8xf32>
    %cst_98 = arith.constant 0.000000e+00 : f32
    %144 = vector.broadcast %cst_98 : f32 to vector<8x8xf32>
    %145 = arith.cmpf oeq, %29, %144 : vector<8x8xf32>
    %cst_99 = arith.constant -1.000000e+09 : f32
    %146 = vector.broadcast %cst_99 : f32 to vector<8x8xf32>
    %147 = arith.select %145, %146, %143 : vector<8x8xi1>, vector<8x8xf32>
    %cst_100 = arith.constant dense<0xFF800000> : vector<8xf32>
    %148 = vector.multi_reduction <maximumf>, %147, %cst_100 [1] : vector<8x8xf32> to vector<8xf32>
    %149 = vector.shape_cast %148 : vector<8xf32> to vector<8x1xf32>
    %150 = vector.broadcast %149 : vector<8x1xf32> to vector<8x8xf32>
    %151 = arith.subf %147, %150 : vector<8x8xf32>
    %152 = math.exp %151 : vector<8x8xf32>
    %cst_101 = arith.constant dense<0.000000e+00> : vector<8xf32>
    %153 = vector.multi_reduction <add>, %152, %cst_101 [1] : vector<8x8xf32> to vector<8xf32>
    %154 = vector.shape_cast %153 : vector<8xf32> to vector<8x1xf32>
    %155 = tpu.reciprocal %154 {approx = true} : vector<8x1xf32> -> vector<8x1xf32>
    %156 = vector.broadcast %155 : vector<8x1xf32> to vector<8x8xf32>
    %157 = arith.mulf %152, %156 : vector<8x8xf32>
    %cst_102 = arith.constant dense<0.000000e+00> : vector<8x8xf32>
    %158 = tpu.matmul %157, %141, %cst_102 {dimension_numbers = #tpu.dot_dimension_numbers<[1], [0], [0], [1], [0, 0, 1, 1], [], []>} : vector<8x8xf32>, vector<8x8xf32>, vector<8x8xf32> -> vector<8x8xf32>
    %159 = arith.truncf %158 : vector<8x8xf32> to vector<8x8xbf16>
    %c2_103 = arith.constant 2 : index
    %c0_104 = arith.constant 0 : index
    %c0_105 = arith.constant 0 : index
    %160 = vector.load %arg10[%c2_103, %c0_104, %c0_105] : memref<4x8x32xbf16, #tpu.memory_space<vmem>>, vector<1x8x32xbf16>
    %161 = vector.shape_cast %160 : vector<1x8x32xbf16> to vector<8x32xbf16>
    %cst_106 = arith.constant dense<0.000000e+00> : vector<8x32xf32>
    %162 = tpu.matmul %159, %161, %cst_106 {dimension_numbers = #tpu.dot_dimension_numbers<[1], [0], [0], [1], [0, 0, 1, 1], [], []>} : vector<8x8xbf16>, vector<8x32xbf16>, vector<8x32xf32> -> vector<8x32xf32>
    %163 = arith.addf %118, %162 : vector<8x32xf32>
    %c3 = arith.constant 3 : index
    %c0_107 = arith.constant 0 : index
    %c0_108 = arith.constant 0 : index
    %164 = vector.load %arg4[%c3, %c0_107, %c0_108] : memref<4x32x8xbf16, #tpu.memory_space<vmem>>, vector<1x32x8xbf16>
    %165 = vector.shape_cast %164 : vector<1x32x8xbf16> to vector<32x8xbf16>
    %cst_109 = arith.constant dense<0.000000e+00> : vector<8x8xf32>
    %166 = tpu.matmul %27, %165, %cst_109 {dimension_numbers = #tpu.dot_dimension_numbers<[1], [0], [0], [1], [0, 0, 1, 1], [], []>} : vector<8x32xbf16>, vector<32x8xbf16>, vector<8x8xf32> -> vector<8x8xf32>
    %c3_110 = arith.constant 3 : index
    %c0_111 = arith.constant 0 : index
    %c0_112 = arith.constant 0 : index
    %167 = vector.load %arg5[%c3_110, %c0_111, %c0_112] : memref<4x1x8xf32, #tpu.memory_space<vmem>>, vector<1x1x8xf32>
    %168 = vector.shape_cast %167 : vector<1x1x8xf32> to vector<1x8xf32>
    %169 = vector.broadcast %168 : vector<1x8xf32> to vector<8x8xf32>
    %170 = arith.addf %166, %169 : vector<8x8xf32>
    %cst_113 = arith.constant 0.353553385 : f32
    %171 = vector.broadcast %cst_113 : f32 to vector<8x8xf32>
    %172 = arith.mulf %170, %171 : vector<8x8xf32>
    %c3_114 = arith.constant 3 : index
    %c0_115 = arith.constant 0 : index
    %c0_116 = arith.constant 0 : index
    %173 = vector.load %arg6[%c3_114, %c0_115, %c0_116] : memref<4x32x8xbf16, #tpu.memory_space<vmem>>, vector<1x32x8xbf16>
    %174 = vector.shape_cast %173 : vector<1x32x8xbf16> to vector<32x8xbf16>
    %cst_117 = arith.constant dense<0.000000e+00> : vector<8x8xf32>
    %175 = tpu.matmul %27, %174, %cst_117 {dimension_numbers = #tpu.dot_dimension_numbers<[1], [0], [0], [1], [0, 0, 1, 1], [], []>} : vector<8x32xbf16>, vector<32x8xbf16>, vector<8x8xf32> -> vector<8x8xf32>
    %c3_118 = arith.constant 3 : index
    %c0_119 = arith.constant 0 : index
    %c0_120 = arith.constant 0 : index
    %176 = vector.load %arg7[%c3_118, %c0_119, %c0_120] : memref<4x1x8xf32, #tpu.memory_space<vmem>>, vector<1x1x8xf32>
    %177 = vector.shape_cast %176 : vector<1x1x8xf32> to vector<1x8xf32>
    %178 = vector.broadcast %177 : vector<1x8xf32> to vector<8x8xf32>
    %179 = arith.addf %175, %178 : vector<8x8xf32>
    %c3_121 = arith.constant 3 : index
    %c0_122 = arith.constant 0 : index
    %c0_123 = arith.constant 0 : index
    %180 = vector.load %arg8[%c3_121, %c0_122, %c0_123] : memref<4x32x8xbf16, #tpu.memory_space<vmem>>, vector<1x32x8xbf16>
    %181 = vector.shape_cast %180 : vector<1x32x8xbf16> to vector<32x8xbf16>
    %cst_124 = arith.constant dense<0.000000e+00> : vector<8x8xf32>
    %182 = tpu.matmul %27, %181, %cst_124 {dimension_numbers = #tpu.dot_dimension_numbers<[1], [0], [0], [1], [0, 0, 1, 1], [], []>} : vector<8x32xbf16>, vector<32x8xbf16>, vector<8x8xf32> -> vector<8x8xf32>
    %c3_125 = arith.constant 3 : index
    %c0_126 = arith.constant 0 : index
    %c0_127 = arith.constant 0 : index
    %183 = vector.load %arg9[%c3_125, %c0_126, %c0_127] : memref<4x1x8xf32, #tpu.memory_space<vmem>>, vector<1x1x8xf32>
    %184 = vector.shape_cast %183 : vector<1x1x8xf32> to vector<1x8xf32>
    %185 = vector.broadcast %184 : vector<1x8xf32> to vector<8x8xf32>
    %186 = arith.addf %182, %185 : vector<8x8xf32>
    %187 = tpu.transpose %179, [1, 0] : vector<8x8xf32> -> vector<8x8xf32>
    %cst_128 = arith.constant dense<0.000000e+00> : vector<8x8xf32>
    %188 = tpu.matmul %172, %187, %cst_128 {dimension_numbers = #tpu.dot_dimension_numbers<[1], [0], [0], [1], [0, 0, 1, 1], [], []>} : vector<8x8xf32>, vector<8x8xf32>, vector<8x8xf32> -> vector<8x8xf32>
    %cst_129 = arith.constant 0.000000e+00 : f32
    %189 = vector.broadcast %cst_129 : f32 to vector<8x8xf32>
    %190 = arith.cmpf oeq, %29, %189 : vector<8x8xf32>
    %cst_130 = arith.constant -1.000000e+09 : f32
    %191 = vector.broadcast %cst_130 : f32 to vector<8x8xf32>
    %192 = arith.select %190, %191, %188 : vector<8x8xi1>, vector<8x8xf32>
    %cst_131 = arith.constant dense<0xFF800000> : vector<8xf32>
    %193 = vector.multi_reduction <maximumf>, %192, %cst_131 [1] : vector<8x8xf32> to vector<8xf32>
    %194 = vector.shape_cast %193 : vector<8xf32> to vector<8x1xf32>
    %195 = vector.broadcast %194 : vector<8x1xf32> to vector<8x8xf32>
    %196 = arith.subf %192, %195 : vector<8x8xf32>
    %197 = math.exp %196 : vector<8x8xf32>
    %cst_132 = arith.constant dense<0.000000e+00> : vector<8xf32>
    %198 = vector.multi_reduction <add>, %197, %cst_132 [1] : vector<8x8xf32> to vector<8xf32>
    %199 = vector.shape_cast %198 : vector<8xf32> to vector<8x1xf32>
    %200 = tpu.reciprocal %199 {approx = true} : vector<8x1xf32> -> vector<8x1xf32>
    %201 = vector.broadcast %200 : vector<8x1xf32> to vector<8x8xf32>
    %202 = arith.mulf %197, %201 : vector<8x8xf32>
    %cst_133 = arith.constant dense<0.000000e+00> : vector<8x8xf32>
    %203 = tpu.matmul %202, %186, %cst_133 {dimension_numbers = #tpu.dot_dimension_numbers<[1], [0], [0], [1], [0, 0, 1, 1], [], []>} : vector<8x8xf32>, vector<8x8xf32>, vector<8x8xf32> -> vector<8x8xf32>
    %204 = arith.truncf %203 : vector<8x8xf32> to vector<8x8xbf16>
    %c3_134 = arith.constant 3 : index
    %c0_135 = arith.constant 0 : index
    %c0_136 = arith.constant 0 : index
    %205 = vector.load %arg10[%c3_134, %c0_135, %c0_136] : memref<4x8x32xbf16, #tpu.memory_space<vmem>>, vector<1x8x32xbf16>
    %206 = vector.shape_cast %205 : vector<1x8x32xbf16> to vector<8x32xbf16>
    %cst_137 = arith.constant dense<0.000000e+00> : vector<8x32xf32>
    %207 = tpu.matmul %204, %206, %cst_137 {dimension_numbers = #tpu.dot_dimension_numbers<[1], [0], [0], [1], [0, 0, 1, 1], [], []>} : vector<8x8xbf16>, vector<8x32xbf16>, vector<8x32xf32> -> vector<8x32xf32>
    %208 = arith.addf %163, %207 : vector<8x32xf32>
    %209 = arith.addf %1, %208 : vector<8x32xf32>
    %c0_138 = arith.constant 0 : index
    %c0_139 = arith.constant 0 : index
    %210 = vector.load %arg11[%c0_138, %c0_139] : memref<1x32xf32, #tpu.memory_space<vmem>>, vector<1x32xf32>
    %211 = vector.broadcast %210 : vector<1x32xf32> to vector<8x32xf32>
    %212 = arith.addf %209, %211 : vector<8x32xf32>
    %c0_140 = arith.constant 0 : index
    %c0_141 = arith.constant 0 : index
    %c0_142 = arith.constant 0 : index
    %213 = vector.load %arg13[%c0_140, %c0_141, %c0_142] : memref<1x8x32xf32, #tpu.memory_space<vmem>>, vector<1x8x32xf32>
    %214 = vector.shape_cast %213 : vector<1x8x32xf32> to vector<8x32xf32>
    %215 = vector.shape_cast %212 : vector<8x32xf32> to vector<1x8x32xf32>
    tpu.vector_store %arg13[%c0_140, %c0_141, %c0_142], %215 {strides = array<i32>} : memref<1x8x32xf32, #tpu.memory_space<vmem>>, vector<1x8x32xf32>,
    return
  }
  func.func @transform_0(%arg0: i32) -> (i32, i32, i32) {
    %c0_i32 = arith.constant 0 : i32
    %c0_i32_0 = arith.constant 0 : i32
    %c0_i32_1 = arith.constant 0 : i32
    return %arg0, %c0_i32, %c0_i32_0 : i32, i32, i32
  }
  func.func @transform_1(%arg0: i32) -> (i32, i32) {
    %c0_i32 = arith.constant 0 : i32
    %c0_i32_0 = arith.constant 0 : i32
    %c0_i32_1 = arith.constant 0 : i32
    return %c0_i32, %c0_i32_0 : i32, i32
  }
  func.func @transform_2(%arg0: i32) -> (i32, i32) {
    %c0_i32 = arith.constant 0 : i32
    %c0_i32_0 = arith.constant 0 : i32
    %c0_i32_1 = arith.constant 0 : i32
    return %c0_i32, %c0_i32_0 : i32, i32
  }
  func.func @transform_3(%arg0: i32) -> (i32, i32, i32) {
    %c0_i32 = arith.constant 0 : i32
    %c0_i32_0 = arith.constant 0 : i32
    %c0_i32_1 = arith.constant 0 : i32
    %c0_i32_2 = arith.constant 0 : i32
    return %c0_i32, %c0_i32_0, %c0_i32_1 : i32, i32, i32
  }
  func.func @transform_4(%arg0: i32) -> (i32, i32, i32) {
    %c0_i32 = arith.constant 0 : i32
    %c0_i32_0 = arith.constant 0 : i32
    %c0_i32_1 = arith.constant 0 : i32
    %c0_i32_2 = arith.constant 0 : i32
    return %c0_i32, %c0_i32_0, %c0_i32_1 : i32, i32, i32
  }
  func.func @transform_5(%arg0: i32) -> (i32, i32, i32) {
    %c0_i32 = arith.constant 0 : i32
    %c0_i32_0 = arith.constant 0 : i32
    %c0_i32_1 = arith.constant 0 : i32
    %c0_i32_2 = arith.constant 0 : i32
    return %c0_i32, %c0_i32_0, %c0_i32_1 : i32, i32, i32
  }
  func.func @transform_6(%arg0: i32) -> (i32, i32, i32) {
    %c0_i32 = arith.constant 0 : i32
    %c0_i32_0 = arith.constant 0 : i32
    %c0_i32_1 = arith.constant 0 : i32
    %c0_i32_2 = arith.constant 0 : i32
    return %c0_i32, %c0_i32_0, %c0_i32_1 : i32, i32, i32
  }
  func.func @transform_7(%arg0: i32) -> (i32, i32, i32) {
    %c0_i32 = arith.constant 0 : i32
    %c0_i32_0 = arith.constant 0 : i32
    %c0_i32_1 = arith.constant 0 : i32
    %c0_i32_2 = arith.constant 0 : i32
    return %c0_i32, %c0_i32_0, %c0_i32_1 : i32, i32, i32
  }
  func.func @transform_8(%arg0: i32) -> (i32, i32, i32) {
    %c0_i32 = arith.constant 0 : i32
    %c0_i32_0 = arith.constant 0 : i32
    %c0_i32_1 = arith.constant 0 : i32
    %c0_i32_2 = arith.constant 0 : i32
    return %c0_i32, %c0_i32_0, %c0_i32_1 : i32, i32, i32
  }
  func.func @transform_9(%arg0: i32) -> (i32, i32, i32) {
    %c0_i32 = arith.constant 0 : i32
    %c0_i32_0 = arith.constant 0 : i32
    %c0_i32_1 = arith.constant 0 : i32
    %c0_i32_2 = arith.constant 0 : i32
    return %c0_i32, %c0_i32_0, %c0_i32_1 : i32, i32, i32
  }
  func.func @transform_10(%arg0: i32) -> (i32, i32) {
    %c0_i32 = arith.constant 0 : i32
    %c0_i32_0 = arith.constant 0 : i32
    %c0_i32_1 = arith.constant 0 : i32
    return %c0_i32, %c0_i32_0 : i32, i32
  }
  func.func @transform_11(%arg0: i32) -> (i32, i32, i32) {
    %c0_i32 = arith.constant 0 : i32
    %c0_i32_0 = arith.constant 0 : i32
    %c0_i32_1 = arith.constant 0 : i32
    %c0_i32_2 = arith.constant 0 : i32
    return %c0_i32, %c0_i32_0, %c0_i32_1 : i32, i32, i32
  }
  func.func @transform_12(%arg0: i32) -> (i32, i32, i32) {
    %c0_i32 = arith.constant 0 : i32
    %c0_i32_0 = arith.constant 0 : i32
    %c0_i32_1 = arith.constant 0 : i32
    return %arg0, %c0_i32, %c0_i32_0 : i32, i32, i32
  }
}

module attributes {stable_mosaic.version = 11 : i64} {
  func.func @_ffn_block_kernel(%arg0: i32, %arg1: memref<1x8x32xf32, #tpu.memory_space<vmem>>, %arg2: memref<1x32xf32, #tpu.memory_space<vmem>>, %arg3: memref<1x32xf32, #tpu.memory_space<vmem>>, %arg4: memref<32x64xbf16, #tpu.memory_space<vmem>>, %arg5: memref<1x64xf32, #tpu.memory_space<vmem>>, %arg6: memref<64x32xbf16, #tpu.memory_space<vmem>>, %arg7: memref<1x32xf32, #tpu.memory_space<vmem>>, %arg8: memref<1x8x32xf32, #tpu.memory_space<vmem>>) attributes {dimension_semantics = [#tpu.dimension_semantics<parallel>], iteration_bounds = array<i64: 2>, scalar_prefetch = 0 : i64, scratch_operands = 0 : i64, tpu.core_type = #tpu.core_type<tc>, window_params = [{transform_indices = @transform_0, window_bounds = array<i64: 1, 8, 32>}, {pipeline_mode = #tpu.pipeline_mode<synchronous>, transform_indices = @transform_1, window_bounds = array<i64: 1, 32>}, {pipeline_mode = #tpu.pipeline_mode<synchronous>, transform_indices = @transform_2, window_bounds = array<i64: 1, 32>}, {pipeline_mode = #tpu.pipeline_mode<synchronous>, transform_indices = @transform_3, window_bounds = array<i64: 32, 64>}, {pipeline_mode = #tpu.pipeline_mode<synchronous>, transform_indices = @transform_4, window_bounds = array<i64: 1, 64>}, {pipeline_mode = #tpu.pipeline_mode<synchronous>, transform_indices = @transform_5, window_bounds = array<i64: 64, 32>}, {pipeline_mode = #tpu.pipeline_mode<synchronous>, transform_indices = @transform_6, window_bounds = array<i64: 1, 32>}, {transform_indices = @transform_7, window_bounds = array<i64: 1, 8, 32>}]} {
    %c0 = arith.constant 0 : index
    %c0_0 = arith.constant 0 : index
    %c0_1 = arith.constant 0 : index
    %0 = vector.load %arg1[%c0, %c0_0, %c0_1] : memref<1x8x32xf32, #tpu.memory_space<vmem>>, vector<1x8x32xf32>
    %1 = vector.shape_cast %0 : vector<1x8x32xf32> to vector<8x32xf32>
    %c0_2 = arith.constant 0 : index
    %c0_3 = arith.constant 0 : index
    %2 = vector.load %arg2[%c0_2, %c0_3] : memref<1x32xf32, #tpu.memory_space<vmem>>, vector<1x32xf32>
    %c0_4 = arith.constant 0 : index
    %c0_5 = arith.constant 0 : index
    %3 = vector.load %arg3[%c0_4, %c0_5] : memref<1x32xf32, #tpu.memory_space<vmem>>, vector<1x32xf32>
    %cst = arith.constant dense<0.000000e+00> : vector<8xf32>
    %4 = vector.multi_reduction <add>, %1, %cst [1] : vector<8x32xf32> to vector<8xf32>
    %5 = vector.shape_cast %4 : vector<8xf32> to vector<8x1xf32>
    %cst_6 = arith.constant 3.200000e+01 : f32
    %6 = vector.broadcast %cst_6 : f32 to vector<8x1xf32>
    %7 = arith.divf %5, %6 : vector<8x1xf32>
    %8 = vector.broadcast %7 : vector<8x1xf32> to vector<8x32xf32>
    %9 = arith.subf %1, %8 : vector<8x32xf32>
    %10 = arith.mulf %9, %9 : vector<8x32xf32>
    %cst_7 = arith.constant dense<0.000000e+00> : vector<8xf32>
    %11 = vector.multi_reduction <add>, %10, %cst_7 [1] : vector<8x32xf32> to vector<8xf32>
    %12 = vector.shape_cast %11 : vector<8xf32> to vector<8x1xf32>
    %cst_8 = arith.constant 0.0322580636 : f32
    %13 = vector.broadcast %cst_8 : f32 to vector<8x1xf32>
    %14 = arith.mulf %12, %13 : vector<8x1xf32>
    %15 = math.sqrt %14 : vector<8x1xf32>
    %cst_9 = arith.constant 9.99999997E-7 : f32
    %16 = vector.broadcast %cst_9 : f32 to vector<8x1xf32>
    %17 = arith.addf %15, %16 : vector<8x1xf32>
    %18 = tpu.reciprocal %17 {approx = true} : vector<8x1xf32> -> vector<8x1xf32>
    %19 = vector.broadcast %7 : vector<8x1xf32> to vector<8x32xf32>
    %20 = arith.subf %1, %19 : vector<8x32xf32>
    %21 = vector.broadcast %2 : vector<1x32xf32> to vector<8x32xf32>
    %22 = arith.mulf %21, %20 : vector<8x32xf32>
    %23 = vector.broadcast %18 : vector<8x1xf32> to vector<8x32xf32>
    %24 = arith.mulf %22, %23 : vector<8x32xf32>
    %25 = vector.broadcast %3 : vector<1x32xf32> to vector<8x32xf32>
    %26 = arith.addf %24, %25 : vector<8x32xf32>
    %27 = arith.truncf %26 : vector<8x32xf32> to vector<8x32xbf16>
    %c0_10 = arith.constant 0 : index
    %c0_11 = arith.constant 0 : index
    %28 = vector.load %arg4[%c0_10, %c0_11] : memref<32x64xbf16, #tpu.memory_space<vmem>>, vector<32x64xbf16>
    %cst_12 = arith.constant dense<0.000000e+00> : vector<8x64xf32>
    %29 = tpu.matmul %27, %28, %cst_12 {dimension_numbers = #tpu.dot_dimension_numbers<[1], [0], [0], [1], [0, 0, 1, 1], [], []>} : vector<8x32xbf16>, vector<32x64xbf16>, vector<8x64xf32> -> vector<8x64xf32>
    %c0_13 = arith.constant 0 : index
    %c0_14 = arith.constant 0 : index
    %30 = vector.load %arg5[%c0_13, %c0_14] : memref<1x64xf32, #tpu.memory_space<vmem>>, vector<1x64xf32>
    %31 = vector.broadcast %30 : vector<1x64xf32> to vector<8x64xf32>
    %32 = arith.addf %29, %31 : vector<8x64xf32>
    %cst_15 = arith.constant 0.000000e+00 : f32
    %33 = vector.broadcast %cst_15 : f32 to vector<8x64xf32>
    %34 = arith.maximumf %32, %33 : vector<8x64xf32>
    %35 = arith.truncf %34 : vector<8x64xf32> to vector<8x64xbf16>
    %c0_16 = arith.constant 0 : index
    %c0_17 = arith.constant 0 : index
    %36 = vector.load %arg6[%c0_16, %c0_17] : memref<64x32xbf16, #tpu.memory_space<vmem>>, vector<64x32xbf16>
    %cst_18 = arith.constant dense<0.000000e+00> : vector<8x32xf32>
    %37 = tpu.matmul %35, %36, %cst_18 {dimension_numbers = #tpu.dot_dimension_numbers<[1], [0], [0], [1], [0, 0, 1, 1], [], []>} : vector<8x64xbf16>, vector<64x32xbf16>, vector<8x32xf32> -> vector<8x32xf32>
    %c0_19 = arith.constant 0 : index
    %c0_20 = arith.constant 0 : index
    %38 = vector.load %arg7[%c0_19, %c0_20] : memref<1x32xf32, #tpu.memory_space<vmem>>, vector<1x32xf32>
    %39 = vector.broadcast %38 : vector<1x32xf32> to vector<8x32xf32>
    %40 = arith.addf %37, %39 : vector<8x32xf32>
    %41 = arith.addf %1, %40 : vector<8x32xf32>
    %c0_21 = arith.constant 0 : index
    %c0_22 = arith.constant 0 : index
    %c0_23 = arith.constant 0 : index
    %42 = vector.load %arg8[%c0_21, %c0_22, %c0_23] : memref<1x8x32xf32, #tpu.memory_space<vmem>>, vector<1x8x32xf32>
    %43 = vector.shape_cast %42 : vector<1x8x32xf32> to vector<8x32xf32>
    %44 = vector.shape_cast %41 : vector<8x32xf32> to vector<1x8x32xf32>
    tpu.vector_store %arg8[%c0_21, %c0_22, %c0_23], %44 {strides = array<i32>} : memref<1x8x32xf32, #tpu.memory_space<vmem>>, vector<1x8x32xf32>,
    return
  }
  func.func @transform_0(%arg0: i32) -> (i32, i32, i32) {
    %c0_i32 = arith.constant 0 : i32
    %c0_i32_0 = arith.constant 0 : i32
    %c0_i32_1 = arith.constant 0 : i32
    return %arg0, %c0_i32, %c0_i32_0 : i32, i32, i32
  }
  func.func @transform_1(%arg0: i32) -> (i32, i32) {
    %c0_i32 = arith.constant 0 : i32
    %c0_i32_0 = arith.constant 0 : i32
    %c0_i32_1 = arith.constant 0 : i32
    return %c0_i32, %c0_i32_0 : i32, i32
  }
  func.func @transform_2(%arg0: i32) -> (i32, i32) {
    %c0_i32 = arith.constant 0 : i32
    %c0_i32_0 = arith.constant 0 : i32
    %c0_i32_1 = arith.constant 0 : i32
    return %c0_i32, %c0_i32_0 : i32, i32
  }
  func.func @transform_3(%arg0: i32) -> (i32, i32) {
    %c0_i32 = arith.constant 0 : i32
    %c0_i32_0 = arith.constant 0 : i32
    %c0_i32_1 = arith.constant 0 : i32
    return %c0_i32, %c0_i32_0 : i32, i32
  }
  func.func @transform_4(%arg0: i32) -> (i32, i32) {
    %c0_i32 = arith.constant 0 : i32
    %c0_i32_0 = arith.constant 0 : i32
    %c0_i32_1 = arith.constant 0 : i32
    return %c0_i32, %c0_i32_0 : i32, i32
  }
  func.func @transform_5(%arg0: i32) -> (i32, i32) {
    %c0_i32 = arith.constant 0 : i32
    %c0_i32_0 = arith.constant 0 : i32
    %c0_i32_1 = arith.constant 0 : i32
    return %c0_i32, %c0_i32_0 : i32, i32
  }
  func.func @transform_6(%arg0: i32) -> (i32, i32) {
    %c0_i32 = arith.constant 0 : i32
    %c0_i32_0 = arith.constant 0 : i32
    %c0_i32_1 = arith.constant 0 : i32
    return %c0_i32, %c0_i32_0 : i32, i32
  }
  func.func @transform_7(%arg0: i32) -> (i32, i32, i32) {
    %c0_i32 = arith.constant 0 : i32
    %c0_i32_0 = arith.constant 0 : i32
    %c0_i32_1 = arith.constant 0 : i32
    return %arg0, %c0_i32, %c0_i32_0 : i32, i32, i32
  }
}

module attributes {stable_mosaic.version = 11 : i64} {
  func.func @_final_norm_kernel(%arg0: i32, %arg1: memref<1x8x32xf32, #tpu.memory_space<vmem>>, %arg2: memref<1x32xf32, #tpu.memory_space<vmem>>, %arg3: memref<1x32xf32, #tpu.memory_space<vmem>>, %arg4: memref<1x8x32xf32, #tpu.memory_space<vmem>>) attributes {dimension_semantics = [#tpu.dimension_semantics<parallel>], iteration_bounds = array<i64: 2>, scalar_prefetch = 0 : i64, scratch_operands = 0 : i64, tpu.core_type = #tpu.core_type<tc>, window_params = [{transform_indices = @transform_0, window_bounds = array<i64: 1, 8, 32>}, {pipeline_mode = #tpu.pipeline_mode<synchronous>, transform_indices = @transform_1, window_bounds = array<i64: 1, 32>}, {pipeline_mode = #tpu.pipeline_mode<synchronous>, transform_indices = @transform_2, window_bounds = array<i64: 1, 32>}, {transform_indices = @transform_3, window_bounds = array<i64: 1, 8, 32>}]} {
    %c0 = arith.constant 0 : index
    %c0_0 = arith.constant 0 : index
    %c0_1 = arith.constant 0 : index
    %0 = vector.load %arg1[%c0, %c0_0, %c0_1] : memref<1x8x32xf32, #tpu.memory_space<vmem>>, vector<1x8x32xf32>
    %1 = vector.shape_cast %0 : vector<1x8x32xf32> to vector<8x32xf32>
    %c0_2 = arith.constant 0 : index
    %c0_3 = arith.constant 0 : index
    %2 = vector.load %arg2[%c0_2, %c0_3] : memref<1x32xf32, #tpu.memory_space<vmem>>, vector<1x32xf32>
    %c0_4 = arith.constant 0 : index
    %c0_5 = arith.constant 0 : index
    %3 = vector.load %arg3[%c0_4, %c0_5] : memref<1x32xf32, #tpu.memory_space<vmem>>, vector<1x32xf32>
    %cst = arith.constant dense<0.000000e+00> : vector<8xf32>
    %4 = vector.multi_reduction <add>, %1, %cst [1] : vector<8x32xf32> to vector<8xf32>
    %5 = vector.shape_cast %4 : vector<8xf32> to vector<8x1xf32>
    %cst_6 = arith.constant 3.200000e+01 : f32
    %6 = vector.broadcast %cst_6 : f32 to vector<8x1xf32>
    %7 = arith.divf %5, %6 : vector<8x1xf32>
    %8 = vector.broadcast %7 : vector<8x1xf32> to vector<8x32xf32>
    %9 = arith.subf %1, %8 : vector<8x32xf32>
    %10 = arith.mulf %9, %9 : vector<8x32xf32>
    %cst_7 = arith.constant dense<0.000000e+00> : vector<8xf32>
    %11 = vector.multi_reduction <add>, %10, %cst_7 [1] : vector<8x32xf32> to vector<8xf32>
    %12 = vector.shape_cast %11 : vector<8xf32> to vector<8x1xf32>
    %cst_8 = arith.constant 0.0322580636 : f32
    %13 = vector.broadcast %cst_8 : f32 to vector<8x1xf32>
    %14 = arith.mulf %12, %13 : vector<8x1xf32>
    %15 = math.sqrt %14 : vector<8x1xf32>
    %cst_9 = arith.constant 9.99999997E-7 : f32
    %16 = vector.broadcast %cst_9 : f32 to vector<8x1xf32>
    %17 = arith.addf %15, %16 : vector<8x1xf32>
    %18 = tpu.reciprocal %17 {approx = true} : vector<8x1xf32> -> vector<8x1xf32>
    %19 = vector.broadcast %7 : vector<8x1xf32> to vector<8x32xf32>
    %20 = arith.subf %1, %19 : vector<8x32xf32>
    %21 = vector.broadcast %2 : vector<1x32xf32> to vector<8x32xf32>
    %22 = arith.mulf %21, %20 : vector<8x32xf32>
    %23 = vector.broadcast %18 : vector<8x1xf32> to vector<8x32xf32>
    %24 = arith.mulf %22, %23 : vector<8x32xf32>
    %25 = vector.broadcast %3 : vector<1x32xf32> to vector<8x32xf32>
    %26 = arith.addf %24, %25 : vector<8x32xf32>
    %c0_10 = arith.constant 0 : index
    %c0_11 = arith.constant 0 : index
    %c0_12 = arith.constant 0 : index
    %27 = vector.load %arg4[%c0_10, %c0_11, %c0_12] : memref<1x8x32xf32, #tpu.memory_space<vmem>>, vector<1x8x32xf32>
    %28 = vector.shape_cast %27 : vector<1x8x32xf32> to vector<8x32xf32>
    %29 = vector.shape_cast %26 : vector<8x32xf32> to vector<1x8x32xf32>
    tpu.vector_store %arg4[%c0_10, %c0_11, %c0_12], %29 {strides = array<i32>} : memref<1x8x32xf32, #tpu.memory_space<vmem>>, vector<1x8x32xf32>,
    return
  }
  func.func @transform_0(%arg0: i32) -> (i32, i32, i32) {
    %c0_i32 = arith.constant 0 : i32
    %c0_i32_0 = arith.constant 0 : i32
    %c0_i32_1 = arith.constant 0 : i32
    return %arg0, %c0_i32, %c0_i32_0 : i32, i32, i32
  }
  func.func @transform_1(%arg0: i32) -> (i32, i32) {
    %c0_i32 = arith.constant 0 : i32
    %c0_i32_0 = arith.constant 0 : i32
    %c0_i32_1 = arith.constant 0 : i32
    return %c0_i32, %c0_i32_0 : i32, i32
  }
  func.func @transform_2(%arg0: i32) -> (i32, i32) {
    %c0_i32 = arith.constant 0 : i32
    %c0_i32_0 = arith.constant 0 : i32
    %c0_i32_1 = arith.constant 0 : i32
    return %c0_i32, %c0_i32_0 : i32, i32
  }
  func.func @transform_3(%arg0: i32) -> (i32, i32, i32) {
    %c0_i32 = arith.constant 0 : i32
    %c0_i32_0 = arith.constant 0 : i32
    %c0_i32_1 = arith.constant 0 : i32
    return %arg0, %c0_i32, %c0_i32_0 : i32, i32, i32
  }
}

</mosaic_0001>

<bundles_post_ra>
// kernel: decoder_forward.9
= control target key start
LH: loop header
LB: loop body
LE: loop exit
PB: predicated region body
PF: predicated region fallthrough
CT: control target
= control target key end

     0   :  { %s640_s24 = smov 0   ;;  %s703_s0 = inlined_call_operand.vmem [shape: f32[2,8,32], index: 0, kind: input, shape index: {}]   ;;  %s704_s1 = inlined_call_operand.vmem [shape: f32[1,32], index: 1, kind: input, shape index: {}]   ;;  %s705_s2 = inlined_call_operand.vmem [shape: f32[1,32], index: 2, kind: input, shape index: {}]   ;;  %s706_s3 = inlined_call_operand.vmem [shape: bf16[32,64], index: 3, kind: input, shape index: {}]   ;;  %s707_s4 = inlined_call_operand.vmem [shape: f32[1,64], index: 4, kind: input, shape index: {}]   ;;  %s708_s5 = inlined_call_operand.vmem [shape: bf16[64,32], index: 5, kind: input, shape index: {}]   ;;  %s709_s6 = inlined_call_operand.vmem [shape: f32[1,32], index: 6, kind: input, shape index: {}]   ;;  %s710_s7 = inlined_call_operand.vmem [shape: f32[2,8,32], index: 7, kind: output, shape index: {}]  }
   0x1 LB: > { %s521_s25 = sadd.s32 4294967295, %s596_s24   ;;  %p525_p0 = scmp.ge.s32.totalorder %s596_s24, 1  ;;  %s596_s24 = sphi %s640_s24, %s17_s24  }
   0x2   : > { %p236_p1 = scmp.lt.s32.totalorder %s596_s24, 3 }
   0x4   : > { %p237_p2 = pnand %p525_p0, %p236_p1 }
   0x5   : > { %p266_p3 = scmp.lt.s32.totalorder (!%p237_p2), %s521_s25, 1  ;;  %vm278_vm0 = vcmask (!%p237_p2), 261120   ;;  %v580_v7 = vld [vmem:[%s706_s3] sm:$0xff] (!%p237_p2)   ;;  %v598_v8 = vmov (!%p237_p2), 0.0   ;;  %vm599_vm1 = vmmov (!%p237_p2), 0   ;;  %v581_v9 = vld [vmem:[%s706_s3 + $0x8] sm:$0xff] (!%p237_p2)  }
   0x6   : > { %240 = sbr.rel (%p237_p2) target bundleno = 780 (0x30c), region = 48  ;;  %550 = vmatprep.subr.bf16.mxu0 (!%p237_p2), %v598_v8  ;;  %554 = vmatprep.mubr.msk.bf16.mxu0 (!%p237_p2), %vm599_vm1, %v598_v8  ;;  %v582_v10 = vld [vmem:[%s708_s5] sm:$0xff] (!%p237_p2)   ;;  %v583_v11 = vld [vmem:[%s708_s5 + $0x8] sm:$0xff] (!%p237_p2)   ;;  %v584_v27 = vld [vmem:[%s708_s5 + $0x10] sm:$0xff] (!%p237_p2)   ;;  %vm422_vm4 = vcmask (!%p237_p2), 523264  }
   0x7   : > { %551 = vmatpush3.bf16.msra.mxu0 (!%p237_p2), %v580_v7  ;;  %558 = vmatprep.subr.bf16.mxu1 (!%p237_p2), %v598_v8  ;;  %v528_v20 = vld [vmem:[%s704_s1] ss:$0 sm:$0xff] (!%p237_p2)  ;;  %v585_v28 = vld [vmem:[%s708_s5 + $0x18] sm:$0xff] (!%p237_p2)  }
   0x8   : > { %552 = vmatprep.subr.bf16.mxu0 (!%p237_p2), %v598_v8  ;;  %566 = vmatprep.mubr.msk.bf16.mxu1 (!%p237_p2), %vm599_vm1, %v598_v8  ;;  %v529_v23 = vld [vmem:[%s705_s2] ss:$0 sm:$0xff] (!%p237_p2) }
   0x9   : > { %559 = vmatpush3.bf16.msra.mxu1 (!%p237_p2), %v582_v10  ;;  %v530_v29 = vld [vmem:[%s707_s4] ss:$0 sm:$0xff] (!%p237_p2) }
   0xa   : > { %560 = vmatprep.subr.bf16.mxu1 (!%p237_p2), %v598_v8  ;;  %v534_v37 = vld [vmem:[%s709_s6] ss:$0 sm:$0xff] (!%p237_p2) }
   0xb   : > { %553 = vmatpush3.bf16.msra.mxu0 (!%p237_p2), %v581_v9 }
   0xd   : > { %s712_s25 = smov (!%p266_p3, %s521_s25), 1  ;;  %561 = vmatpush3.bf16.msra.mxu1 %v583_v11 }
   0xe   : > { %s526_s26 = sshll.u32 %s712_s25, 3  ;;  %562 = vmatprep.subr.bf16.mxu1 %v598_v8 }
   0xf   : > { %s269_s29 = scalar_lea.vmem %s703_s0, %s526_s26  ;;  %s273_s9 = scalar_lea.vmem %s710_s7, %s526_s26 }
  0x10   : > { %v656_v0 = vld [vmem:[%s269_s29] sm:$0xff] }
  0x11   : > { %v279_v1 = vsel %vm278_vm0, %v656_v0, 0.0  ;;  %563 = vmatpush3.bf16.msra.mxu1 %v584_v27 }
  0x12   : > { %280 = vadd.xlane.f32.xlu0 %v279_v1  ;;  %564 = vmatprep.subr.bf16.mxu1 %v598_v8 }
  0x15   : > { %565 = vmatpush3.bf16.msra.mxu1 %v585_v28 }
  0x9f   : > { %v281_v2 = vpop.xlane.xlu0 %280 }
  0xa0   : > { %v283_v3 = vmul.f32 0.03125, %v281_v2 }
  0xa2   : > { %v284_v4 = vsub.f32 %v656_v0, %v283_v3 }
  0xa4   : > { %v285_v5 = vmul.f32 %v284_v4, %v284_v4  ;;  %v305_v21 = vmul.f32 %v528_v20, %v284_v4 }
  0xa6   : > { %v286_v6 = vsel %vm278_vm0, %v285_v5, 0.0 }
  0xa7   : > { %287 = vadd.xlane.f32.xlu0 %v286_v6 }
 0x134   : > { %v288_v12 = vpop.xlane.xlu0 %287 }
 0x135   : > { %v289_v13 = vmul.f32 0.032258064, %v288_v12 }
 0x137   : > { %586 = vrsqrt.f32 %v289_v13  ;;  %vm292_vm2 = vcmp.eq.f32.partialorder %v289_v13, inf  ;;  %v295_v16 = vand.u32 2147483648, %v289_v13  ;;  %vm294_vm3 = vcmp.eq.f32.partialorder %v289_v13, 0.0 }
 0x141   : > { %v587_v14 = vpop.eup %586 }
 0x142   : > { %v291_v15 = vmul.f32 %v587_v14, %v289_v13 }
 0x144   : > { %v293_v17 = vsel %vm292_vm2, %v289_v13, %v291_v15 }
 0x145   : > { %v296_v18 = vsel %vm294_vm3, %v295_v16, %v293_v17 }
 0x146   : > { %v297_v19 = vadd.f32 1e-06, %v296_v18 }
 0x148   : > { %588 = vrcp.f32 %v297_v19 }
 0x152   : > { %v589_v22 = vpop.eup %588 }
 0x153   : > { %v306_v24 = vmul.f32 %v589_v22, %v305_v21 }
 0x155   : > { %v313_v25 = vadd.f32 %v529_v23, %v306_v24 }
 0x157   : > { %v314_v26 = vpack.c.bf16 %v313_v25, %v313_v25 }
 0x159   : > { %555 = vmatmul.mubr.msk.bf16.vlgmr.msra.gmra.mrb[0].mxu0 %vm278_vm0, %v314_v26 }
 0x22c   : > { %v375_v30 = vpop.f32.mrb[0].mxu0 }
 0x22d   : > { %v376_v31 = vadd.f32 %v530_v29, %v375_v30  ;;  %v556_v32 = vpop.f32.mrb[1].mxu0 }
 0x22e   : > { %v378_v33 = vpop.f32.mrb[2].mxu0 }
 0x22f   : > { %v381_v34 = vmax.f32 %v376_v31, 0.0  ;;  %v557_v35 = vpop.f32.mrb[3].mxu0 }
 0x231   : > { %v382_v36 = vpack.c.bf16 %v381_v34, %v381_v34 }
 0x233   : > { %567 = vmatmul.mubr.msk.bf16.vlgmr.msra.gmra.mrb[0].mxu1 %vm422_vm4, %v382_v36 }
 0x306   : > { %v460_v38 = vpop.f32.mrb[0].mxu1 }
 0x307   : > { %v461_v39 = vadd.f32 %v534_v37, %v460_v38  ;;  %v568_v40 = vpop.f32.mrb[1].mxu1 }
 0x308   : > { %v463_v41 = vpop.f32.mrb[2].mxu1 }
 0x309   : > { %v466_v42 = vadd.f32 %v461_v39, %v656_v0  ;;  %v569_v43 = vpop.f32.mrb[3].mxu1 }
 0x30b   : > { %467 = vst.msk [vmem:[%s273_s9] sm:$0xff] %vm278_vm0, %v466_v42 }
 0x30c PF: > { %s17_s24 = sadd.s32 1, %s596_s24  }
 0x30d   : > { %p14_p4 = scmp.ge.s32.totalorder %s17_s24, 4  }
 0x30f   :  { %16 = sbr.rel (!%p14_p4) target bundleno = 1 (0x1), region = 78 }

// kernel: decoder_forward.13
= control target key start
LH: loop header
LB: loop body
LE: loop exit
PB: predicated region body
PF: predicated region fallthrough
CT: control target
= control target key end

     0   :  { %8 = vsyncpa [#allocation3], 0  ;;  %s528_s0 = inlined_call_operand.vmem [shape: f32[2,8,32], index: 0, kind: input, shape index: {}]   ;;  %s529_s1 = inlined_call_operand.vmem [shape: f32[1,32], index: 1, kind: input, shape index: {}]   ;;  %s530_s2 = inlined_call_operand.vmem [shape: f32[1,32], index: 2, kind: input, shape index: {}]   ;;  %s531_s3 = inlined_call_operand.hbm [shape: f32[2,8,32], index: 3, kind: output, shape index: {}]  }
   0x1   :  { %10 = vsyncpa [#allocation3 + $0x1], 0  ;;  %s419_s12 = smov 0   ;;  %s421_s13 = smov 0  }
   0x2   :  { %s423_s14 = smov 0   ;;  %s425_s15 = smov 0  }
   0x3 LB: > { %s440_s16 = sadd.s32 4294967295, %s396_s15   ;;  %s279_s17 = sadd.s32 4294967294, %s396_s15   ;;  %s396_s15 = sphi %s425_s15, %s537_s15   ;;  %s392_s14 = sphi %s423_s14, %s536_s14   ;;  %s388_s13 = sphi %s421_s13, %s535_s13   ;;  %s384_s12 = sphi %s419_s12, %s534_s12  }
   0x4   : > { %s444_s18 = sadd.s32 1, %s396_s15   ;;  %s91_s19 = sadd.s32 1, %s392_s14 }
   0x5   : > { %s88_s20 = ssub.s32 %s396_s15, %s444_s18  ;;  %p101_p0 = scmp.ne.s32.totalorder %s392_s14, %s388_s13 }
   0x6   : > { %p89_p1 = scmp.eq.s32.totalorder %s88_s20, 0  ;;  %p102_p2 = scmp.eq.s32.totalorder %s440_s16, 1 }
   0x7   : > { %p107_p3 = scmp.ne.s32.totalorder %s388_s13, %s384_s12  ;;  %p108_p4 = scmp.eq.s32.totalorder %s279_s17, 1 }
   0x8   : > { %s455_s21 = scalar_select %p89_p1, %s392_s14, %s91_s19  }
   0x9   : > { %p457_p5 = por %p102_p2, %p101_p0  ;;  %p461_p6 = por %p108_p4, %p107_p3 }
   0xa   : > { %p282_p7 = scmp.ge.s32.totalorder %s396_s15, 1  ;;  %p139_p8 = scmp.lt.s32.totalorder %s396_s15, 3 }
   0xc   : > { %p140_p9 = pnand %p282_p7, %p139_p8 }
   0xd   : > { %p162_p10 = scmp.lt.s32.totalorder (!%p140_p9), %s440_s16, 1  ;;  %vm169_vm0 = vcmask (!%p140_p9), 261120   ;;  %s159_s29 = sand.u32 (!%p140_p9), 1, %s388_s13   ;;  %v285_v15 = vld [vmem:[%s529_s1] ss:$0 sm:$0xff] (!%p140_p9) }
   0xe   : > { %143 = sbr.rel (%p140_p9) target bundleno = 366 (0x16e), region = 32  ;;  %s283_s30 = sshll.u32 (!%p140_p9), %s159_s29, 3  ;;  %v286_v18 = vld [vmem:[%s530_s2] ss:$0 sm:$0xff] (!%p140_p9) }
   0xf   : > { %s288_s8 = sshll.u32 (!%p140_p9), %s440_s16, 7  ;;  %s161_s9 = scalar_lea.vmem (!%p140_p9), [#allocation2], %s283_s30 }
  0x10   : > { %s220_s10 = sshll.u32 (!%p140_p9), %s161_s9, 4  ;;  %s485_s19 = scalar_lea.hbm (!%p140_p9), %s531_s3, %s288_s8  ;;  %s487_s10 = int_to_ptr.vmem [resolvable:$true] %s220_s10 }
  0x11   : > { %s207_s20 = scalar_lea.sflag (!%p140_p9), [#allocation3], %s159_s29 }
  0x15   : > { %s163_s24 = scalar_select %p162_p10, %s440_s16, 1 }
  0x16   : > { %s398_s16 = smov [#allocation2]  }
  0x17   : > { %s284_s25 = sshll.u32 %s163_s24, 3  ;;  %s334_s24 = scalar_lea.vmem %s487_s10, 128 }
  0x18   : > { %s165_s28 = scalar_lea.vmem %s528_s0, %s284_s25  ;;  %p335_p11 = scmp.ne.s32.totalorder %s487_s10, %s334_s24 }
  0x19   : > { %v166_v0 = vld [vmem:[%s165_s28] sm:$0xff]  ;;  %s338_s25 = sshll.u32 %s398_s16, 4  ;;  %s339_s25 = int_to_ptr.vmem [resolvable:$false] %s338_s25 }
  0x1a   : > { %v170_v1 = vsel %vm169_vm0, %v166_v0, 0.0  ;;  %p336_p12 = pnand %p335_p11, %p457_p5  ;;  %s340_s26 = scalar_lea.vmem %s339_s25, 256 }
  0x1b   : > { %171 = vadd.xlane.f32.xlu0 %v170_v1  ;;  %p341_p0 = scmp.lt.s32.totalorder %s487_s10, %s339_s25  ;;  %p342_p1 = scmp.lt.s32.totalorder %s340_s26, %s334_s24 }
  0x1c   : > { %p337_p13 = pneg %p336_p12 }
  0x1d   : > { %p343_p2 = por %p342_p1, %p341_p0 }
  0x1f   : > { %p344_p3 = pnand %p343_p2, %p337_p13 }
  0xa8   : > { %v172_v2 = vpop.xlane.xlu0 %171 }
  0xa9   : > { %v174_v3 = vmul.f32 0.03125, %v172_v2 }
  0xab   : > { %v175_v4 = vsub.f32 %v166_v0, %v174_v3 }
  0xad   : > { %v176_v5 = vmul.f32 %v175_v4, %v175_v4  ;;  %v196_v16 = vmul.f32 %v285_v15, %v175_v4 }
  0xaf   : > { %v177_v6 = vsel %vm169_vm0, %v176_v5, 0.0 }
  0xb0   : > { %178 = vadd.xlane.f32.xlu0 %v177_v6 }
 0x13d   : > { %v179_v7 = vpop.xlane.xlu0 %178 }
 0x13e   : > { %v180_v8 = vmul.f32 0.032258064, %v179_v7 }
 0x140   : > { %330 = vrsqrt.f32 %v180_v8  ;;  %vm183_vm1 = vcmp.eq.f32.partialorder %v180_v8, inf  ;;  %v186_v11 = vand.u32 2147483648, %v180_v8  ;;  %vm185_vm2 = vcmp.eq.f32.partialorder %v180_v8, 0.0 }
 0x14a   : > { %v331_v9 = vpop.eup %330 }
 0x14b   : > { %v182_v10 = vmul.f32 %v331_v9, %v180_v8 }
 0x14d   : > { %v184_v12 = vsel %vm183_vm1, %v180_v8, %v182_v10 }
 0x14e   : > { %v187_v13 = vsel %vm185_vm2, %v186_v11, %v184_v12 }
 0x14f   : > { %v188_v14 = vadd.f32 1e-06, %v187_v13 }
 0x151   : > { %332 = vrcp.f32 %v188_v14 }
 0x15b   : > { %v333_v17 = vpop.eup %332 }
 0x15c   : > { %v197_v19 = vmul.f32 %v333_v17, %v196_v16 }
 0x15e   : > { %v204_v20 = vadd.f32 %v286_v18, %v197_v19 }
 0x160   : > { %205 = vst.msk [vmem:[%s161_s9] sm:$0xff] %vm169_vm0, %v204_v20 }
 0x161   : > { %347 = shalt.err (!%p344_p3)
}
 0x162   : > { %s348_s27 = scalar_lea.hbm %s485_s19, 128  ;;  %s352_s30 = scalar_lea.hbm %s531_s3, 256 }
 0x163   : > { %p349_p4 = scmp.ne.s32.totalorder %s485_s19, %s348_s27  ;;  %p353_p9 = scmp.lt.u32.totalorder %s485_s19, %s531_s3 }
 0x164   : > { %p354_p10 = scmp.lt.u32.totalorder %s352_s30, %s348_s27  ;;  %p356_p12 = scmp.lt.u32.totalorder %s348_s27, %s485_s19 }
 0x165   : > { %p350_p7 = pnand %p349_p4, %p457_p5 }
 0x166   : > { %p355_p11 = por %p354_p10, %p353_p9 }
 0x167   : > { %p351_p8 = pneg %p350_p7 }
 0x168   : > { %p357_p13 = por %p356_p12, %p355_p11 }
 0x16a   : > { %p358_p0 = pnand %p357_p13, %p351_p8 }
 0x16c   : > { %361 = shalt.err (!%p358_p0)
}
 0x16d   : > { %291 = dma.vmem_to_hbm [thread:$0]  (%p457_p5), %s487_s10, 128, %s485_s19, %s207_s20  }
 0x16e PF: > { %p297_p1 = scmp.ge.s32.totalorder %s396_s15, 2  ;;  %s232_s6 = sand.u32 1, %s384_s12  }
 0x16f   : > { %s233_s7 = scalar_lea.sflag [#allocation3], %s232_s6 }
 0x170   : > { %p294_p2 = pnand %p297_p1, %p461_p6 }
 0x172   : > { %379 = dma.done.wait (!%p294_p2), %s233_s7, 128  }
 0x173   : > { %381 = vsyncadd (!%p294_p2), %s233_s7, 4294967168  ;;  %p13_p3 = scmp.ge.s32.totalorder %s444_s18, 4   ;;  %s534_s12 = smov %s388_s13 }
 0x174   : > { %s535_s13 = smov %s392_s14  ;;  %s536_s14 = smov %s455_s21 }
 0x175   : > { %s537_s15 = smov %s444_s18  ;;  %15 = sbr.rel (!%p13_p3) target bundleno = 3 (0x3), region = 67 }
 0x17c   :  { %238 = vsyncpa [#allocation3], 1 }
 0x17d   :  { %240 = vsyncpa [#allocation3 + $0x1], 1 }

// kernel: decoder_forward.7
= control target key start
LH: loop header
LB: loop body
LE: loop exit
PB: predicated region body
PF: predicated region fallthrough
CT: control target
= control target key end

     0   :  { %s2612_s21 = smov 0   ;;  %s2928_s0 = inlined_call_operand.vmem [shape: f32[2,8,32], index: 0, kind: input, shape index: {}]   ;;  %s2929_s1 = inlined_call_operand.vmem [shape: f32[1,32], index: 1, kind: input, shape index: {}]   ;;  %s2930_s2 = inlined_call_operand.vmem [shape: f32[1,32], index: 2, kind: input, shape index: {}]   ;;  %s2931_s3 = inlined_call_operand.vmem [shape: bf16[4,32,8], index: 3, kind: input, shape index: {}]   ;;  %s2932_s4 = inlined_call_operand.vmem [shape: f32[4,1,8], index: 4, kind: input, shape index: {}]   ;;  %s2933_s5 = inlined_call_operand.vmem [shape: bf16[4,32,8], index: 5, kind: input, shape index: {}]   ;;  %s2934_s6 = inlined_call_operand.vmem [shape: f32[4,1,8], index: 6, kind: input, shape index: {}]   ;;  %s2935_s7 = inlined_call_operand.vmem [shape: bf16[4,32,8], index: 7, kind: input, shape index: {}]   ;;  %s2936_s8 = inlined_call_operand.vmem [shape: f32[4,1,8], index: 8, kind: input, shape index: {}]   ;;  %s2937_s9 = inlined_call_operand.vmem [shape: bf16[4,8,32], index: 9, kind: input, shape index: {}]   ;;  %s2938_s10 = inlined_call_operand.vmem [shape: f32[1,32], index: 10, kind: input, shape index: {}]   ;;  %s2939_s11 = inlined_call_operand.vmem [shape: f32[1,8,8], index: 11, kind: input, shape index: {}]   ;;  %s2940_s12 = inlined_call_operand.vmem [shape: f32[2,8,32], index: 12, kind: output, shape index: {}]  }
   0x1 LB: > { %s2139_s22 = sadd.s32 4294967295, %s2543_s21   ;;  %p2143_p0 = scmp.ge.s32.totalorder %s2543_s21, 1  ;;  %s2543_s21 = sphi %s2612_s21, %s22_s21  }
   0x2   : > { %p361_p1 = scmp.lt.s32.totalorder %s2543_s21, 3 }
   0x4   : > { %p362_p2 = pnand %p2143_p0, %p361_p1 }
   0x5   : > { %p401_p3 = scmp.lt.s32.totalorder (!%p362_p2), %s2139_s22, 1  ;;  %vm413_vm0 = vcmask (!%p362_p2), 261120   ;;  %v2493_v7 = vld [vmem:[%s2931_s3] sm:$0xff] (!%p362_p2)   ;;  %v2545_v9 = vmov (!%p362_p2), 0.0   ;;  %v2495_v10 = vld [vmem:[%s2931_s3 + $0x8] sm:$0xff] (!%p362_p2)   ;;  %vm2546_vm1 = vmmov (!%p362_p2), 0  }
   0x6   : > { %365 = sbr.rel (%p362_p2) target bundleno = 4205 (0x106d), region = 68  ;;  %v2494_v8 = vld [vmem:[%s2933_s5] sm:$0xff] (!%p362_p2)   ;;  %2323 = vmatprep.subr.bf16.mxu0 (!%p362_p2), %v2545_v9  ;;  %2331 = vmatprep.subr.bf16.mxu1 (!%p362_p2), %v2545_v9  ;;  %v2496_v11 = vld [vmem:[%s2933_s5 + $0x8] sm:$0xff] (!%p362_p2)   ;;  %v2499_v29 = vld [vmem:[%s2931_s3 + $0x10] sm:$0xff] (!%p362_p2)   ;;  %vm644_vm4 = vcmask (!%p362_p2), 64512   ;;  %vm1172_vm6 = vcmask (!%p362_p2), 1043456  }
   0x7   : > { %2324 = vmatpush3.bf16.msra.mxu0 (!%p362_p2), %v2493_v7  ;;  %2332 = vmatpush3.bf16.msra.mxu1 (!%p362_p2), %v2494_v8  ;;  %v2146_v20 = vld [vmem:[%s2929_s1] ss:$0 sm:$0xff] (!%p362_p2)  ;;  %v2498_v28 = vld [vmem:[%s2935_s7 + $0x8] sm:$0xff] (!%p362_p2)   ;;  %v2500_v30 = vld [vmem:[%s2931_s3 + $0x18] sm:$0xff] (!%p362_p2)  }
   0x8   : > { %2325 = vmatprep.subr.bf16.mxu0 (!%p362_p2), %v2545_v9  ;;  %2333 = vmatprep.subr.bf16.mxu1 (!%p362_p2), %v2545_v9  ;;  %v2147_v23 = vld [vmem:[%s2930_s2] ss:$0 sm:$0xff] (!%p362_p2)  ;;  %v2501_v31 = vld [vmem:[%s2935_s7 + $0x10] sm:$0xff] (!%p362_p2)   ;;  %v2502_v32 = vld [vmem:[%s2935_s7 + $0x18] sm:$0xff] (!%p362_p2)  }
   0x9   : > { %2327 = vmatprep.mubr.msk.bf16.mxu0 (!%p362_p2), %vm2546_vm1, %v2545_v9  ;;  %2335 = vmatprep.mubr.msk.bf16.mxu1 (!%p362_p2), %vm2546_vm1, %v2545_v9  ;;  %v2497_v26 = vld [vmem:[%s2935_s7] sm:$0xff] (!%p362_p2)  }
   0xa   : > { %v2148_v33 = vld [vmem:[%s2932_s4] ss:$0 sm:$0xff] (!%p362_p2) }
   0xb   : > { %2326 = vmatpush3.bf16.msra.mxu0 (!%p362_p2), %v2495_v10  ;;  %2334 = vmatpush3.bf16.msra.mxu1 (!%p362_p2), %v2496_v11  ;;  %v2152_v34 = vld [vmem:[%s2934_s6] ss:$0 sm:$0xff] (!%p362_p2)  ;;  %v2503_v10 = vld [vmem:[%s2933_s5 + $0x10] sm:$0xff] (!%p362_p2)  }
   0xc   : > { %2339 = vmatprep.subr.bf16.mxu0 (!%p362_p2), %v2545_v9  ;;  %2347 = vmatprep.subr.mxu1 (!%p362_p2), %v2545_v9  ;;  %v2156_v46 = vld [vmem:[%s2936_s8] ss:$0 sm:$0xff] (!%p362_p2) }
   0xd   : > { %s2942_s22 = smov (!%p401_p3, %s2139_s22), 1  ;;  %v2726_v60 = vld [vmem:[%s2939_s11] sm:$0xff] }
   0xe   : > { %s2144_s23 = sshll.u32 %s2942_s22, 3  ;;  %vm721_vm5 = vcmp.eq.f32.partialorder %v2726_v60, 0.0  ;;  %v2258_v60 = vld [vmem:[%s2937_s9 + $0xc] sm:$0xf] }
   0xf   : > { %s404_s26 = scalar_lea.vmem %s2928_s0, %s2144_s23  ;;  %s408_s27 = scalar_lea.vmem %s2940_s12, %s2144_s23 }
  0x10   : > { %v2628_v0 = vld [vmem:[%s404_s26] sm:$0xff] }
  0x11   : > { %v414_v1 = vsel %vm413_vm0, %v2628_v0, 0.0 }
  0x12   : > { %415 = vadd.xlane.f32.xlu0 %v414_v1 }
  0x9f   : > { %v416_v2 = vpop.xlane.xlu0 %415 }
  0xa0   : > { %v418_v3 = vmul.f32 0.03125, %v416_v2 }
  0xa2   : > { %v419_v4 = vsub.f32 %v2628_v0, %v418_v3 }
  0xa4   : > { %v420_v5 = vmul.f32 %v419_v4, %v419_v4  ;;  %v440_v21 = vmul.f32 %v2146_v20, %v419_v4  ;;  %v2168_v20 = vld [vmem:[%s2932_s4 + $0x1] ss:$0 sm:$0xff] }
  0xa6   : > { %v421_v6 = vsel %vm413_vm0, %v420_v5, 0.0 }
  0xa7   : > { %422 = vadd.xlane.f32.xlu0 %v421_v6 }
 0x134   : > { %v423_v12 = vpop.xlane.xlu0 %422 }
 0x135   : > { %v424_v13 = vmul.f32 0.032258064, %v423_v12  ;;  %v2504_v12 = vld [vmem:[%s2933_s5 + $0x18] sm:$0xff]  }
 0x137   : > { %2517 = vrsqrt.f32 %v424_v13  ;;  %vm427_vm2 = vcmp.eq.f32.partialorder %v424_v13, inf  ;;  %v430_v16 = vand.u32 2147483648, %v424_v13  ;;  %vm429_vm3 = vcmp.eq.f32.partialorder %v424_v13, 0.0 }
 0x141   : > { %v2518_v14 = vpop.eup %2517 }
 0x142   : > { %v426_v15 = vmul.f32 %v2518_v14, %v424_v13 }
 0x144   : > { %v428_v17 = vsel %vm427_vm2, %v424_v13, %v426_v15  ;;  %v808_v13 = vld [vmem:[%s2937_s9] sm:$0xf] }
 0x145   : > { %v431_v18 = vsel %vm429_vm3, %v430_v16, %v428_v17  ;;  %v1220_v14 = vsel %vm1172_vm6, %v808_v13, 0  ;;  %v2505_v16 = vld [vmem:[%s2933_s5 + $0x20] sm:$0xff]  }
 0x146   : > { %v432_v19 = vadd.f32 1e-06, %v431_v18 }
 0x148   : > { %2519 = vrcp.f32 %v432_v19  ;;  %v2506_v19 = vld [vmem:[%s2933_s5 + $0x28] sm:$0xff]  }
 0x152   : > { %v2520_v22 = vpop.eup %2519 }
 0x153   : > { %v441_v24 = vmul.f32 %v2520_v22, %v440_v21  ;;  %v2177_v21 = vld [vmem:[%s2934_s6 + $0x1] ss:$0 sm:$0xff] }
 0x155   : > { %v448_v25 = vadd.f32 %v2147_v23, %v441_v24 }
 0x157   : > { %v2665_v27 = vpack.c.bf16 %v448_v25, %v448_v25 }
 0x159   : > { %2328 = vmatmul.mubr.msk.bf16.vlgmr.msra.gmra.mrb[0].mxu0 %vm413_vm0, %v2665_v27  ;;  %2336 = vmatmul.mubr.msk.bf16.vlgmr.msra.gmra.mrb[0].mxu1 %vm413_vm0, %v2665_v27 }
 0x15a   : > { %2340 = vmatpush3.bf16.msra.mxu0 %v2497_v26  ;;  %2343 = vmatprep.mubr.msk.bf16.mxu0 %vm2546_vm1, %v2545_v9  ;;  %v2186_v26 = vld [vmem:[%s2936_s8 + $0x1] ss:$0 sm:$0xff] }
 0x15b   : > { %2341 = vmatprep.subr.bf16.mxu0 %v2545_v9  ;;  %2349 = vmatprep.mubr.msk.f32.mxu1 %vm2546_vm1, %v2545_v9 }
 0x15e   : > { %2342 = vmatpush3.bf16.msra.mxu0 %v2498_v28 }
 0x15f   : > { %2357 = vmatprep.subr.bf16.mxu0 %v2545_v9 }
 0x161   : > { %2344 = vmatmul.mubr.msk.bf16.vlgmr.msra.gmra.mrb[4].mxu0 %vm413_vm0, %v2665_v27 }
 0x162   : > { %2358 = vmatpush3.bf16.msra.mxu0 %v2499_v29  ;;  %2361 = vmatprep.mubr.msk.bf16.mxu0 %vm2546_vm1, %v2545_v9 }
 0x163   : > { %2359 = vmatprep.subr.bf16.mxu0 %v2545_v9 }
 0x166   : > { %2360 = vmatpush3.bf16.msra.mxu0 %v2500_v30 }
 0x167   : > { %2373 = vmatprep.subr.bf16.mxu0 %v2545_v9 }
 0x169   : > { %2362 = vmatmul.mubr.msk.bf16.vlgmr.msra.gmra.mrb[8].mxu0 %vm413_vm0, %v2665_v27 }
 0x16a   : > { %2374 = vmatpush3.bf16.msra.mxu0 %v2501_v31  ;;  %2377 = vmatprep.mubr.msk.bf16.mxu0 %vm2546_vm1, %v2545_v9 }
 0x16b   : > { %2375 = vmatprep.subr.bf16.mxu0 %v2545_v9 }
 0x16e   : > { %2376 = vmatpush3.bf16.msra.mxu0 %v2502_v32 }
 0x16f   : > { %2397 = vmatprep.subr.bf16.mxu0 %v2545_v9 }
 0x171   : > { %2378 = vmatmul.mubr.msk.bf16.vlgmr.msra.gmra.mrb[12].mxu0 %vm413_vm0, %v2665_v27 }
 0x172   : > { %2399 = vmatprep.mubr.msk.bf16.mxu0 %vm2546_vm1, %v2545_v9  ;;  %2398 = vmatpush3.bf16.msra.mxu0 %v1220_v14  ;;  %v2219_v14 = vld [vmem:[%s2936_s8 + $0x2] ss:$0 sm:$0xff] }
 0x173   : > { %2411 = vmatprep.subr.bf16.mxu0 %v2545_v9 }
 0x22c   : > { %v511_v35 = vpop.f32.mrb[0].mxu0  ;;  %v575_v36 = vpop.f32.mrb[0].mxu1 }
 0x22d   : > { %v512_v37 = vadd.f32 %v2148_v33, %v511_v35  ;;  %v576_v38 = vadd.f32 %v2152_v34, %v575_v36  ;;  %v2329_v39 = vpop.f32.mrb[1].mxu0  ;;  %v2337_v40 = vpop.f32.mrb[1].mxu1  ;;  %v2210_v36 = vld [vmem:[%s2934_s6 + $0x2] ss:$0 sm:$0xff] }
 0x22e   : > { %v514_v41 = vpop.f32.mrb[2].mxu0  ;;  %v578_v42 = vpop.f32.mrb[2].mxu1 }
 0x22f   : > { %v517_v43 = vmul.f32 0.35355338, %v512_v37  ;;  %v2330_v44 = vpop.f32.mrb[3].mxu0  ;;  %v2338_v45 = vpop.f32.mrb[3].mxu1  ;;  %2348 = vmatpush3.xpose.msk.msra.mxu1 %vm644_vm4, %v576_v38 }
 0x230   : > { %2352 = vmatprep.subr.mxu1 %v2545_v9 }
 0x232   : > { %2350 = vmatmul.mubr.msk.f32.vlgmr.msra.gmra.mrb[4].mxu1 %vm644_vm4, %v517_v43 }
 0x233   : > { %2354 = vmatprep.mubr.msk.f32.mxu1 %vm2546_vm1, %v2545_v9 }
 0x234   : > { %v638_v47 = vpop.f32.mrb[4].mxu0 }
 0x235   : > { %v639_v48 = vadd.f32 %v2156_v46, %v638_v47  ;;  %v2345_v49 = vpop.f32.mrb[5].mxu0 }
 0x236   : > { %v641_v50 = vpop.f32.mrb[6].mxu0 }
 0x237   : > { %v2346_v51 = vpop.f32.mrb[7].mxu0  ;;  %2353 = vmatpush3.msra.mxu1 %v639_v48 }
 0x238   : > { %2365 = vmatprep.subr.bf16.mxu1 %v2545_v9 }
 0x23c   : > { %v868_v52 = vpop.f32.mrb[8].mxu0 }
 0x23d   : > { %v2363_v53 = vpop.f32.mrb[9].mxu0  ;;  %v869_v22 = vadd.f32 %v2168_v20, %v868_v52 }
 0x23e   : > { %v871_v54 = vpop.f32.mrb[10].mxu0 }
 0x23f   : > { %v2364_v55 = vpop.f32.mrb[11].mxu0  ;;  %v874_v30 = vmul.f32 0.35355338, %v869_v22  ;;  %v2193_v54 = vld [vmem:[%s2937_s9 + $0x4] sm:$0xf] }
 0x240   : > { %v1174_v55 = vsel %vm1172_vm6, %v2193_v54, 0 }
 0x244   : > { %v999_v56 = vpop.f32.mrb[12].mxu0 }
 0x245   : > { %v2379_v57 = vpop.f32.mrb[13].mxu0  ;;  %v1000_v31 = vadd.f32 %v2186_v26, %v999_v56 }
 0x246   : > { %v1002_v58 = vpop.f32.mrb[14].mxu0  ;;  %v2507_v57 = vld [vmem:[%s2931_s3 + $0x20] sm:$0xff]  }
 0x247   : > { %v2380_v59 = vpop.f32.mrb[15].mxu0 }
 0x305   : > { %v717_v61 = vpop.f32.mrb[4].mxu1 }
 0x306   : > { %v722_v62 = vsel %vm721_vm5, -1e+09, %v717_v61  ;;  %v2351_v63 = vpop.f32.mrb[5].mxu1  ;;  %v2508_v61 = vld [vmem:[%s2931_s3 + $0x28] sm:$0xff]  }
 0x307   : > { %v723_v1 = vsel %vm644_vm4, %v722_v62, -inf  ;;  %v2510_v63 = vld [vmem:[%s2935_s7 + $0x28] sm:$0xff]  }
 0x308   : > { %724 = vmax.xlane.f32.xlu1 %v723_v1 }
 0x395   : > { %v725_v2 = vpop.xlane.xlu1 %724 }
 0x396   : > { %v726_v3 = vsub.f32 %v722_v62, %v725_v2  ;;  %v2509_v62 = vld [vmem:[%s2935_s7 + $0x20] sm:$0xff]  }
 0x398   : > { %v727_v4 = vmul.f32 1.442695, %v726_v3 }
 0x39a   : > { %2521 = vpow2.f32 %v727_v4 }
 0x3a4   : > { %v2522_v5 = vpop.eup %2521 }
 0x3a5   : > { %v729_v6 = vsel %vm644_vm4, %v2522_v5, 0.0 }
 0x3a6   : > { %730 = vadd.xlane.f32.xlu1 %v729_v6  ;;  %v2201_v6 = vld [vmem:[%s2932_s4 + $0x2] ss:$0 sm:$0xff] }
 0x433   : > { %v731_v7 = vpop.xlane.xlu1 %730 }
 0x434   : > { %2523 = vrcp.f32 %v731_v7 }
 0x43e   : > { %v2524_v8 = vpop.eup %2523 }
 0x43f   : > { %v733_v11 = vmul.f32 %v2524_v8, %v2522_v5 }
 0x441   : > { %2355 = vmatmul.mubr.msk.f32.vlgmr.msra.gmra.mrb[6].mxu1 %vm644_vm4, %v733_v11 }
 0x442   : > { %2366 = vmatpush3.bf16.msra.mxu1 %v2503_v10  ;;  %2369 = vmatprep.mubr.msk.bf16.mxu1 %vm2546_vm1, %v2545_v9 }
 0x443   : > { %2367 = vmatprep.subr.bf16.mxu1 %v2545_v9 }
 0x446   : > { %2368 = vmatpush3.bf16.msra.mxu1 %v2504_v12 }
 0x447   : > { %2381 = vmatprep.subr.mxu1 %v2545_v9 }
 0x449   : > { %2370 = vmatmul.mubr.msk.bf16.vlgmr.msra.gmra.mrb[8].mxu1 %vm413_vm0, %v2665_v27 }
 0x44a   : > { %2383 = vmatprep.mubr.msk.f32.mxu1 %vm2546_vm1, %v2545_v9 }
 0x514   : > { %v803_v15 = vpop.f32.mrb[6].mxu1 }
 0x515   : > { %v807_v17 = vpack.c.bf16 %v803_v15, %v803_v15  ;;  %v2356_v18 = vpop.f32.mrb[7].mxu1 }
 0x517   : > { %2400 = vmatmul.mubr.msk.bf16.vlgmr.msra.gmra.mrb[16].mxu0 %vm644_vm4, %v807_v17 }
 0x518   : > { %2412 = vmatpush3.bf16.msra.mxu0 %v2505_v16  ;;  %2415 = vmatprep.mubr.msk.bf16.mxu0 %vm2546_vm1, %v2545_v9 }
 0x519   : > { %2413 = vmatprep.subr.bf16.mxu0 %v2545_v9 }
 0x51c   : > { %v934_v23 = vpop.f32.mrb[8].mxu1  ;;  %2414 = vmatpush3.bf16.msra.mxu0 %v2506_v19 }
 0x51d   : > { %v935_v24 = vadd.f32 %v2177_v21, %v934_v23  ;;  %v2371_v25 = vpop.f32.mrb[9].mxu1  ;;  %2427 = vmatprep.subr.mxu0 %v2545_v9 }
 0x51e   : > { %v937_v28 = vpop.f32.mrb[10].mxu1 }
 0x51f   : > { %v2372_v29 = vpop.f32.mrb[11].mxu1  ;;  %2382 = vmatpush3.xpose.msk.msra.mxu1 %vm644_vm4, %v935_v24  ;;  %2416 = vmatmul.mubr.msk.bf16.vlgmr.msra.gmra.mrb[20].mxu0 %vm413_vm0, %v2665_v27 }
 0x520   : > { %2386 = vmatprep.subr.mxu1 %v2545_v9  ;;  %2429 = vmatprep.mubr.msk.f32.mxu0 %vm2546_vm1, %v2545_v9 }
 0x522   : > { %2384 = vmatmul.mubr.msk.f32.vlgmr.msra.gmra.mrb[12].mxu1 %vm644_vm4, %v874_v30 }
 0x523   : > { %2387 = vmatpush3.msra.mxu1 %v1000_v31  ;;  %2388 = vmatprep.mubr.msk.f32.mxu1 %vm2546_vm1, %v2545_v9 }
 0x524   : > { %2391 = vmatprep.subr.bf16.mxu1 %v2545_v9 }
 0x5ea   : > { %v1256_v32 = vpop.f32.mrb[16].mxu0 }
 0x5eb   : > { %v2401_v33 = vpop.f32.mrb[17].mxu0 }
 0x5ec   : > { %v1259_v34 = vpop.f32.mrb[18].mxu0 }
 0x5ed   : > { %v2402_v35 = vpop.f32.mrb[19].mxu0  ;;  %v2512_v34 = vld [vmem:[%s2931_s3 + $0x38] sm:$0xff]  }
 0x5ee   : > { %v2513_v35 = vld [vmem:[%s2935_s7 + $0x30] sm:$0xff]  }
 0x5f2   : > { %v1387_v37 = vpop.f32.mrb[20].mxu0 }
 0x5f3   : > { %v1388_v38 = vadd.f32 %v2210_v36, %v1387_v37  ;;  %v2417_v39 = vpop.f32.mrb[21].mxu0  ;;  %v2514_v36 = vld [vmem:[%s2935_s7 + $0x38] sm:$0xff]   ;;  %v2226_v37 = vld [vmem:[%s2937_s9 + $0x8] sm:$0xf] }
 0x5f4   : > { %v1390_v40 = vpop.f32.mrb[22].mxu0 }
 0x5f5   : > { %v1077_v41 = vpop.f32.mrb[12].mxu1  ;;  %v2418_v42 = vpop.f32.mrb[23].mxu0  ;;  %2428 = vmatpush3.xpose.msk.msra.mxu0 %vm644_vm4, %v1388_v38  ;;  %v1626_v38 = vsel %vm1172_vm6, %v2226_v37, 0  ;;  %v2515_v40 = vld [vmem:[%s2933_s5 + $0x30] sm:$0xff]  }
 0x5f6   : > { %v1081_v43 = vsel %vm721_vm5, -1e+09, %v1077_v41  ;;  %v2385_v44 = vpop.f32.mrb[13].mxu1  ;;  %2432 = vmatprep.subr.mxu0 %v2545_v9 }
 0x5f7   : > { %v1082_v45 = vsel %vm644_vm4, %v1081_v43, -inf }
 0x5f8   : > { %1083 = vmax.xlane.f32.xlu0 %v1082_v45 }
 0x685   : > { %v1084_v46 = vpop.xlane.xlu0 %1083 }
 0x686   : > { %v1085_v47 = vsub.f32 %v1081_v43, %v1084_v46  ;;  %v2516_v43 = vld [vmem:[%s2933_s5 + $0x38] sm:$0xff]  }
 0x688   : > { %v1086_v48 = vmul.f32 1.442695, %v1085_v47 }
 0x68a   : > { %2525 = vpow2.f32 %v1086_v48 }
 0x694   : > { %v2526_v49 = vpop.eup %2525 }
 0x695   : > { %v1088_v50 = vsel %vm644_vm4, %v2526_v49, 0.0 }
 0x696   : > { %1089 = vadd.xlane.f32.xlu1 %v1088_v50 }
 0x723   : > { %v1090_v51 = vpop.xlane.xlu1 %1089 }
 0x724   : > { %2527 = vrcp.f32 %v1090_v51 }
 0x72e   : > { %v2528_v52 = vpop.eup %2527 }
 0x72f   : > { %v1092_v53 = vmul.f32 %v2528_v52, %v2526_v49 }
 0x731   : > { %2389 = vmatmul.mubr.msk.f32.vlgmr.msra.gmra.mrb[14].mxu1 %vm644_vm4, %v1092_v53 }
 0x732   : > { %2393 = vmatprep.mubr.msk.bf16.mxu1 %vm2546_vm1, %v2545_v9  ;;  %2392 = vmatpush3.bf16.msra.mxu1 %v1174_v55 }
 0x733   : > { %2403 = vmatprep.subr.bf16.mxu1 %v2545_v9 }
 0x804   : > { %v1162_v56 = vpop.f32.mrb[14].mxu1 }
 0x805   : > { %v1166_v58 = vpack.c.bf16 %v1162_v56, %v1162_v56  ;;  %v2390_v59 = vpop.f32.mrb[15].mxu1 }
 0x807   : > { %2394 = vmatmul.mubr.msk.bf16.vlgmr.msra.gmra.mrb[16].mxu1 %vm644_vm4, %v1166_v58 }
 0x808   : > { %2404 = vmatpush3.bf16.msra.mxu1 %v2507_v57  ;;  %2407 = vmatprep.mubr.msk.bf16.mxu1 %vm2546_vm1, %v2545_v9  ;;  %v2233_v57 = vld [vmem:[%s2932_s4 + $0x3] ss:$0 sm:$0xff] }
 0x809   : > { %2405 = vmatprep.subr.bf16.mxu1 %v2545_v9 }
 0x80c   : > { %2406 = vmatpush3.bf16.msra.mxu1 %v2508_v61 }
 0x80d   : > { %2419 = vmatprep.subr.bf16.mxu1 %v2545_v9 }
 0x80f   : > { %2408 = vmatmul.mubr.msk.bf16.vlgmr.msra.gmra.mrb[20].mxu1 %vm413_vm0, %v2665_v27 }
 0x810   : > { %2420 = vmatpush3.bf16.msra.mxu1 %v2509_v62  ;;  %2423 = vmatprep.mubr.msk.bf16.mxu1 %vm2546_vm1, %v2545_v9 }
 0x811   : > { %2421 = vmatprep.subr.bf16.mxu1 %v2545_v9 }
 0x814   : > { %2422 = vmatpush3.bf16.msra.mxu1 %v2510_v63  ;;  %v2251_v63 = vld [vmem:[%s2936_s8 + $0x3] ss:$0 sm:$0xff] }
 0x815   : > { %2437 = vmatprep.subr.bf16.mxu1 %v2545_v9 }
 0x817   : > { %2424 = vmatmul.mubr.msk.bf16.vlgmr.msra.gmra.mrb[24].mxu1 %vm413_vm0, %v2665_v27 }
 0x818   : > { %2439 = vmatprep.mubr.msk.bf16.mxu1 %vm2546_vm1, %v2545_v9  ;;  %2438 = vmatpush3.bf16.msra.mxu1 %v1626_v38 }
 0x819   : > { %2451 = vmatprep.subr.bf16.mxu1 %v2545_v9 }
 0x8da   : > { %v1210_v1 = vpop.f32.mrb[16].mxu1 }
 0x8db   : > { %v2827_v2 = vadd.f32 %v1256_v32, %v1210_v1  ;;  %v2395_v3 = vpop.f32.mrb[17].mxu1  ;;  %v2511_v32 = vld [vmem:[%s2931_s3 + $0x30] sm:$0xff]  }
 0x8dc   : > { %v1213_v4 = vpop.f32.mrb[18].mxu1 }
 0x8dd   : > { %v2396_v5 = vpop.f32.mrb[19].mxu1 }
 0x8e2   : > { %v1321_v7 = vpop.f32.mrb[20].mxu1 }
 0x8e3   : > { %v1322_v8 = vadd.f32 %v2201_v6, %v1321_v7  ;;  %v2409_v10 = vpop.f32.mrb[21].mxu1 }
 0x8e4   : > { %v1324_v11 = vpop.f32.mrb[22].mxu1 }
 0x8e5   : > { %v1327_v12 = vmul.f32 0.35355338, %v1322_v8  ;;  %v2410_v13 = vpop.f32.mrb[23].mxu1 }
 0x8e7   : > { %2430 = vmatmul.mubr.msk.f32.vlgmr.msra.gmra.mrb[24].mxu0 %vm644_vm4, %v1327_v12 }
 0x8e8   : > { %2434 = vmatprep.mubr.msk.f32.mxu0 %vm2546_vm1, %v2545_v9 }
 0x8ea   : > { %v1452_v15 = vpop.f32.mrb[24].mxu1 }
 0x8eb   : > { %v1453_v16 = vadd.f32 %v2219_v14, %v1452_v15  ;;  %v2425_v17 = vpop.f32.mrb[25].mxu1 }
 0x8ec   : > { %v1455_v18 = vpop.f32.mrb[26].mxu1  ;;  %v2033_v17 = vsel %vm1172_vm6, %v2258_v60, 0 }
 0x8ed   : > { %v2426_v19 = vpop.f32.mrb[27].mxu1  ;;  %2433 = vmatpush3.msra.mxu0 %v1453_v16 }
 0x8ee   : > { %2443 = vmatprep.subr.bf16.mxu0 %v2545_v9 }
 0x9ba   : > { %v1530_v20 = vpop.f32.mrb[24].mxu0 }
 0x9bb   : > { %v1534_v21 = vsel %vm721_vm5, -1e+09, %v1530_v20  ;;  %v2431_v22 = vpop.f32.mrb[25].mxu0 }
 0x9bc   : > { %v1535_v23 = vsel %vm644_vm4, %v1534_v21, -inf }
 0x9bd   : > { %1536 = vmax.xlane.f32.xlu0 %v1535_v23 }
 0xa4a   : > { %v1537_v24 = vpop.xlane.xlu0 %1536 }
 0xa4b   : > { %v1538_v25 = vsub.f32 %v1534_v21, %v1537_v24  ;;  %v2260_v24 = vld [vmem:[%s2938_s10] ss:$0 sm:$0xff] }
 0xa4d   : > { %v1539_v26 = vmul.f32 1.442695, %v1538_v25 }
 0xa4f   : > { %2529 = vpow2.f32 %v1539_v26 }
 0xa59   : > { %v2530_v28 = vpop.eup %2529 }
 0xa5a   : > { %v1541_v29 = vsel %vm644_vm4, %v2530_v28, 0.0 }
 0xa5b   : > { %1542 = vadd.xlane.f32.xlu1 %v1541_v29 }
 0xae8   : > { %v1543_v30 = vpop.xlane.xlu1 %1542 }
 0xae9   : > { %2531 = vrcp.f32 %v1543_v30 }
 0xaf3   : > { %v2532_v31 = vpop.eup %2531 }
 0xaf4   : > { %v1545_v33 = vmul.f32 %v2532_v31, %v2530_v28 }
 0xaf6   : > { %2435 = vmatmul.mubr.msk.f32.vlgmr.msra.gmra.mrb[26].mxu0 %vm644_vm4, %v1545_v33 }
 0xaf7   : > { %2444 = vmatpush3.bf16.msra.mxu0 %v2511_v32  ;;  %2447 = vmatprep.mubr.msk.bf16.mxu0 %vm2546_vm1, %v2545_v9 }
 0xaf8   : > { %2445 = vmatprep.subr.bf16.mxu0 %v2545_v9 }
 0xafb   : > { %2446 = vmatpush3.bf16.msra.mxu0 %v2512_v34 }
 0xafc   : > { %2459 = vmatprep.subr.bf16.mxu0 %v2545_v9 }
 0xafe   : > { %2448 = vmatmul.mubr.msk.bf16.vlgmr.msra.gmra.mrb[28].mxu0 %vm413_vm0, %v2665_v27 }
 0xaff   : > { %2460 = vmatpush3.bf16.msra.mxu0 %v2513_v35  ;;  %2463 = vmatprep.mubr.msk.bf16.mxu0 %vm2546_vm1, %v2545_v9 }
 0xb00   : > { %2461 = vmatprep.subr.bf16.mxu0 %v2545_v9 }
 0xb03   : > { %2462 = vmatpush3.bf16.msra.mxu0 %v2514_v36 }
 0xb04   : > { %2477 = vmatprep.subr.bf16.mxu0 %v2545_v9 }
 0xb06   : > { %2464 = vmatmul.mubr.msk.bf16.vlgmr.msra.gmra.mrb[32].mxu0 %vm413_vm0, %v2665_v27 }
 0xb07   : > { %2479 = vmatprep.mubr.msk.bf16.mxu0 %vm2546_vm1, %v2545_v9  ;;  %2478 = vmatpush3.bf16.msra.mxu0 %v2033_v17 }
 0xbc9   : > { %v1615_v39 = vpop.f32.mrb[26].mxu0 }
 0xbca   : > { %v1619_v41 = vpack.c.bf16 %v1615_v39, %v1615_v39  ;;  %v2436_v42 = vpop.f32.mrb[27].mxu0 }
 0xbcc   : > { %2440 = vmatmul.mubr.msk.bf16.vlgmr.msra.gmra.mrb[28].mxu1 %vm644_vm4, %v1619_v41 }
 0xbcd   : > { %2452 = vmatpush3.bf16.msra.mxu1 %v2515_v40  ;;  %2455 = vmatprep.mubr.msk.bf16.mxu1 %vm2546_vm1, %v2545_v9 }
 0xbce   : > { %2453 = vmatprep.subr.bf16.mxu1 %v2545_v9 }
 0xbd1   : > { %v1728_v44 = vpop.f32.mrb[28].mxu0  ;;  %2454 = vmatpush3.bf16.msra.mxu1 %v2516_v43 }
 0xbd2   : > { %v2449_v45 = vpop.f32.mrb[29].mxu0  ;;  %2467 = vmatprep.subr.mxu1 %v2545_v9  ;;  %v1729_v58 = vadd.f32 %v2233_v57, %v1728_v44 }
 0xbd3   : > { %v1731_v46 = vpop.f32.mrb[30].mxu0 }
 0xbd4   : > { %v2450_v47 = vpop.f32.mrb[31].mxu0  ;;  %2456 = vmatmul.mubr.msk.bf16.vlgmr.msra.gmra.mrb[32].mxu1 %vm413_vm0, %v2665_v27  ;;  %v2242_v27 = vld [vmem:[%s2934_s6 + $0x3] ss:$0 sm:$0xff]  ;;  %v1734_v3 = vmul.f32 0.35355338, %v1729_v58 }
 0xbd5   : > { %2469 = vmatprep.mubr.msk.f32.mxu1 %vm2546_vm1, %v2545_v9 }
 0xbd9   : > { %v1859_v48 = vpop.f32.mrb[32].mxu0 }
 0xbda   : > { %v2465_v49 = vpop.f32.mrb[33].mxu0  ;;  %v1860_v4 = vadd.f32 %v2251_v63, %v1859_v48 }
 0xbdb   : > { %v1862_v50 = vpop.f32.mrb[34].mxu0 }
 0xbdc   : > { %v2466_v51 = vpop.f32.mrb[35].mxu0 }
 0xc9f   : > { %v1662_v52 = vpop.f32.mrb[28].mxu1 }
 0xca0   : > { %v1668_v53 = vadd.f32 %v1662_v52, %v2827_v2  ;;  %v2441_v54 = vpop.f32.mrb[29].mxu1 }
 0xca1   : > { %v1665_v55 = vpop.f32.mrb[30].mxu1 }
 0xca2   : > { %v2442_v56 = vpop.f32.mrb[31].mxu1 }
 0xca7   : > { %v1794_v59 = vpop.f32.mrb[32].mxu1 }
 0xca8   : > { %v1795_v61 = vadd.f32 %v2242_v27, %v1794_v59  ;;  %v2457_v62 = vpop.f32.mrb[33].mxu1 }
 0xca9   : > { %v1797_v1 = vpop.f32.mrb[34].mxu1 }
 0xcaa   : > { %v2458_v2 = vpop.f32.mrb[35].mxu1  ;;  %2468 = vmatpush3.xpose.msk.msra.mxu1 %vm644_vm4, %v1795_v61 }
 0xcab   : > { %2472 = vmatprep.subr.mxu1 %v2545_v9 }
 0xcad   : > { %2470 = vmatmul.mubr.msk.f32.vlgmr.msra.gmra.mrb[36].mxu1 %vm644_vm4, %v1734_v3 }
 0xcae   : > { %2473 = vmatpush3.msra.mxu1 %v1860_v4  ;;  %2474 = vmatprep.mubr.msk.f32.mxu1 %vm2546_vm1, %v2545_v9 }
 0xd80   : > { %v1937_v5 = vpop.f32.mrb[36].mxu1 }
 0xd81   : > { %v1941_v6 = vsel %vm721_vm5, -1e+09, %v1937_v5  ;;  %v2471_v7 = vpop.f32.mrb[37].mxu1 }
 0xd82   : > { %v1942_v8 = vsel %vm644_vm4, %v1941_v6, -inf }
 0xd83   : > { %1943 = vmax.xlane.f32.xlu0 %v1942_v8 }
 0xe10   : > { %v1944_v10 = vpop.xlane.xlu0 %1943 }
 0xe11   : > { %v1945_v11 = vsub.f32 %v1941_v6, %v1944_v10 }
 0xe13   : > { %v1946_v12 = vmul.f32 1.442695, %v1945_v11 }
 0xe15   : > { %2533 = vpow2.f32 %v1946_v12 }
 0xe1f   : > { %v2534_v13 = vpop.eup %2533 }
 0xe20   : > { %v1948_v14 = vsel %vm644_vm4, %v2534_v13, 0.0 }
 0xe21   : > { %1949 = vadd.xlane.f32.xlu1 %v1948_v14 }
 0xeae   : > { %v1950_v15 = vpop.xlane.xlu1 %1949 }
 0xeaf   : > { %2535 = vrcp.f32 %v1950_v15 }
 0xeb9   : > { %v2536_v16 = vpop.eup %2535 }
 0xeba   : > { %v1952_v9 = vmul.f32 %v2536_v16, %v2534_v13 }
 0xebc   : > { %2475 = vmatmul.mubr.msk.f32.vlgmr.msra.gmra.mrb[38].mxu1 %vm644_vm4, %v1952_v9 }
 0xf8f   : > { %v2022_v18 = vpop.f32.mrb[38].mxu1 }
 0xf90   : > { %v2026_v19 = vpack.c.bf16 %v2022_v18, %v2022_v18  ;;  %v2476_v20 = vpop.f32.mrb[39].mxu1 }
 0xf92   : > { %2480 = vmatmul.mubr.msk.bf16.vlgmr.msra.gmra.mrb[36].mxu0 %vm644_vm4, %v2026_v19 }
0x1065   : > { %v2069_v21 = vpop.f32.mrb[36].mxu0 }
0x1066   : > { %v2075_v22 = vadd.f32 %v2069_v21, %v1668_v53  ;;  %v2481_v23 = vpop.f32.mrb[37].mxu0 }
0x1067   : > { %v2072_v25 = vpop.f32.mrb[38].mxu0 }
0x1068   : > { %v2076_v26 = vadd.f32 %v2075_v22, %v2628_v0  ;;  %v2482_v28 = vpop.f32.mrb[39].mxu0 }
0x106a   : > { %v2084_v29 = vadd.f32 %v2260_v24, %v2076_v26 }
0x106c   : > { %2085 = vst.msk [vmem:[%s408_s27] sm:$0xff] %vm413_vm0, %v2084_v29 }
0x106d PF: > { %s22_s21 = sadd.s32 1, %s2543_s21  }
0x106e   : > { %p19_p4 = scmp.ge.s32.totalorder %s22_s21, 4  }
0x1070   :  { %21 = sbr.rel (!%p19_p4) target bundleno = 1 (0x1), region = 119 }

// kernel: decoder_forward.8
= control target key start
LH: loop header
LB: loop body
LE: loop exit
PB: predicated region body
PF: predicated region fallthrough
CT: control target
= control target key end

     0   :  { %s2710_s25 = smov 0   ;;  %s3036_s0 = inlined_call_operand.vmem [shape: f32[2,8,32], index: 0, kind: input, shape index: {}]   ;;  %s3037_s1 = inlined_call_operand.vmem [shape: f32[2,8,32], index: 1, kind: input, shape index: {}]   ;;  %s3038_s2 = inlined_call_operand.vmem [shape: f32[1,32], index: 2, kind: input, shape index: {}]   ;;  %s3039_s3 = inlined_call_operand.vmem [shape: f32[1,32], index: 3, kind: input, shape index: {}]   ;;  %s3040_s4 = inlined_call_operand.vmem [shape: bf16[4,32,8], index: 4, kind: input, shape index: {}]   ;;  %s3041_s5 = inlined_call_operand.vmem [shape: f32[4,1,8], index: 5, kind: input, shape index: {}]   ;;  %s3042_s6 = inlined_call_operand.vmem [shape: bf16[4,32,8], index: 6, kind: input, shape index: {}]   ;;  %s3043_s7 = inlined_call_operand.vmem [shape: f32[4,1,8], index: 7, kind: input, shape index: {}]   ;;  %s3044_s8 = inlined_call_operand.vmem [shape: bf16[4,32,8], index: 8, kind: input, shape index: {}]   ;;  %s3045_s9 = inlined_call_operand.vmem [shape: f32[4,1,8], index: 9, kind: input, shape index: {}]   ;;  %s3046_s10 = inlined_call_operand.vmem [shape: bf16[4,8,32], index: 10, kind: input, shape index: {}]   ;;  %s3047_s11 = inlined_call_operand.vmem [shape: f32[1,32], index: 11, kind: input, shape index: {}]   ;;  %s3048_s12 = inlined_call_operand.vmem [shape: f32[2,1,8], index: 12, kind: input, shape index: {}]   ;;  %s3049_s13 = inlined_call_operand.vmem [shape: f32[2,8,32], index: 13, kind: output, shape index: {}]  }
   0x1 LB: > { %s2229_s26 = sadd.s32 4294967295, %s2635_s25   ;;  %p2233_p0 = scmp.ge.s32.totalorder %s2635_s25, 1  ;;  %s2635_s25 = sphi %s2710_s25, %s23_s25  }
   0x2   : > { %p403_p1 = scmp.lt.s32.totalorder %s2635_s25, 3 }
   0x4   : > { %p404_p2 = pnand %p2233_p0, %p403_p1 }
   0x5   : > { %p452_p3 = scmp.lt.s32.totalorder (!%p404_p2), %s2229_s26, 1  ;;  %vm473_vm0 = vcmask (!%p404_p2), 261120   ;;  %v2585_v7 = vld [vmem:[%s3042_s6] sm:$0xff] (!%p404_p2)   ;;  %v2637_v9 = vmov (!%p404_p2), 0.0   ;;  %v2587_v11 = vld [vmem:[%s3042_s6 + $0x8] sm:$0xff] (!%p404_p2)   ;;  %vm2638_vm1 = vmmov (!%p404_p2), 0   ;;  %v786_v56 = vlaneseq (!%p404_p2) }
   0x6   : > { %407 = sbr.rel (%p404_p2) target bundleno = 4204 (0x106c), region = 72  ;;  %v2586_v8 = vld [vmem:[%s3040_s4] sm:$0xff] (!%p404_p2)   ;;  %2422 = vmatprep.subr.bf16.mxu1 (!%p404_p2), %v2637_v9  ;;  %2414 = vmatprep.subr.bf16.mxu0 (!%p404_p2), %v2637_v9  ;;  %v2588_v12 = vld [vmem:[%s3040_s4 + $0x8] sm:$0xff] (!%p404_p2)   ;;  %v2591_v31 = vld [vmem:[%s3040_s4 + $0x10] sm:$0xff] (!%p404_p2)   ;;  %vm707_vm4 = vcmask (!%p404_p2), 64512   ;;  %v2639_v60 = vmov (!%p404_p2), 0  }
   0x7   : > { %2423 = vmatpush3.bf16.msra.mxu1 (!%p404_p2), %v2585_v7  ;;  %2415 = vmatpush3.bf16.msra.mxu0 (!%p404_p2), %v2586_v8  ;;  %v2237_v22 = vld [vmem:[%s3038_s2] ss:$0 sm:$0xff] (!%p404_p2)  ;;  %v2590_v30 = vld [vmem:[%s3044_s8 + $0x8] sm:$0xff] (!%p404_p2)   ;;  %v2592_v32 = vld [vmem:[%s3040_s4 + $0x18] sm:$0xff] (!%p404_p2)   ;;  %v787_v58 = vshrl.u32 (!%p404_p2), %v786_v56, 7  ;;  %vm1241_vm7 = vcmask (!%p404_p2), 1043456  }
   0x8   : > { %2424 = vmatprep.subr.bf16.mxu1 (!%p404_p2), %v2637_v9  ;;  %2426 = vmatprep.mubr.msk.bf16.mxu1 (!%p404_p2), %vm2638_vm1, %v2637_v9  ;;  %v2238_v25 = vld [vmem:[%s3039_s3] ss:$0 sm:$0xff] (!%p404_p2) }
   0x9   : > { %2416 = vmatprep.subr.bf16.mxu0 (!%p404_p2), %v2637_v9  ;;  %2418 = vmatprep.mubr.msk.bf16.mxu0 (!%p404_p2), %vm2638_vm1, %v2637_v9  ;;  %v2589_v28 = vld [vmem:[%s3044_s8] sm:$0xff] (!%p404_p2)   ;;  %v788_v59 = vsub.s32 (!%p404_p2), 0, %v787_v58  ;;  %v2599_v58 = vld [vmem:[%s3042_s6 + $0x28] sm:$0xff] (!%p404_p2)  }
   0xa   : > { %v2243_v37 = vld [vmem:[%s3043_s7] ss:$0 sm:$0xff] (!%p404_p2) }
   0xb   : > { %2425 = vmatpush3.bf16.msra.mxu1 (!%p404_p2), %v2587_v11  ;;  %2417 = vmatpush3.bf16.msra.mxu0 (!%p404_p2), %v2588_v12  ;;  %v2239_v39 = vld [vmem:[%s3041_s5] ss:$0 sm:$0xff] (!%p404_p2)  ;;  %v2596_v11 = vld [vmem:[%s3044_s8 + $0x18] sm:$0xff] (!%p404_p2)  }
   0xc   : > { %2430 = vmatprep.subr.bf16.mxu0 (!%p404_p2), %v2637_v9  ;;  %2438 = vmatprep.subr.mxu1 (!%p404_p2), %v2637_v9  ;;  %v2247_v46 = vld [vmem:[%s3045_s9] ss:$0 sm:$0xff] (!%p404_p2) }
   0xd   : > { %s3051_s26 = smov (!%p452_p3, %s2229_s26), 1  ;;  %v2597_v56 = vld [vmem:[%s3042_s6 + $0x20] sm:$0xff]  }
   0xe   : > { %s2721_s27 = sshll.u32 %s3051_s26, 3  ;;  %s462_s17 = scalar_lea.vmem %s3048_s12, %s3051_s26 }
   0xf   : > { %s455_s30 = scalar_lea.vmem %s3036_s0, %s2721_s27  ;;  %s459_s16 = scalar_lea.vmem %s3037_s1, %s2721_s27  ;;  %v510_v57 = vld [vmem:[%s462_s17] sm:$0x1] }
  0x10   : > { %v2727_v0 = vld [vmem:[%s455_s30] sm:$0xff]  ;;  %vm784_vm5 = vcmp.eq.f32.partialorder %v510_v57, 0.0  ;;  %s466_s19 = scalar_lea.vmem %s3049_s13, %s2721_s27 }
  0x11   : > { %v474_v1 = vsel %vm473_vm0, %v2727_v0, 0.0  ;;  %v469_v10 = vld [vmem:[%s459_s16] sm:$0xff]  ;;  %v785_v61 = vsel %vm784_vm5, 1, %v2639_v60 }
  0x12   : > { %475 = vadd.xlane.f32.xlu0 %v474_v1  ;;  %v2757_v13 = vpack.c.bf16 %v469_v10, %v469_v10  ;;  %v2822_v62 = vrot.slane %v785_v61, %v788_v59  ;;  %v2595_v10 = vld [vmem:[%s3044_s8 + $0x10] sm:$0xff]   ;;  %v2598_v60 = vld [vmem:[%s3040_s4 + $0x20] sm:$0xff]  }
  0x14   : > { %2427 = vmatmul.mubr.msk.bf16.vlgmr.msra.gmra.mrb[0].mxu1 %vm473_vm0, %v2757_v13  ;;  %vm790_vm6 = vcmp.eq.s32.totalorder %v2822_v62, 1 }
  0x15   : > { %2440 = vmatprep.mubr.msk.f32.mxu1 %vm2638_vm1, %v2637_v9 }
  0x9f   : > { %v476_v2 = vpop.xlane.xlu0 %475 }
  0xa0   : > { %v478_v3 = vmul.f32 0.03125, %v476_v2 }
  0xa2   : > { %v479_v4 = vsub.f32 %v2727_v0, %v478_v3 }
  0xa4   : > { %v480_v5 = vmul.f32 %v479_v4, %v479_v4  ;;  %v500_v23 = vmul.f32 %v2237_v22, %v479_v4 }
  0xa6   : > { %v481_v6 = vsel %vm473_vm0, %v480_v5, 0.0 }
  0xa7   : > { %482 = vadd.xlane.f32.xlu0 %v481_v6 }
  0xe7   : > { %v638_v33 = vpop.f32.mrb[0].mxu1 }
  0xe8   : > { %v2428_v34 = vpop.f32.mrb[1].mxu1  ;;  %v639_v38 = vadd.f32 %v2243_v37, %v638_v33 }
  0xe9   : > { %v641_v35 = vpop.f32.mrb[2].mxu1 }
  0xea   : > { %v2429_v36 = vpop.f32.mrb[3].mxu1  ;;  %2439 = vmatpush3.xpose.msk.msra.mxu1 %vm707_vm4, %v639_v38 }
  0xeb   : > { %2443 = vmatprep.subr.mxu1 %v2637_v9 }
 0x134   : > { %v483_v14 = vpop.xlane.xlu0 %482 }
 0x135   : > { %v484_v15 = vmul.f32 0.032258064, %v483_v14 }
 0x137   : > { %2609 = vrsqrt.f32 %v484_v15  ;;  %vm487_vm2 = vcmp.eq.f32.partialorder %v484_v15, inf  ;;  %v490_v18 = vand.u32 2147483648, %v484_v15  ;;  %vm489_vm3 = vcmp.eq.f32.partialorder %v484_v15, 0.0 }
 0x141   : > { %v2610_v16 = vpop.eup %2609 }
 0x142   : > { %v486_v17 = vmul.f32 %v2610_v16, %v484_v15 }
 0x144   : > { %v488_v19 = vsel %vm487_vm2, %v484_v15, %v486_v17  ;;  %v2593_v15 = vld [vmem:[%s3042_s6 + $0x10] sm:$0xff]   ;;  %v2594_v17 = vld [vmem:[%s3042_s6 + $0x18] sm:$0xff]  }
 0x145   : > { %v491_v20 = vsel %vm489_vm3, %v490_v18, %v488_v19  ;;  %v877_v18 = vld [vmem:[%s3046_s10] sm:$0xf] }
 0x146   : > { %v492_v21 = vadd.f32 1e-06, %v491_v20  ;;  %v1289_v19 = vsel %vm1241_vm7, %v877_v18, 0 }
 0x148   : > { %2611 = vrcp.f32 %v492_v21 }
 0x152   : > { %v2612_v24 = vpop.eup %2611 }
 0x153   : > { %v501_v26 = vmul.f32 %v2612_v24, %v500_v23 }
 0x155   : > { %v508_v27 = vadd.f32 %v2238_v25, %v501_v26 }
 0x157   : > { %v2774_v29 = vpack.c.bf16 %v508_v27, %v508_v27  ;;  %v2259_v27 = vld [vmem:[%s3041_s5 + $0x1] ss:$0 sm:$0xff] }
 0x159   : > { %2419 = vmatmul.mubr.msk.bf16.vlgmr.msra.gmra.mrb[0].mxu0 %vm473_vm0, %v2774_v29 }
 0x15a   : > { %2431 = vmatpush3.bf16.msra.mxu0 %v2589_v28  ;;  %2434 = vmatprep.mubr.msk.bf16.mxu0 %vm2638_vm1, %v2637_v9  ;;  %v2268_v28 = vld [vmem:[%s3043_s7 + $0x1] ss:$0 sm:$0xff] }
 0x15b   : > { %2432 = vmatprep.subr.bf16.mxu0 %v2637_v9 }
 0x15e   : > { %2433 = vmatpush3.bf16.msra.mxu0 %v2590_v30 }
 0x15f   : > { %2448 = vmatprep.subr.bf16.mxu0 %v2637_v9 }
 0x161   : > { %2435 = vmatmul.mubr.msk.bf16.vlgmr.msra.gmra.mrb[4].mxu0 %vm473_vm0, %v2757_v13 }
 0x162   : > { %2449 = vmatpush3.bf16.msra.mxu0 %v2591_v31  ;;  %2452 = vmatprep.mubr.msk.bf16.mxu0 %vm2638_vm1, %v2637_v9 }
 0x163   : > { %2450 = vmatprep.subr.bf16.mxu0 %v2637_v9 }
 0x166   : > { %2451 = vmatpush3.bf16.msra.mxu0 %v2592_v32  ;;  %v2277_v32 = vld [vmem:[%s3045_s9 + $0x1] ss:$0 sm:$0xff] }
 0x167   : > { %2464 = vmatprep.subr.bf16.mxu0 %v2637_v9 }
 0x169   : > { %2453 = vmatmul.mubr.msk.bf16.vlgmr.msra.gmra.mrb[8].mxu0 %vm473_vm0, %v2774_v29 }
 0x16a   : > { %2468 = vmatprep.mubr.msk.bf16.mxu0 %vm2638_vm1, %v2637_v9  ;;  %2465 = vmatpush3.bf16.msra.mxu0 %v2595_v10 }
 0x16b   : > { %2466 = vmatprep.subr.bf16.mxu0 %v2637_v9 }
 0x16e   : > { %2467 = vmatpush3.bf16.msra.mxu0 %v2596_v11 }
 0x16f   : > { %2488 = vmatprep.subr.bf16.mxu0 %v2637_v9 }
 0x171   : > { %2469 = vmatmul.mubr.msk.bf16.vlgmr.msra.gmra.mrb[12].mxu0 %vm473_vm0, %v2757_v13 }
 0x172   : > { %2490 = vmatprep.mubr.msk.bf16.mxu0 %vm2638_vm1, %v2637_v9  ;;  %2489 = vmatpush3.bf16.msra.mxu0 %v1289_v19 }
 0x173   : > { %2502 = vmatprep.subr.bf16.mxu0 %v2637_v9 }
 0x22c   : > { %v571_v40 = vpop.f32.mrb[0].mxu0 }
 0x22d   : > { %v572_v41 = vadd.f32 %v2239_v39, %v571_v40  ;;  %v2420_v42 = vpop.f32.mrb[1].mxu0 }
 0x22e   : > { %v574_v43 = vpop.f32.mrb[2].mxu0 }
 0x22f   : > { %v577_v44 = vmul.f32 0.35355338, %v572_v41  ;;  %v2421_v45 = vpop.f32.mrb[3].mxu0 }
 0x231   : > { %2441 = vmatmul.mubr.msk.f32.vlgmr.msra.gmra.mrb[4].mxu1 %vm707_vm4, %v577_v44 }
 0x232   : > { %2445 = vmatprep.mubr.msk.f32.mxu1 %vm2638_vm1, %v2637_v9 }
 0x234   : > { %v701_v47 = vpop.f32.mrb[4].mxu0 }
 0x235   : > { %v702_v48 = vadd.f32 %v2247_v46, %v701_v47  ;;  %v2436_v49 = vpop.f32.mrb[5].mxu0 }
 0x236   : > { %v704_v50 = vpop.f32.mrb[6].mxu0 }
 0x237   : > { %v2437_v51 = vpop.f32.mrb[7].mxu0  ;;  %2444 = vmatpush3.msra.mxu1 %v702_v48 }
 0x238   : > { %2456 = vmatprep.subr.bf16.mxu1 %v2637_v9 }
 0x23c   : > { %v2816_v52 = vpop.f32.mrb[8].mxu0 }
 0x23d   : > { %v2454_v53 = vpop.f32.mrb[9].mxu0  ;;  %v938_v30 = vadd.f32 %v2259_v27, %v2816_v52 }
 0x23e   : > { %v940_v54 = vpop.f32.mrb[10].mxu0 }
 0x23f   : > { %v2455_v55 = vpop.f32.mrb[11].mxu0  ;;  %v943_v38 = vmul.f32 0.35355338, %v938_v30 }
 0x240   : > { %v2284_v55 = vld [vmem:[%s3046_s10 + $0x4] sm:$0xf] }
 0x241   : > { %v1243_v57 = vsel %vm1241_vm7, %v2284_v55, 0 }
 0x244   : > { %v1068_v20 = vpop.f32.mrb[12].mxu0 }
 0x245   : > { %v2470_v21 = vpop.f32.mrb[13].mxu0  ;;  %v1069_v37 = vadd.f32 %v2277_v32, %v1068_v20 }
 0x246   : > { %v1071_v22 = vpop.f32.mrb[14].mxu0 }
 0x247   : > { %v2471_v23 = vpop.f32.mrb[15].mxu0  ;;  %v2601_v22 = vld [vmem:[%s3044_s8 + $0x20] sm:$0xff]  }
 0x248   : > { %v2602_v23 = vld [vmem:[%s3044_s8 + $0x28] sm:$0xff]  }
 0x304   : > { %v780_v63 = vpop.f32.mrb[4].mxu1 }
 0x305   : > { %v791_v1 = vsel %vm790_vm6, -1e+09, %v780_v63  ;;  %v2442_v2 = vpop.f32.mrb[5].mxu1 }
 0x306   : > { %v792_v3 = vsel %vm707_vm4, %v791_v1, -inf  ;;  %v2301_v2 = vld [vmem:[%s3043_s7 + $0x2] ss:$0 sm:$0xff] }
 0x307   : > { %793 = vmax.xlane.f32.xlu1 %v792_v3 }
 0x394   : > { %v794_v4 = vpop.xlane.xlu1 %793 }
 0x395   : > { %v795_v5 = vsub.f32 %v791_v1, %v794_v4  ;;  %v2600_v1 = vld [vmem:[%s3040_s4 + $0x28] sm:$0xff]  }
 0x397   : > { %v796_v6 = vmul.f32 1.442695, %v795_v5 }
 0x399   : > { %2613 = vpow2.f32 %v796_v6 }
 0x3a3   : > { %v2614_v7 = vpop.eup %2613 }
 0x3a4   : > { %v798_v8 = vsel %vm707_vm4, %v2614_v7, 0.0 }
 0x3a5   : > { %799 = vadd.xlane.f32.xlu1 %v798_v8 }
 0x432   : > { %v800_v12 = vpop.xlane.xlu1 %799 }
 0x433   : > { %2615 = vrcp.f32 %v800_v12 }
 0x43d   : > { %v2616_v14 = vpop.eup %2615 }
 0x43e   : > { %v802_v16 = vmul.f32 %v2616_v14, %v2614_v7 }
 0x440   : > { %2446 = vmatmul.mubr.msk.f32.vlgmr.msra.gmra.mrb[6].mxu1 %vm707_vm4, %v802_v16 }
 0x441   : > { %2457 = vmatpush3.bf16.msra.mxu1 %v2593_v15  ;;  %2460 = vmatprep.mubr.msk.bf16.mxu1 %vm2638_vm1, %v2637_v9  ;;  %v2292_v15 = vld [vmem:[%s3041_s5 + $0x2] ss:$0 sm:$0xff] }
 0x442   : > { %2458 = vmatprep.subr.bf16.mxu1 %v2637_v9 }
 0x445   : > { %2459 = vmatpush3.bf16.msra.mxu1 %v2594_v17 }
 0x446   : > { %2472 = vmatprep.subr.mxu1 %v2637_v9 }
 0x448   : > { %2461 = vmatmul.mubr.msk.bf16.vlgmr.msra.gmra.mrb[8].mxu1 %vm473_vm0, %v2757_v13 }
 0x449   : > { %2474 = vmatprep.mubr.msk.f32.mxu1 %vm2638_vm1, %v2637_v9 }
 0x513   : > { %v872_v24 = vpop.f32.mrb[6].mxu1 }
 0x514   : > { %v876_v25 = vpack.c.bf16 %v872_v24, %v872_v24  ;;  %v2447_v26 = vpop.f32.mrb[7].mxu1 }
 0x516   : > { %2491 = vmatmul.mubr.msk.bf16.vlgmr.msra.gmra.mrb[16].mxu0 %vm707_vm4, %v876_v25 }
 0x517   : > { %2506 = vmatprep.mubr.msk.bf16.mxu0 %vm2638_vm1, %v2637_v9  ;;  %2503 = vmatpush3.bf16.msra.mxu0 %v2597_v56 }
 0x518   : > { %2504 = vmatprep.subr.bf16.mxu0 %v2637_v9 }
 0x51b   : > { %v1003_v31 = vpop.f32.mrb[8].mxu1  ;;  %2505 = vmatpush3.bf16.msra.mxu0 %v2599_v58 }
 0x51c   : > { %v1004_v33 = vadd.f32 %v2268_v28, %v1003_v31  ;;  %v2462_v34 = vpop.f32.mrb[9].mxu1  ;;  %2518 = vmatprep.subr.mxu0 %v2637_v9 }
 0x51d   : > { %v1006_v35 = vpop.f32.mrb[10].mxu1 }
 0x51e   : > { %v2463_v36 = vpop.f32.mrb[11].mxu1  ;;  %2473 = vmatpush3.xpose.msk.msra.mxu1 %vm707_vm4, %v1004_v33  ;;  %2507 = vmatmul.mubr.msk.bf16.vlgmr.msra.gmra.mrb[20].mxu0 %vm473_vm0, %v2757_v13 }
 0x51f   : > { %2477 = vmatprep.subr.mxu1 %v2637_v9  ;;  %2520 = vmatprep.mubr.msk.f32.mxu0 %vm2638_vm1, %v2637_v9  ;;  %v2310_v36 = vld [vmem:[%s3045_s9 + $0x2] ss:$0 sm:$0xff] }
 0x521   : > { %2475 = vmatmul.mubr.msk.f32.vlgmr.msra.gmra.mrb[12].mxu1 %vm707_vm4, %v943_v38 }
 0x522   : > { %2478 = vmatpush3.msra.mxu1 %v1069_v37  ;;  %2479 = vmatprep.mubr.msk.f32.mxu1 %vm2638_vm1, %v2637_v9 }
 0x523   : > { %2482 = vmatprep.subr.bf16.mxu1 %v2637_v9 }
 0x5e9   : > { %v1325_v39 = vpop.f32.mrb[16].mxu0 }
 0x5ea   : > { %v2492_v40 = vpop.f32.mrb[17].mxu0 }
 0x5eb   : > { %v1328_v41 = vpop.f32.mrb[18].mxu0 }
 0x5ec   : > { %v2493_v42 = vpop.f32.mrb[19].mxu0 }
 0x5ed   : > { %v2603_v42 = vld [vmem:[%s3040_s4 + $0x30] sm:$0xff]  }
 0x5f1   : > { %v1456_v3 = vpop.f32.mrb[20].mxu0 }
 0x5f2   : > { %v1457_v4 = vadd.f32 %v2301_v2, %v1456_v3  ;;  %v2508_v5 = vpop.f32.mrb[21].mxu0 }
 0x5f3   : > { %v1459_v6 = vpop.f32.mrb[22].mxu0 }
 0x5f4   : > { %v1146_v43 = vpop.f32.mrb[12].mxu1  ;;  %v2509_v7 = vpop.f32.mrb[23].mxu0  ;;  %2519 = vmatpush3.xpose.msk.msra.mxu0 %vm707_vm4, %v1457_v4 }
 0x5f5   : > { %v1150_v44 = vsel %vm790_vm6, -1e+09, %v1146_v43  ;;  %v2476_v45 = vpop.f32.mrb[13].mxu1  ;;  %2523 = vmatprep.subr.mxu0 %v2637_v9  ;;  %v2607_v7 = vld [vmem:[%s3044_s8 + $0x30] sm:$0xff]  }
 0x5f6   : > { %v1151_v46 = vsel %vm707_vm4, %v1150_v44, -inf  ;;  %v2317_v45 = vld [vmem:[%s3046_s10 + $0x8] sm:$0xf] }
 0x5f7   : > { %1152 = vmax.xlane.f32.xlu0 %v1151_v46  ;;  %v1695_v46 = vsel %vm1241_vm7, %v2317_v45, 0 }
 0x684   : > { %v1153_v47 = vpop.xlane.xlu0 %1152 }
 0x685   : > { %v1154_v48 = vsub.f32 %v1150_v44, %v1153_v47  ;;  %v2604_v44 = vld [vmem:[%s3040_s4 + $0x38] sm:$0xff]  }
 0x687   : > { %v1155_v49 = vmul.f32 1.442695, %v1154_v48  ;;  %v2605_v48 = vld [vmem:[%s3042_s6 + $0x30] sm:$0xff]  }
 0x689   : > { %2617 = vpow2.f32 %v1155_v49 }
 0x693   : > { %v2618_v50 = vpop.eup %2617 }
 0x694   : > { %v1157_v51 = vsel %vm707_vm4, %v2618_v50, 0.0 }
 0x695   : > { %1158 = vadd.xlane.f32.xlu1 %v1157_v51 }
 0x722   : > { %v1159_v52 = vpop.xlane.xlu1 %1158 }
 0x723   : > { %2619 = vrcp.f32 %v1159_v52 }
 0x72d   : > { %v2620_v53 = vpop.eup %2619 }
 0x72e   : > { %v1161_v54 = vmul.f32 %v2620_v53, %v2618_v50 }
 0x730   : > { %2480 = vmatmul.mubr.msk.f32.vlgmr.msra.gmra.mrb[14].mxu1 %vm707_vm4, %v1161_v54 }
 0x731   : > { %2484 = vmatprep.mubr.msk.bf16.mxu1 %vm2638_vm1, %v2637_v9  ;;  %2483 = vmatpush3.bf16.msra.mxu1 %v1243_v57 }
 0x732   : > { %2494 = vmatprep.subr.bf16.mxu1 %v2637_v9 }
 0x803   : > { %v1231_v59 = vpop.f32.mrb[14].mxu1 }
 0x804   : > { %v1235_v61 = vpack.c.bf16 %v1231_v59, %v1231_v59  ;;  %v2481_v63 = vpop.f32.mrb[15].mxu1 }
 0x806   : > { %2485 = vmatmul.mubr.msk.bf16.vlgmr.msra.gmra.mrb[16].mxu1 %vm707_vm4, %v1235_v61  ;;  %v2333_v61 = vld [vmem:[%s3043_s7 + $0x3] ss:$0 sm:$0xff] }
 0x807   : > { %2495 = vmatpush3.bf16.msra.mxu1 %v2598_v60  ;;  %2498 = vmatprep.mubr.msk.bf16.mxu1 %vm2638_vm1, %v2637_v9  ;;  %v2324_v60 = vld [vmem:[%s3041_s5 + $0x3] ss:$0 sm:$0xff] }
 0x808   : > { %2496 = vmatprep.subr.bf16.mxu1 %v2637_v9 }
 0x80b   : > { %2497 = vmatpush3.bf16.msra.mxu1 %v2600_v1 }
 0x80c   : > { %2510 = vmatprep.subr.bf16.mxu1 %v2637_v9 }
 0x80e   : > { %2499 = vmatmul.mubr.msk.bf16.vlgmr.msra.gmra.mrb[20].mxu1 %vm473_vm0, %v2774_v29 }
 0x80f   : > { %2514 = vmatprep.mubr.msk.bf16.mxu1 %vm2638_vm1, %v2637_v9  ;;  %2511 = vmatpush3.bf16.msra.mxu1 %v2601_v22 }
 0x810   : > { %2512 = vmatprep.subr.bf16.mxu1 %v2637_v9 }
 0x813   : > { %2513 = vmatpush3.bf16.msra.mxu1 %v2602_v23 }
 0x814   : > { %2528 = vmatprep.subr.bf16.mxu1 %v2637_v9 }
 0x816   : > { %2515 = vmatmul.mubr.msk.bf16.vlgmr.msra.gmra.mrb[24].mxu1 %vm473_vm0, %v2757_v13 }
 0x817   : > { %2530 = vmatprep.mubr.msk.bf16.mxu1 %vm2638_vm1, %v2637_v9  ;;  %2529 = vmatpush3.bf16.msra.mxu1 %v1695_v46 }
 0x818   : > { %2542 = vmatprep.subr.bf16.mxu1 %v2637_v9 }
 0x8d9   : > { %v1279_v8 = vpop.f32.mrb[16].mxu1 }
 0x8da   : > { %v2924_v10 = vadd.f32 %v1325_v39, %v1279_v8  ;;  %v2486_v11 = vpop.f32.mrb[17].mxu1  ;;  %v2608_v8 = vld [vmem:[%s3044_s8 + $0x38] sm:$0xff]  }
 0x8db   : > { %v1282_v12 = vpop.f32.mrb[18].mxu1 }
 0x8dc   : > { %v2487_v14 = vpop.f32.mrb[19].mxu1 }
 0x8e1   : > { %v1390_v16 = vpop.f32.mrb[20].mxu1 }
 0x8e2   : > { %v1391_v17 = vadd.f32 %v2292_v15, %v1390_v16  ;;  %v2500_v18 = vpop.f32.mrb[21].mxu1 }
 0x8e3   : > { %v1393_v19 = vpop.f32.mrb[22].mxu1 }
 0x8e4   : > { %v1396_v20 = vmul.f32 0.35355338, %v1391_v17  ;;  %v2501_v21 = vpop.f32.mrb[23].mxu1 }
 0x8e6   : > { %2521 = vmatmul.mubr.msk.f32.vlgmr.msra.gmra.mrb[24].mxu0 %vm707_vm4, %v1396_v20 }
 0x8e7   : > { %2525 = vmatprep.mubr.msk.f32.mxu0 %vm2638_vm1, %v2637_v9 }
 0x8e9   : > { %v1521_v34 = vpop.f32.mrb[24].mxu1 }
 0x8ea   : > { %v2516_v35 = vpop.f32.mrb[25].mxu1  ;;  %v1522_v38 = vadd.f32 %v2310_v36, %v1521_v34 }
 0x8eb   : > { %v1524_v37 = vpop.f32.mrb[26].mxu1  ;;  %v2351_v35 = vld [vmem:[%s3047_s11] ss:$0 sm:$0xff] }
 0x8ec   : > { %v2517_v39 = vpop.f32.mrb[27].mxu1  ;;  %2524 = vmatpush3.msra.mxu0 %v1522_v38 }
 0x8ed   : > { %2534 = vmatprep.subr.bf16.mxu0 %v2637_v9 }
 0x9b9   : > { %v1599_v24 = vpop.f32.mrb[24].mxu0 }
 0x9ba   : > { %v1603_v25 = vsel %vm790_vm6, -1e+09, %v1599_v24  ;;  %v2522_v26 = vpop.f32.mrb[25].mxu0 }
 0x9bb   : > { %v1604_v27 = vsel %vm707_vm4, %v1603_v25, -inf  ;;  %v2349_v26 = vld [vmem:[%s3046_s10 + $0xc] sm:$0xf] }
 0x9bc   : > { %1605 = vmax.xlane.f32.xlu0 %v1604_v27  ;;  %v2102_v27 = vsel %vm1241_vm7, %v2349_v26, 0 }
 0xa49   : > { %v1606_v28 = vpop.xlane.xlu0 %1605 }
 0xa4a   : > { %v1607_v30 = vsub.f32 %v1603_v25, %v1606_v28 }
 0xa4c   : > { %v1608_v31 = vmul.f32 1.442695, %v1607_v30 }
 0xa4e   : > { %2621 = vpow2.f32 %v1608_v31 }
 0xa58   : > { %v2622_v32 = vpop.eup %2621 }
 0xa59   : > { %v1610_v33 = vsel %vm707_vm4, %v2622_v32, 0.0 }
 0xa5a   : > { %1611 = vadd.xlane.f32.xlu1 %v1610_v33 }
 0xae7   : > { %v1612_v40 = vpop.xlane.xlu1 %1611 }
 0xae8   : > { %2623 = vrcp.f32 %v1612_v40 }
 0xaf2   : > { %v2624_v41 = vpop.eup %2623 }
 0xaf3   : > { %v1614_v43 = vmul.f32 %v2624_v41, %v2622_v32 }
 0xaf5   : > { %2526 = vmatmul.mubr.msk.f32.vlgmr.msra.gmra.mrb[26].mxu0 %vm707_vm4, %v1614_v43 }
 0xaf6   : > { %2535 = vmatpush3.bf16.msra.mxu0 %v2603_v42  ;;  %2538 = vmatprep.mubr.msk.bf16.mxu0 %vm2638_vm1, %v2637_v9 }
 0xaf7   : > { %2536 = vmatprep.subr.bf16.mxu0 %v2637_v9 }
 0xafa   : > { %2537 = vmatpush3.bf16.msra.mxu0 %v2604_v44 }
 0xafb   : > { %2550 = vmatprep.subr.bf16.mxu0 %v2637_v9 }
 0xafd   : > { %2539 = vmatmul.mubr.msk.bf16.vlgmr.msra.gmra.mrb[28].mxu0 %vm473_vm0, %v2774_v29  ;;  %v2606_v29 = vld [vmem:[%s3042_s6 + $0x38] sm:$0xff]  }
 0xafe   : > { %2554 = vmatprep.mubr.msk.bf16.mxu0 %vm2638_vm1, %v2637_v9  ;;  %2551 = vmatpush3.bf16.msra.mxu0 %v2607_v7 }
 0xaff   : > { %2552 = vmatprep.subr.bf16.mxu0 %v2637_v9 }
 0xb02   : > { %2553 = vmatpush3.bf16.msra.mxu0 %v2608_v8 }
 0xb03   : > { %2568 = vmatprep.subr.bf16.mxu0 %v2637_v9 }
 0xb05   : > { %2555 = vmatmul.mubr.msk.bf16.vlgmr.msra.gmra.mrb[32].mxu0 %vm473_vm0, %v2757_v13 }
 0xb06   : > { %2570 = vmatprep.mubr.msk.bf16.mxu0 %vm2638_vm1, %v2637_v9  ;;  %2569 = vmatpush3.bf16.msra.mxu0 %v2102_v27 }
 0xbc8   : > { %v1684_v47 = vpop.f32.mrb[26].mxu0 }
 0xbc9   : > { %v1688_v49 = vpack.c.bf16 %v1684_v47, %v1684_v47  ;;  %v2527_v50 = vpop.f32.mrb[27].mxu0 }
 0xbcb   : > { %2531 = vmatmul.mubr.msk.bf16.vlgmr.msra.gmra.mrb[28].mxu1 %vm707_vm4, %v1688_v49 }
 0xbcc   : > { %2543 = vmatpush3.bf16.msra.mxu1 %v2605_v48  ;;  %2546 = vmatprep.mubr.msk.bf16.mxu1 %vm2638_vm1, %v2637_v9 }
 0xbcd   : > { %2544 = vmatprep.subr.bf16.mxu1 %v2637_v9 }
 0xbd0   : > { %v1797_v51 = vpop.f32.mrb[28].mxu0  ;;  %2545 = vmatpush3.bf16.msra.mxu1 %v2606_v29 }
 0xbd1   : > { %v2540_v52 = vpop.f32.mrb[29].mxu0  ;;  %2558 = vmatprep.subr.mxu1 %v2637_v9  ;;  %v1798_v63 = vadd.f32 %v2324_v60, %v1797_v51 }
 0xbd2   : > { %v1800_v53 = vpop.f32.mrb[30].mxu0 }
 0xbd3   : > { %v2541_v54 = vpop.f32.mrb[31].mxu0  ;;  %2547 = vmatmul.mubr.msk.bf16.vlgmr.msra.gmra.mrb[32].mxu1 %vm473_vm0, %v2757_v13  ;;  %v1803_v6 = vmul.f32 0.35355338, %v1798_v63 }
 0xbd4   : > { %2560 = vmatprep.mubr.msk.f32.mxu1 %vm2638_vm1, %v2637_v9 }
 0xbd8   : > { %v1928_v13 = vpop.f32.mrb[32].mxu0 }
 0xbd9   : > { %v2556_v20 = vpop.f32.mrb[33].mxu0 }
 0xbda   : > { %v1931_v21 = vpop.f32.mrb[34].mxu0 }
 0xbdb   : > { %v2557_v62 = vpop.f32.mrb[35].mxu0 }
 0xc9e   : > { %v1731_v55 = vpop.f32.mrb[28].mxu1 }
 0xc9f   : > { %v1737_v56 = vadd.f32 %v1731_v55, %v2924_v10  ;;  %v2532_v57 = vpop.f32.mrb[29].mxu1 }
 0xca0   : > { %v1734_v58 = vpop.f32.mrb[30].mxu1 }
 0xca1   : > { %v2533_v59 = vpop.f32.mrb[31].mxu1 }
 0xca6   : > { %v1863_v1 = vpop.f32.mrb[32].mxu1 }
 0xca7   : > { %v1864_v2 = vadd.f32 %v2333_v61, %v1863_v1  ;;  %v2548_v3 = vpop.f32.mrb[33].mxu1 }
 0xca8   : > { %v1866_v4 = vpop.f32.mrb[34].mxu1 }
 0xca9   : > { %v2549_v5 = vpop.f32.mrb[35].mxu1  ;;  %2559 = vmatpush3.xpose.msk.msra.mxu1 %vm707_vm4, %v1864_v2 }
 0xcaa   : > { %2563 = vmatprep.subr.mxu1 %v2637_v9 }
 0xcac   : > { %2561 = vmatmul.mubr.msk.f32.vlgmr.msra.gmra.mrb[36].mxu1 %vm707_vm4, %v1803_v6 }
 0xcad   : > { %2565 = vmatprep.mubr.msk.f32.mxu1 %vm2638_vm1, %v2637_v9  ;;  %v2342_v9 = vld [vmem:[%s3045_s9 + $0x3] ss:$0 sm:$0xff] }
 0xcae   : > { %v1929_v22 = vadd.f32 %v2342_v9, %v1928_v13 }
 0xcb0   : > { %2564 = vmatpush3.msra.mxu1 %v1929_v22 }
 0xd7f   : > { %v2006_v10 = vpop.f32.mrb[36].mxu1 }
 0xd80   : > { %v2010_v11 = vsel %vm790_vm6, -1e+09, %v2006_v10  ;;  %v2562_v12 = vpop.f32.mrb[37].mxu1 }
 0xd81   : > { %v2011_v14 = vsel %vm707_vm4, %v2010_v11, -inf }
 0xd82   : > { %2012 = vmax.xlane.f32.xlu0 %v2011_v14 }
 0xe0f   : > { %v2013_v15 = vpop.xlane.xlu0 %2012 }
 0xe10   : > { %v2014_v16 = vsub.f32 %v2010_v11, %v2013_v15 }
 0xe12   : > { %v2015_v17 = vmul.f32 1.442695, %v2014_v16 }
 0xe14   : > { %2625 = vpow2.f32 %v2015_v17 }
 0xe1e   : > { %v2626_v18 = vpop.eup %2625 }
 0xe1f   : > { %v2017_v19 = vsel %vm707_vm4, %v2626_v18, 0.0 }
 0xe20   : > { %2018 = vadd.xlane.f32.xlu1 %v2017_v19 }
 0xead   : > { %v2019_v23 = vpop.xlane.xlu1 %2018 }
 0xeae   : > { %2627 = vrcp.f32 %v2019_v23 }
 0xeb8   : > { %v2628_v24 = vpop.eup %2627 }
 0xeb9   : > { %v2021_v25 = vmul.f32 %v2628_v24, %v2626_v18 }
 0xebb   : > { %2566 = vmatmul.mubr.msk.f32.vlgmr.msra.gmra.mrb[38].mxu1 %vm707_vm4, %v2021_v25 }
 0xf8e   : > { %v2091_v28 = vpop.f32.mrb[38].mxu1 }
 0xf8f   : > { %v2095_v30 = vpack.c.bf16 %v2091_v28, %v2091_v28  ;;  %v2567_v31 = vpop.f32.mrb[39].mxu1 }
 0xf91   : > { %2571 = vmatmul.mubr.msk.bf16.vlgmr.msra.gmra.mrb[36].mxu0 %vm707_vm4, %v2095_v30 }
0x1064   : > { %v2138_v32 = vpop.f32.mrb[36].mxu0 }
0x1065   : > { %v2144_v33 = vadd.f32 %v2138_v32, %v1737_v56  ;;  %v2572_v34 = vpop.f32.mrb[37].mxu0 }
0x1066   : > { %v2141_v36 = vpop.f32.mrb[38].mxu0 }
0x1067   : > { %v2145_v37 = vadd.f32 %v2144_v33, %v2727_v0  ;;  %v2573_v38 = vpop.f32.mrb[39].mxu0 }
0x1069   : > { %v2153_v39 = vadd.f32 %v2351_v35, %v2145_v37 }
0x106b   : > { %2154 = vst.msk [vmem:[%s466_s19] sm:$0xff] %vm473_vm0, %v2153_v39 }
0x106c PF: > { %s23_s25 = sadd.s32 1, %s2635_s25  }
0x106d   : > { %p20_p4 = scmp.ge.s32.totalorder %s23_s25, 4  }
0x106f   :  { %22 = sbr.rel (!%p20_p4) target bundleno = 1 (0x1), region = 129 }

</bundles_post_ra>
